<compile_context>
chip_gen: v7x
topology: tpu7x:2x2x1
jax: 0.10.0
libtpu: 0.0.40
codegen_flags: <defaults>
</compile_context>

<pallas_src>
import functools

import jax
import jax.numpy as jnp
from jax.experimental import pallas as pl
from jax.experimental.pallas import tpu as pltpu


# ----------------------------------------------------------------------------
# helpers
# ----------------------------------------------------------------------------
def _round_up(x, m):
    return ((x + m - 1) // m) * m


def _pick_tile(dim, desired, align=128):
    """Largest multiple of `align` that divides `dim` and is <= desired.
    `dim` must itself be a multiple of `align` (we pad to guarantee this)."""
    best = align
    t = align
    top = min(desired, dim)
    while t <= top:
        if dim % t == 0:
            best = t
        t += align
    return best


def _choose_padding_and_tiles(n, *, tm_max=512, tk_max=1024):
    """Pad node count to a lane multiple and pick adjacency tile sizes."""
    n_pad = _round_up(max(n, 1), 128)
    # >= 2 row blocks whenever possible so both v7x TensorCores get work.
    tm_desired = min(tm_max, n_pad // 2 if n_pad >= 256 else n_pad)
    tm = _pick_tile(n_pad, tm_desired)
    tk = _pick_tile(n_pad, tk_max)
    return n_pad, tm, tk


def cv_squared(v):
    v = v.astype(jnp.float32)
    if v.shape[0] == 1:
        return jnp.zeros((), jnp.float32)
    # torch.var() default is unbiased (ddof=1)
    return jnp.var(v, ddof=1) / (jnp.mean(v) ** 2 + 1e-10)


# ----------------------------------------------------------------------------
# Pallas kernel: one MoE "depth step"
#     Z = A_hat @ T_cat + bias_cat                       (f32 accumulator)
#     continuing experts : H_next = relu(Z[:, :w_cont])          (bf16 out)
#     finishing expert   : y_out  = y_in + gate * Z[:, w_cont:]  (f32, aliased)
# ----------------------------------------------------------------------------
def _depth_kernel(*refs, w_cont, w_fin):
    has_cont = w_cont > 0
    has_fin = w_fin > 0

    it = iter(refs)
    t_ref = next(it)            # (tk, w_tot)  bf16
    adj_ref = next(it)          # (tm, tk)     bf16
    b_ref = next(it)            # (1, w_tot)   f32
    g_ref = next(it) if has_fin else None       # (tm, 1)   f32
    y_in_ref = next(it) if has_fin else None    # (tm, w_fin) f32 (aliased)
    h_out_ref = next(it) if has_cont else None  # (tm, w_cont) bf16
    y_out_ref = next(it) if has_fin else None   # (tm, w_fin)  f32
    acc_ref = next(it)          # (tm, w_tot)  f32 scratch

    k = pl.program_id(1)

    @pl.when(k == 0)
    def _():
        acc_ref[...] = jnp.zeros_like(acc_ref)

    # The single hot GEMM: bf16 x bf16 on the MXU with f32 accumulation.
    acc_ref[...] += jnp.dot(adj_ref[...], t_ref[...],
                            preferred_element_type=jnp.float32)

    @pl.when(k == pl.num_programs(1) - 1)
    def _():
        z = acc_ref[...] + b_ref[...]
        if has_cont:
            h_out_ref[...] = jnp.maximum(z[:, :w_cont], 0.0).astype(
                h_out_ref.dtype)
        if has_fin:
            zf = z[:, w_cont:w_cont + w_fin]
            y_out_ref[...] = y_in_ref[...] + g_ref[...] * zf


def gcn_depth_step(t_cat, adj_p, bias_cat, w_cont, w_fin,
                   gate_col=None, y_accum=None, *, tm, tk,
                   vmem_limit_bytes=48 * 1024 * 1024):
    """One shared A_hat pass for all live experts at this depth."""
    n_pad = adj_p.shape[0]
    w_tot = t_cat.shape[1]
    assert w_tot == w_cont + w_fin
    assert n_pad % tm == 0 and n_pad % tk == 0
    grid = (n_pad // tm, n_pad // tk)

    in_specs = [
        pl.BlockSpec((tk, w_tot), lambda i, k: (k, 0)),     # T_cat
        pl.BlockSpec((tm, tk), lambda i, k: (i, k)),        # A_hat (streamed once)
        pl.BlockSpec((1, w_tot), lambda i, k: (0, 0)),      # bias_cat
    ]
    args = [t_cat, adj_p, bias_cat]
    out_shapes = []
    out_specs = []
    aliases = {}

    if w_fin > 0:
        in_specs.append(pl.BlockSpec((tm, 1), lambda i, k: (i, 0)))       # gate
        in_specs.append(pl.BlockSpec((tm, w_fin), lambda i, k: (i, 0)))   # y_in
        args += [gate_col, y_accum]
    if w_cont > 0:
        out_shapes.append(jax.ShapeDtypeStruct((n_pad, w_cont), jnp.bfloat16))
        out_specs.append(pl.BlockSpec((tm, w_cont), lambda i, k: (i, 0)))
    if w_fin > 0:
        out_shapes.append(jax.ShapeDtypeStruct((n_pad, w_fin), jnp.float32))
        out_specs.append(pl.BlockSpec((tm, w_fin), lambda i, k: (i, 0)))
        aliases[4] = len(out_shapes) - 1   # y_accum input <-> y output buffer

    outs = pl.pallas_call(
        functools.partial(_depth_kernel, w_cont=w_cont, w_fin=w_fin),
        out_shape=tuple(out_shapes),
        grid_spec=pltpu.PrefetchScalarGridSpec(
            num_scalar_prefetch=0,
            grid=grid,
            in_specs=in_specs,
            out_specs=tuple(out_specs),
            scratch_shapes=[pltpu.VMEM((tm, w_tot), jnp.float32)]),
        input_output_aliases=aliases,
        compiler_params=pltpu.CompilerParams(
            dimension_semantics=("parallel", "arbitrary"),
            vmem_limit_bytes=vmem_limit_bytes),
    )(*args)

    h_next = None
    y_out = None
    idx = 0
    if w_cont > 0:
        h_next = outs[idx]
        idx += 1
    if w_fin > 0:
        y_out = outs[idx]
    return h_next, y_out


# ----------------------------------------------------------------------------
# MoE_OGB forward (orchestration in plain JAX, hot path in Pallas)
# ----------------------------------------------------------------------------
def moe_ogb_forward(x, adj, w_gate, expert_params, k_top, loss_coef):
    n, _ = x.shape
    num_experts = len(expert_params)
    out_size = expert_params[0][-1][0].shape[1]
    depths = [len(layers) for layers in expert_params]
    max_depth = max(depths)

    # --- noisy_top_k_gating (eval path: logits = clean_logits) ---------------
    # Lane-sparse (num_experts wide) -> plain XLA, not a Pallas launch.
    logits = x.astype(jnp.float32) @ w_gate.astype(jnp.float32)          # (N, E)
    top_vals, top_idx = jax.lax.top_k(logits, min(k_top + 1, num_experts))
    top_k_gates = jax.nn.softmax(top_vals[:, :k_top], axis=1)
    gates = jnp.zeros_like(logits).at[
        jnp.arange(n)[:, None], top_idx[:, :k_top]].set(top_k_gates)
    load = (gates > 0).sum(axis=0)
    importance = gates.sum(axis=0)
    loss = (cv_squared(importance) + cv_squared(load)) * loss_coef

    # --- pad the node dimension to tile multiples (zero rows/cols are inert) --
    n_pad, tm, tk = _choose_padding_and_tiles(n)
    pad_n = n_pad - n
    adj_p = jnp.pad(adj, ((0, pad_n), (0, pad_n))).astype(jnp.bfloat16)
    x_p = jnp.pad(x, ((0, pad_n), (0, 0))).astype(jnp.bfloat16)
    gates_p = jnp.pad(gates, ((0, pad_n), (0, 0)))

    # --- experts, batched by depth: one A_hat pass per depth ------------------
    h = [x_p for _ in range(num_experts)]
    y = jnp.zeros((n_pad, out_size), jnp.float32)

    for d in range(max_depth):
        live = [e for e in range(num_experts) if depths[e] > d]
        fin = [e for e in live if depths[e] == d + 1]
        cont = [e for e in live if depths[e] > d + 1]
        assert len(fin) <= 1       # expert depths are min_layers + e (distinct)
        order = cont + fin         # continuing segments first, finisher last

        # T_e = H_e @ W_e : tiny lane-dense GEMMs -> plain XLA (review item #1);
        # negligible vs the N^2 adjacency stream, f32 accumulation, bf16 out.
        t_list, b_list, widths = [], [], []
        for e in order:
            W, b = expert_params[e][d]
            t = jnp.dot(h[e], W.astype(jnp.bfloat16),
                        preferred_element_type=jnp.float32).astype(jnp.bfloat16)
            t_list.append(t)
            b_list.append(b.reshape(1, -1).astype(jnp.float32))
            widths.append(W.shape[1])
        t_cat = t_list[0] if len(t_list) == 1 else jnp.concatenate(t_list, axis=1)
        b_cat = b_list[0] if len(b_list) == 1 else jnp.concatenate(b_list, axis=1)
        w_cont = sum(widths[:len(cont)])
        w_fin = widths[len(cont)] if fin else 0
        gate_col = gates_p[:, fin[0]:fin[0] + 1] if fin else None

        h_next_cat, y_new = gcn_depth_step(
            t_cat, adj_p, b_cat, w_cont, w_fin,
            gate_col=gate_col, y_accum=(y if fin else None), tm=tm, tk=tk)

        if fin:
            y = y_new
        off = 0
        for idx_e, e in enumerate(cont):
            w_e = widths[idx_e]
            h[e] = h_next_cat[:, off:off + w_e]
            off += w_e

    return y[:n], loss


# ----------------------------------------------------------------------------
# Pure-JAX f32 reference (correctness check of the Pallas path)
# ----------------------------------------------------------------------------
def reference_forward(x, adj, w_gate, expert_params, k_top, loss_coef):
    n = x.shape[0]
    num_experts = len(expert_params)
    logits = x @ w_gate
    top_vals, top_idx = jax.lax.top_k(logits, min(k_top + 1, num_experts))
    top_k_gates = jax.nn.softmax(top_vals[:, :k_top], axis=1)
    gates = jnp.zeros_like(logits).at[
        jnp.arange(n)[:, None], top_idx[:, :k_top]].set(top_k_gates)
    load = (gates > 0).sum(axis=0)
    importance = gates.sum(axis=0)
    loss = (cv_squared(importance) + cv_squared(load)) * loss_coef

    outs = []
    for layers in expert_params:
        h = x
        L = len(layers)
        for l, (W, b) in enumerate(layers):
            h = adj @ (h @ W) + b
            if l < L - 1:
                h = jnp.maximum(h, 0.0)
        outs.append(h)
    stack = jnp.stack(outs, axis=1)                         # (N, E, D)
    y = (gates[:, :, None] * stack).sum(axis=1)
    return y, loss


# ----------------------------------------------------------------------------
if __name__ == "__main__":
    # Small shapes; N_NODES deliberately NOT a multiple of 128 to exercise the
    # padding path (pads to 256 -> 2 row blocks -> both v7x cores get work).
    N_NODES = 200
    INPUT_SIZE = 128
    HIDDEN_SIZE = 128
    OUT_SIZE = 128
    NUM_EXPERTS = 4
    K_TOP = 2
    MIN_LAYERS = 1
    LOSS_COEF = 0.001

    key = jax.random.PRNGKey(0)
    keys = jax.random.split(key, 4 + NUM_EXPERTS)

    # Node features.
    x = jax.random.normal(keys[0], (N_NODES, INPUT_SIZE), jnp.float32)

    # Deterministic random graph -> dense GCN-normalized adjacency.
    a = (jax.random.uniform(keys[1], (N_NODES, N_NODES)) < 0.05).astype(jnp.float32)
    a = jnp.minimum(jnp.maximum(a, a.T) + jnp.eye(N_NODES, dtype=jnp.float32), 1.0)
    d_inv_sqrt = 1.0 / jnp.sqrt(a.sum(axis=1))
    adj = a * d_inv_sqrt[:, None] * d_inv_sqrt[None, :]

    # Gate weight (zeros in the PyTorch __init__; random here so gating is
    # non-degenerate in the synthetic test).
    w_gate = 0.1 * jax.random.normal(keys[2], (INPUT_SIZE, NUM_EXPERTS), jnp.float32)

    # Expert i has (MIN_LAYERS + i) GCN layers; biases zero-initialized
    # (GCNConv default), weights glorot-style.
    expert_params = []
    for i in range(NUM_EXPERTS):
        L = MIN_LAYERS + i
        if L == 1:
            dims = [INPUT_SIZE, OUT_SIZE]
        else:
            dims = [INPUT_SIZE] + [HIDDEN_SIZE] * (L - 1) + [OUT_SIZE]
        layer_keys = jax.random.split(keys[4 + i], L)
        layers = []
        for l in range(L):
            fan_in, fan_out = dims[l], dims[l + 1]
            scale = jnp.sqrt(2.0 / (fan_in + fan_out))
            W = scale * jax.random.normal(layer_keys[l], (fan_in, fan_out), jnp.float32)
            b = jnp.zeros((1, fan_out), jnp.float32)
            layers.append((W, b))
        expert_params.append(layers)

    # Pallas path (jitted so gating fuses and the aliased y buffer reuses cleanly).
    forward = jax.jit(functools.partial(moe_ogb_forward,
                                        k_top=K_TOP, loss_coef=LOSS_COEF))
    y, loss = forward(x, adj, w_gate, expert_params)
    y = jax.block_until_ready(y)
    loss = jax.block_until_ready(loss)

    # Sanity check against pure-f32 JAX reference (loose tolerance because the
    # Pallas path uses bf16 MXU operands / bf16 intermediate activations).
    y_ref, loss_ref = reference_forward(x, adj, w_gate, expert_params,
                                        K_TOP, LOSS_COEF)
    assert y.shape == (N_NODES, OUT_SIZE)
    assert jnp.allclose(y, y_ref, atol=5e-2, rtol=5e-2), "output mismatch"
    assert jnp.allclose(loss, loss_ref, atol=1e-6, rtol=1e-5), "loss mismatch"

    print("KERNEL_OK")
</pallas_src>

<mosaic_0001>
module attributes {stable_mosaic.version = 11 : i64} {
  func.func @_depth_kernel(%arg0: i32, %arg1: i32, %arg2: memref<256x512xbf16, #tpu.memory_space<vmem>>, %arg3: memref<128x256xbf16, #tpu.memory_space<vmem>>, %arg4: memref<1x512xf32, #tpu.memory_space<vmem>>, %arg5: memref<128x1xf32, #tpu.memory_space<vmem>>, %arg6: memref<128x128xf32, #tpu.memory_space<vmem>>, %arg7: memref<128x384xbf16, #tpu.memory_space<vmem>>, %arg8: memref<128x128xf32, #tpu.memory_space<vmem>>, %arg9: memref<128x512xf32, #tpu.memory_space<vmem>>) attributes {dimension_semantics = [#tpu.dimension_semantics<parallel>, #tpu.dimension_semantics<arbitrary>], iteration_bounds = array<i64: 2, 1>, scalar_prefetch = 0 : i64, scratch_operands = 1 : i64, tpu.core_type = #tpu.core_type<tc>, window_params = [{transform_indices = @transform_0, window_bounds = array<i64: 256, 512>}, {transform_indices = @transform_1, window_bounds = array<i64: 128, 256>}, {pipeline_mode = #tpu.pipeline_mode<synchronous>, transform_indices = @transform_2, window_bounds = array<i64: 1, 512>}, {transform_indices = @transform_3, window_bounds = array<i64: 128, 1>}, {transform_indices = @transform_4, window_bounds = array<i64: 128, 128>}, {transform_indices = @transform_5, window_bounds = array<i64: 128, 384>}, {transform_indices = @transform_6, window_bounds = array<i64: 128, 128>}]} {
    %c0_i32 = arith.constant 0 : i32
    %0 = arith.cmpi eq, %arg1, %c0_i32 : i32
    %1 = arith.extui %0 : i1 to i32
    %c0_i32_0 = arith.constant 0 : i32
    %2 = arith.cmpi ne, %1, %c0_i32_0 : i32
    scf.if %2 {
      %cst_10 = arith.constant 0.000000e+00 : f32
      %12 = vector.broadcast %cst_10 : f32 to vector<128x512xf32>
      %c0_11 = arith.constant 0 : index
      %c0_12 = arith.constant 0 : index
      %13 = vector.load %arg9[%c0_11, %c0_12] : memref<128x512xf32, #tpu.memory_space<vmem>>, vector<128x512xf32>
      tpu.vector_store %arg9[%c0_11, %c0_12], %12 {strides = array<i32>} : memref<128x512xf32, #tpu.memory_space<vmem>>, vector<128x512xf32>,
    } else {
    }
    %c0 = arith.constant 0 : index
    %c0_1 = arith.constant 0 : index
    %3 = vector.load %arg9[%c0, %c0_1] : memref<128x512xf32, #tpu.memory_space<vmem>>, vector<128x512xf32>
    %c0_2 = arith.constant 0 : index
    %c0_3 = arith.constant 0 : index
    %4 = vector.load %arg3[%c0_2, %c0_3] : memref<128x256xbf16, #tpu.memory_space<vmem>>, vector<128x256xbf16>
    %c0_4 = arith.constant 0 : index
    %c0_5 = arith.constant 0 : index
    %5 = vector.load %arg2[%c0_4, %c0_5] : memref<256x512xbf16, #tpu.memory_space<vmem>>, vector<256x512xbf16>
    %cst = arith.constant dense<0.000000e+00> : vector<128x512xf32>
    %6 = tpu.matmul %4, %5, %cst {dimension_numbers = #tpu.dot_dimension_numbers<[1], [0], [0], [1], [0, 0, 1, 1], [], []>} : vector<128x256xbf16>, vector<256x512xbf16>, vector<128x512xf32> -> vector<128x512xf32>
    %7 = arith.addf %3, %6 : vector<128x512xf32>
    %c0_6 = arith.constant 0 : index
    %c0_7 = arith.constant 0 : index
    %8 = vector.load %arg9[%c0_6, %c0_7] : memref<128x512xf32, #tpu.memory_space<vmem>>, vector<128x512xf32>
    tpu.vector_store %arg9[%c0_6, %c0_7], %7 {strides = array<i32>} : memref<128x512xf32, #tpu.memory_space<vmem>>, vector<128x512xf32>,
    %c0_i32_8 = arith.constant 0 : i32
    %9 = arith.cmpi eq, %arg1, %c0_i32_8 : i32
    %10 = arith.extui %9 : i1 to i32
    %c0_i32_9 = arith.constant 0 : i32
    %11 = arith.cmpi ne, %10, %c0_i32_9 : i32
    scf.if %11 {
      %c0_10 = arith.constant 0 : index
      %c0_11 = arith.constant 0 : index
      %12 = vector.load %arg9[%c0_10, %c0_11] : memref<128x512xf32, #tpu.memory_space<vmem>>, vector<128x512xf32>
      %c0_12 = arith.constant 0 : index
      %c0_13 = arith.constant 0 : index
      %13 = vector.load %arg4[%c0_12, %c0_13] : memref<1x512xf32, #tpu.memory_space<vmem>>, vector<1x512xf32>
      %14 = vector.broadcast %13 : vector<1x512xf32> to vector<128x512xf32>
      %15 = arith.addf %12, %14 : vector<128x512xf32>
      %16 = vector.extract_strided_slice %15 {offsets = [0, 0], sizes = [128, 384], strides = [1, 1]} : vector<128x512xf32> to vector<128x384xf32>
      %cst_14 = arith.constant 0.000000e+00 : f32
      %17 = vector.broadcast %cst_14 : f32 to vector<128x384xf32>
      %18 = arith.maximumf %16, %17 : vector<128x384xf32>
      %19 = arith.truncf %18 : vector<128x384xf32> to vector<128x384xbf16>
      %c0_15 = arith.constant 0 : index
      %c0_16 = arith.constant 0 : index
      %20 = vector.load %arg7[%c0_15, %c0_16] : memref<128x384xbf16, #tpu.memory_space<vmem>>, vector<128x384xbf16>
      tpu.vector_store %arg7[%c0_15, %c0_16], %19 {strides = array<i32>} : memref<128x384xbf16, #tpu.memory_space<vmem>>, vector<128x384xbf16>,
      %21 = vector.extract_strided_slice %15 {offsets = [0, 384], sizes = [128, 128], strides = [1, 1]} : vector<128x512xf32> to vector<128x128xf32>
      %c0_17 = arith.constant 0 : index
      %c0_18 = arith.constant 0 : index
      %22 = vector.load %arg6[%c0_17, %c0_18] : memref<128x128xf32, #tpu.memory_space<vmem>>, vector<128x128xf32>
      %c0_19 = arith.constant 0 : index
      %c0_20 = arith.constant 0 : index
      %23 = vector.load %arg5[%c0_19, %c0_20] : memref<128x1xf32, #tpu.memory_space<vmem>>, vector<128x1xf32>
      %24 = vector.broadcast %23 : vector<128x1xf32> to vector<128x128xf32>
      %25 = arith.mulf %24, %21 : vector<128x128xf32>
      %26 = arith.addf %22, %25 : vector<128x128xf32>
      %c0_21 = arith.constant 0 : index
      %c0_22 = arith.constant 0 : index
      %27 = vector.load %arg8[%c0_21, %c0_22] : memref<128x128xf32, #tpu.memory_space<vmem>>, vector<128x128xf32>
      tpu.vector_store %arg8[%c0_21, %c0_22], %26 {strides = array<i32>} : memref<128x128xf32, #tpu.memory_space<vmem>>, vector<128x128xf32>,
    } else {
    }
    return
  }
  func.func @transform_0(%arg0: i32, %arg1: i32) -> (i32, i32) {
    %c0_i32 = arith.constant 0 : i32
    %c0_i32_0 = arith.constant 0 : i32
    return %arg1, %c0_i32 : i32, i32
  }
  func.func @transform_1(%arg0: i32, %arg1: i32) -> (i32, i32) {
    %c0_i32 = arith.constant 0 : i32
    return %arg0, %arg1 : i32, i32
  }
  func.func @transform_2(%arg0: i32, %arg1: i32) -> (i32, i32) {
    %c0_i32 = arith.constant 0 : i32
    %c0_i32_0 = arith.constant 0 : i32
    %c0_i32_1 = arith.constant 0 : i32
    return %c0_i32, %c0_i32_0 : i32, i32
  }
  func.func @transform_3(%arg0: i32, %arg1: i32) -> (i32, i32) {
    %c0_i32 = arith.constant 0 : i32
    %c0_i32_0 = arith.constant 0 : i32
    return %arg0, %c0_i32 : i32, i32
  }
  func.func @transform_4(%arg0: i32, %arg1: i32) -> (i32, i32) {
    %c0_i32 = arith.constant 0 : i32
    %c0_i32_0 = arith.constant 0 : i32
    return %arg0, %c0_i32 : i32, i32
  }
  func.func @transform_5(%arg0: i32, %arg1: i32) -> (i32, i32) {
    %c0_i32 = arith.constant 0 : i32
    %c0_i32_0 = arith.constant 0 : i32
    return %arg0, %c0_i32 : i32, i32
  }
  func.func @transform_6(%arg0: i32, %arg1: i32) -> (i32, i32) {
    %c0_i32 = arith.constant 0 : i32
    %c0_i32_0 = arith.constant 0 : i32
    return %arg0, %c0_i32 : i32, i32
  }
}

module attributes {stable_mosaic.version = 11 : i64} {
  func.func @_depth_kernel(%arg0: i32, %arg1: i32, %arg2: memref<256x384xbf16, #tpu.memory_space<vmem>>, %arg3: memref<128x256xbf16, #tpu.memory_space<vmem>>, %arg4: memref<1x384xf32, #tpu.memory_space<vmem>>, %arg5: memref<128x1xf32, #tpu.memory_space<vmem>>, %arg6: memref<128x128xf32, #tpu.memory_space<vmem>>, %arg7: memref<128x256xbf16, #tpu.memory_space<vmem>>, %arg8: memref<128x128xf32, #tpu.memory_space<vmem>>, %arg9: memref<128x384xf32, #tpu.memory_space<vmem>>) attributes {dimension_semantics = [#tpu.dimension_semantics<parallel>, #tpu.dimension_semantics<arbitrary>], iteration_bounds = array<i64: 2, 1>, scalar_prefetch = 0 : i64, scratch_operands = 1 : i64, tpu.core_type = #tpu.core_type<tc>, window_params = [{transform_indices = @transform_0, window_bounds = array<i64: 256, 384>}, {transform_indices = @transform_1, window_bounds = array<i64: 128, 256>}, {pipeline_mode = #tpu.pipeline_mode<synchronous>, transform_indices = @transform_2, window_bounds = array<i64: 1, 384>}, {transform_indices = @transform_3, window_bounds = array<i64: 128, 1>}, {transform_indices = @transform_4, window_bounds = array<i64: 128, 128>}, {transform_indices = @transform_5, window_bounds = array<i64: 128, 256>}, {transform_indices = @transform_6, window_bounds = array<i64: 128, 128>}]} {
    %c0_i32 = arith.constant 0 : i32
    %0 = arith.cmpi eq, %arg1, %c0_i32 : i32
    %1 = arith.extui %0 : i1 to i32
    %c0_i32_0 = arith.constant 0 : i32
    %2 = arith.cmpi ne, %1, %c0_i32_0 : i32
    scf.if %2 {
      %cst_10 = arith.constant 0.000000e+00 : f32
      %12 = vector.broadcast %cst_10 : f32 to vector<128x384xf32>
      %c0_11 = arith.constant 0 : index
      %c0_12 = arith.constant 0 : index
      %13 = vector.load %arg9[%c0_11, %c0_12] : memref<128x384xf32, #tpu.memory_space<vmem>>, vector<128x384xf32>
      tpu.vector_store %arg9[%c0_11, %c0_12], %12 {strides = array<i32>} : memref<128x384xf32, #tpu.memory_space<vmem>>, vector<128x384xf32>,
    } else {
    }
    %c0 = arith.constant 0 : index
    %c0_1 = arith.constant 0 : index
    %3 = vector.load %arg9[%c0, %c0_1] : memref<128x384xf32, #tpu.memory_space<vmem>>, vector<128x384xf32>
    %c0_2 = arith.constant 0 : index
    %c0_3 = arith.constant 0 : index
    %4 = vector.load %arg3[%c0_2, %c0_3] : memref<128x256xbf16, #tpu.memory_space<vmem>>, vector<128x256xbf16>
    %c0_4 = arith.constant 0 : index
    %c0_5 = arith.constant 0 : index
    %5 = vector.load %arg2[%c0_4, %c0_5] : memref<256x384xbf16, #tpu.memory_space<vmem>>, vector<256x384xbf16>
    %cst = arith.constant dense<0.000000e+00> : vector<128x384xf32>
    %6 = tpu.matmul %4, %5, %cst {dimension_numbers = #tpu.dot_dimension_numbers<[1], [0], [0], [1], [0, 0, 1, 1], [], []>} : vector<128x256xbf16>, vector<256x384xbf16>, vector<128x384xf32> -> vector<128x384xf32>
    %7 = arith.addf %3, %6 : vector<128x384xf32>
    %c0_6 = arith.constant 0 : index
    %c0_7 = arith.constant 0 : index
    %8 = vector.load %arg9[%c0_6, %c0_7] : memref<128x384xf32, #tpu.memory_space<vmem>>, vector<128x384xf32>
    tpu.vector_store %arg9[%c0_6, %c0_7], %7 {strides = array<i32>} : memref<128x384xf32, #tpu.memory_space<vmem>>, vector<128x384xf32>,
    %c0_i32_8 = arith.constant 0 : i32
    %9 = arith.cmpi eq, %arg1, %c0_i32_8 : i32
    %10 = arith.extui %9 : i1 to i32
    %c0_i32_9 = arith.constant 0 : i32
    %11 = arith.cmpi ne, %10, %c0_i32_9 : i32
    scf.if %11 {
      %c0_10 = arith.constant 0 : index
      %c0_11 = arith.constant 0 : index
      %12 = vector.load %arg9[%c0_10, %c0_11] : memref<128x384xf32, #tpu.memory_space<vmem>>, vector<128x384xf32>
      %c0_12 = arith.constant 0 : index
      %c0_13 = arith.constant 0 : index
      %13 = vector.load %arg4[%c0_12, %c0_13] : memref<1x384xf32, #tpu.memory_space<vmem>>, vector<1x384xf32>
      %14 = vector.broadcast %13 : vector<1x384xf32> to vector<128x384xf32>
      %15 = arith.addf %12, %14 : vector<128x384xf32>
      %16 = vector.extract_strided_slice %15 {offsets = [0, 0], sizes = [128, 256], strides = [1, 1]} : vector<128x384xf32> to vector<128x256xf32>
      %cst_14 = arith.constant 0.000000e+00 : f32
      %17 = vector.broadcast %cst_14 : f32 to vector<128x256xf32>
      %18 = arith.maximumf %16, %17 : vector<128x256xf32>
      %19 = arith.truncf %18 : vector<128x256xf32> to vector<128x256xbf16>
      %c0_15 = arith.constant 0 : index
      %c0_16 = arith.constant 0 : index
      %20 = vector.load %arg7[%c0_15, %c0_16] : memref<128x256xbf16, #tpu.memory_space<vmem>>, vector<128x256xbf16>
      tpu.vector_store %arg7[%c0_15, %c0_16], %19 {strides = array<i32>} : memref<128x256xbf16, #tpu.memory_space<vmem>>, vector<128x256xbf16>,
      %21 = vector.extract_strided_slice %15 {offsets = [0, 256], sizes = [128, 128], strides = [1, 1]} : vector<128x384xf32> to vector<128x128xf32>
      %c0_17 = arith.constant 0 : index
      %c0_18 = arith.constant 0 : index
      %22 = vector.load %arg6[%c0_17, %c0_18] : memref<128x128xf32, #tpu.memory_space<vmem>>, vector<128x128xf32>
      %c0_19 = arith.constant 0 : index
      %c0_20 = arith.constant 0 : index
      %23 = vector.load %arg5[%c0_19, %c0_20] : memref<128x1xf32, #tpu.memory_space<vmem>>, vector<128x1xf32>
      %24 = vector.broadcast %23 : vector<128x1xf32> to vector<128x128xf32>
      %25 = arith.mulf %24, %21 : vector<128x128xf32>
      %26 = arith.addf %22, %25 : vector<128x128xf32>
      %c0_21 = arith.constant 0 : index
      %c0_22 = arith.constant 0 : index
      %27 = vector.load %arg8[%c0_21, %c0_22] : memref<128x128xf32, #tpu.memory_space<vmem>>, vector<128x128xf32>
      tpu.vector_store %arg8[%c0_21, %c0_22], %26 {strides = array<i32>} : memref<128x128xf32, #tpu.memory_space<vmem>>, vector<128x128xf32>,
    } else {
    }
    return
  }
  func.func @transform_0(%arg0: i32, %arg1: i32) -> (i32, i32) {
    %c0_i32 = arith.constant 0 : i32
    %c0_i32_0 = arith.constant 0 : i32
    return %arg1, %c0_i32 : i32, i32
  }
  func.func @transform_1(%arg0: i32, %arg1: i32) -> (i32, i32) {
    %c0_i32 = arith.constant 0 : i32
    return %arg0, %arg1 : i32, i32
  }
  func.func @transform_2(%arg0: i32, %arg1: i32) -> (i32, i32) {
    %c0_i32 = arith.constant 0 : i32
    %c0_i32_0 = arith.constant 0 : i32
    %c0_i32_1 = arith.constant 0 : i32
    return %c0_i32, %c0_i32_0 : i32, i32
  }
  func.func @transform_3(%arg0: i32, %arg1: i32) -> (i32, i32) {
    %c0_i32 = arith.constant 0 : i32
    %c0_i32_0 = arith.constant 0 : i32
    return %arg0, %c0_i32 : i32, i32
  }
  func.func @transform_4(%arg0: i32, %arg1: i32) -> (i32, i32) {
    %c0_i32 = arith.constant 0 : i32
    %c0_i32_0 = arith.constant 0 : i32
    return %arg0, %c0_i32 : i32, i32
  }
  func.func @transform_5(%arg0: i32, %arg1: i32) -> (i32, i32) {
    %c0_i32 = arith.constant 0 : i32
    %c0_i32_0 = arith.constant 0 : i32
    return %arg0, %c0_i32 : i32, i32
  }
  func.func @transform_6(%arg0: i32, %arg1: i32) -> (i32, i32) {
    %c0_i32 = arith.constant 0 : i32
    %c0_i32_0 = arith.constant 0 : i32
    return %arg0, %c0_i32 : i32, i32
  }
}

module attributes {stable_mosaic.version = 11 : i64} {
  func.func @_depth_kernel(%arg0: i32, %arg1: i32, %arg2: memref<256x128xbf16, #tpu.memory_space<vmem>>, %arg3: memref<128x256xbf16, #tpu.memory_space<vmem>>, %arg4: memref<1x128xf32, #tpu.memory_space<vmem>>, %arg5: memref<128x1xf32, #tpu.memory_space<vmem>>, %arg6: memref<128x128xf32, #tpu.memory_space<vmem>>, %arg7: memref<128x128xf32, #tpu.memory_space<vmem>>, %arg8: memref<128x128xf32, #tpu.memory_space<vmem>>) attributes {dimension_semantics = [#tpu.dimension_semantics<parallel>, #tpu.dimension_semantics<arbitrary>], iteration_bounds = array<i64: 2, 1>, scalar_prefetch = 0 : i64, scratch_operands = 1 : i64, tpu.core_type = #tpu.core_type<tc>, window_params = [{transform_indices = @transform_0, window_bounds = array<i64: 256, 128>}, {transform_indices = @transform_1, window_bounds = array<i64: 128, 256>}, {pipeline_mode = #tpu.pipeline_mode<synchronous>, transform_indices = @transform_2, window_bounds = array<i64: 1, 128>}, {transform_indices = @transform_3, window_bounds = array<i64: 128, 1>}, {transform_indices = @transform_4, window_bounds = array<i64: 128, 128>}, {transform_indices = @transform_5, window_bounds = array<i64: 128, 128>}]} {
    %c0_i32 = arith.constant 0 : i32
    %0 = arith.cmpi eq, %arg1, %c0_i32 : i32
    %1 = arith.extui %0 : i1 to i32
    %c0_i32_0 = arith.constant 0 : i32
    %2 = arith.cmpi ne, %1, %c0_i32_0 : i32
    scf.if %2 {
      %cst_10 = arith.constant 0.000000e+00 : f32
      %12 = vector.broadcast %cst_10 : f32 to vector<128x128xf32>
      %c0_11 = arith.constant 0 : index
      %c0_12 = arith.constant 0 : index
      %13 = vector.load %arg8[%c0_11, %c0_12] : memref<128x128xf32, #tpu.memory_space<vmem>>, vector<128x128xf32>
      tpu.vector_store %arg8[%c0_11, %c0_12], %12 {strides = array<i32>} : memref<128x128xf32, #tpu.memory_space<vmem>>, vector<128x128xf32>,
    } else {
    }
    %c0 = arith.constant 0 : index
    %c0_1 = arith.constant 0 : index
    %3 = vector.load %arg8[%c0, %c0_1] : memref<128x128xf32, #tpu.memory_space<vmem>>, vector<128x128xf32>
    %c0_2 = arith.constant 0 : index
    %c0_3 = arith.constant 0 : index
    %4 = vector.load %arg3[%c0_2, %c0_3] : memref<128x256xbf16, #tpu.memory_space<vmem>>, vector<128x256xbf16>
    %c0_4 = arith.constant 0 : index
    %c0_5 = arith.constant 0 : index
    %5 = vector.load %arg2[%c0_4, %c0_5] : memref<256x128xbf16, #tpu.memory_space<vmem>>, vector<256x128xbf16>
    %cst = arith.constant dense<0.000000e+00> : vector<128x128xf32>
    %6 = tpu.matmul %4, %5, %cst {dimension_numbers = #tpu.dot_dimension_numbers<[1], [0], [0], [1], [0, 0, 1, 1], [], []>} : vector<128x256xbf16>, vector<256x128xbf16>, vector<128x128xf32> -> vector<128x128xf32>
    %7 = arith.addf %3, %6 : vector<128x128xf32>
    %c0_6 = arith.constant 0 : index
    %c0_7 = arith.constant 0 : index
    %8 = vector.load %arg8[%c0_6, %c0_7] : memref<128x128xf32, #tpu.memory_space<vmem>>, vector<128x128xf32>
    tpu.vector_store %arg8[%c0_6, %c0_7], %7 {strides = array<i32>} : memref<128x128xf32, #tpu.memory_space<vmem>>, vector<128x128xf32>,
    %c0_i32_8 = arith.constant 0 : i32
    %9 = arith.cmpi eq, %arg1, %c0_i32_8 : i32
    %10 = arith.extui %9 : i1 to i32
    %c0_i32_9 = arith.constant 0 : i32
    %11 = arith.cmpi ne, %10, %c0_i32_9 : i32
    scf.if %11 {
      %c0_10 = arith.constant 0 : index
      %c0_11 = arith.constant 0 : index
      %12 = vector.load %arg8[%c0_10, %c0_11] : memref<128x128xf32, #tpu.memory_space<vmem>>, vector<128x128xf32>
      %c0_12 = arith.constant 0 : index
      %c0_13 = arith.constant 0 : index
      %13 = vector.load %arg4[%c0_12, %c0_13] : memref<1x128xf32, #tpu.memory_space<vmem>>, vector<1x128xf32>
      %14 = vector.broadcast %13 : vector<1x128xf32> to vector<128x128xf32>
      %15 = arith.addf %12, %14 : vector<128x128xf32>
      %c0_14 = arith.constant 0 : index
      %c0_15 = arith.constant 0 : index
      %16 = vector.load %arg6[%c0_14, %c0_15] : memref<128x128xf32, #tpu.memory_space<vmem>>, vector<128x128xf32>
      %c0_16 = arith.constant 0 : index
      %c0_17 = arith.constant 0 : index
      %17 = vector.load %arg5[%c0_16, %c0_17] : memref<128x1xf32, #tpu.memory_space<vmem>>, vector<128x1xf32>
      %18 = vector.broadcast %17 : vector<128x1xf32> to vector<128x128xf32>
      %19 = arith.mulf %18, %15 : vector<128x128xf32>
      %20 = arith.addf %16, %19 : vector<128x128xf32>
      %c0_18 = arith.constant 0 : index
      %c0_19 = arith.constant 0 : index
      %21 = vector.load %arg7[%c0_18, %c0_19] : memref<128x128xf32, #tpu.memory_space<vmem>>, vector<128x128xf32>
      tpu.vector_store %arg7[%c0_18, %c0_19], %20 {strides = array<i32>} : memref<128x128xf32, #tpu.memory_space<vmem>>, vector<128x128xf32>,
    } else {
    }
    return
  }
  func.func @transform_0(%arg0: i32, %arg1: i32) -> (i32, i32) {
    %c0_i32 = arith.constant 0 : i32
    %c0_i32_0 = arith.constant 0 : i32
    return %arg1, %c0_i32 : i32, i32
  }
  func.func @transform_1(%arg0: i32, %arg1: i32) -> (i32, i32) {
    %c0_i32 = arith.constant 0 : i32
    return %arg0, %arg1 : i32, i32
  }
  func.func @transform_2(%arg0: i32, %arg1: i32) -> (i32, i32) {
    %c0_i32 = arith.constant 0 : i32
    %c0_i32_0 = arith.constant 0 : i32
    %c0_i32_1 = arith.constant 0 : i32
    return %c0_i32, %c0_i32_0 : i32, i32
  }
  func.func @transform_3(%arg0: i32, %arg1: i32) -> (i32, i32) {
    %c0_i32 = arith.constant 0 : i32
    %c0_i32_0 = arith.constant 0 : i32
    return %arg0, %c0_i32 : i32, i32
  }
  func.func @transform_4(%arg0: i32, %arg1: i32) -> (i32, i32) {
    %c0_i32 = arith.constant 0 : i32
    %c0_i32_0 = arith.constant 0 : i32
    return %arg0, %c0_i32 : i32, i32
  }
  func.func @transform_5(%arg0: i32, %arg1: i32) -> (i32, i32) {
    %c0_i32 = arith.constant 0 : i32
    %c0_i32_0 = arith.constant 0 : i32
    return %arg0, %c0_i32 : i32, i32
  }
}

module attributes {stable_mosaic.version = 11 : i64} {
  func.func @_depth_kernel(%arg0: i32, %arg1: i32, %arg2: memref<256x256xbf16, #tpu.memory_space<vmem>>, %arg3: memref<128x256xbf16, #tpu.memory_space<vmem>>, %arg4: memref<1x256xf32, #tpu.memory_space<vmem>>, %arg5: memref<128x1xf32, #tpu.memory_space<vmem>>, %arg6: memref<128x128xf32, #tpu.memory_space<vmem>>, %arg7: memref<128x128xbf16, #tpu.memory_space<vmem>>, %arg8: memref<128x128xf32, #tpu.memory_space<vmem>>, %arg9: memref<128x256xf32, #tpu.memory_space<vmem>>) attributes {dimension_semantics = [#tpu.dimension_semantics<parallel>, #tpu.dimension_semantics<arbitrary>], iteration_bounds = array<i64: 2, 1>, scalar_prefetch = 0 : i64, scratch_operands = 1 : i64, tpu.core_type = #tpu.core_type<tc>, window_params = [{transform_indices = @transform_0, window_bounds = array<i64: 256, 256>}, {transform_indices = @transform_1, window_bounds = array<i64: 128, 256>}, {pipeline_mode = #tpu.pipeline_mode<synchronous>, transform_indices = @transform_2, window_bounds = array<i64: 1, 256>}, {transform_indices = @transform_3, window_bounds = array<i64: 128, 1>}, {transform_indices = @transform_4, window_bounds = array<i64: 128, 128>}, {transform_indices = @transform_5, window_bounds = array<i64: 128, 128>}, {transform_indices = @transform_6, window_bounds = array<i64: 128, 128>}]} {
    %c0_i32 = arith.constant 0 : i32
    %0 = arith.cmpi eq, %arg1, %c0_i32 : i32
    %1 = arith.extui %0 : i1 to i32
    %c0_i32_0 = arith.constant 0 : i32
    %2 = arith.cmpi ne, %1, %c0_i32_0 : i32
    scf.if %2 {
      %cst_10 = arith.constant 0.000000e+00 : f32
      %12 = vector.broadcast %cst_10 : f32 to vector<128x256xf32>
      %c0_11 = arith.constant 0 : index
      %c0_12 = arith.constant 0 : index
      %13 = vector.load %arg9[%c0_11, %c0_12] : memref<128x256xf32, #tpu.memory_space<vmem>>, vector<128x256xf32>
      tpu.vector_store %arg9[%c0_11, %c0_12], %12 {strides = array<i32>} : memref<128x256xf32, #tpu.memory_space<vmem>>, vector<128x256xf32>,
    } else {
    }
    %c0 = arith.constant 0 : index
    %c0_1 = arith.constant 0 : index
    %3 = vector.load %arg9[%c0, %c0_1] : memref<128x256xf32, #tpu.memory_space<vmem>>, vector<128x256xf32>
    %c0_2 = arith.constant 0 : index
    %c0_3 = arith.constant 0 : index
    %4 = vector.load %arg3[%c0_2, %c0_3] : memref<128x256xbf16, #tpu.memory_space<vmem>>, vector<128x256xbf16>
    %c0_4 = arith.constant 0 : index
    %c0_5 = arith.constant 0 : index
    %5 = vector.load %arg2[%c0_4, %c0_5] : memref<256x256xbf16, #tpu.memory_space<vmem>>, vector<256x256xbf16>
    %cst = arith.constant dense<0.000000e+00> : vector<128x256xf32>
    %6 = tpu.matmul %4, %5, %cst {dimension_numbers = #tpu.dot_dimension_numbers<[1], [0], [0], [1], [0, 0, 1, 1], [], []>} : vector<128x256xbf16>, vector<256x256xbf16>, vector<128x256xf32> -> vector<128x256xf32>
    %7 = arith.addf %3, %6 : vector<128x256xf32>
    %c0_6 = arith.constant 0 : index
    %c0_7 = arith.constant 0 : index
    %8 = vector.load %arg9[%c0_6, %c0_7] : memref<128x256xf32, #tpu.memory_space<vmem>>, vector<128x256xf32>
    tpu.vector_store %arg9[%c0_6, %c0_7], %7 {strides = array<i32>} : memref<128x256xf32, #tpu.memory_space<vmem>>, vector<128x256xf32>,
    %c0_i32_8 = arith.constant 0 : i32
    %9 = arith.cmpi eq, %arg1, %c0_i32_8 : i32
    %10 = arith.extui %9 : i1 to i32
    %c0_i32_9 = arith.constant 0 : i32
    %11 = arith.cmpi ne, %10, %c0_i32_9 : i32
    scf.if %11 {
      %c0_10 = arith.constant 0 : index
      %c0_11 = arith.constant 0 : index
      %12 = vector.load %arg9[%c0_10, %c0_11] : memref<128x256xf32, #tpu.memory_space<vmem>>, vector<128x256xf32>
      %c0_12 = arith.constant 0 : index
      %c0_13 = arith.constant 0 : index
      %13 = vector.load %arg4[%c0_12, %c0_13] : memref<1x256xf32, #tpu.memory_space<vmem>>, vector<1x256xf32>
      %14 = vector.broadcast %13 : vector<1x256xf32> to vector<128x256xf32>
      %15 = arith.addf %12, %14 : vector<128x256xf32>
      %16 = vector.extract_strided_slice %15 {offsets = [0, 0], sizes = [128, 128], strides = [1, 1]} : vector<128x256xf32> to vector<128x128xf32>
      %cst_14 = arith.constant 0.000000e+00 : f32
      %17 = vector.broadcast %cst_14 : f32 to vector<128x128xf32>
      %18 = arith.maximumf %16, %17 : vector<128x128xf32>
      %19 = arith.truncf %18 : vector<128x128xf32> to vector<128x128xbf16>
      %c0_15 = arith.constant 0 : index
      %c0_16 = arith.constant 0 : index
      %20 = vector.load %arg7[%c0_15, %c0_16] : memref<128x128xbf16, #tpu.memory_space<vmem>>, vector<128x128xbf16>
      tpu.vector_store %arg7[%c0_15, %c0_16], %19 {strides = array<i32>} : memref<128x128xbf16, #tpu.memory_space<vmem>>, vector<128x128xbf16>,
      %21 = vector.extract_strided_slice %15 {offsets = [0, 128], sizes = [128, 128], strides = [1, 1]} : vector<128x256xf32> to vector<128x128xf32>
      %c0_17 = arith.constant 0 : index
      %c0_18 = arith.constant 0 : index
      %22 = vector.load %arg6[%c0_17, %c0_18] : memref<128x128xf32, #tpu.memory_space<vmem>>, vector<128x128xf32>
      %c0_19 = arith.constant 0 : index
      %c0_20 = arith.constant 0 : index
      %23 = vector.load %arg5[%c0_19, %c0_20] : memref<128x1xf32, #tpu.memory_space<vmem>>, vector<128x1xf32>
      %24 = vector.broadcast %23 : vector<128x1xf32> to vector<128x128xf32>
      %25 = arith.mulf %24, %21 : vector<128x128xf32>
      %26 = arith.addf %22, %25 : vector<128x128xf32>
      %c0_21 = arith.constant 0 : index
      %c0_22 = arith.constant 0 : index
      %27 = vector.load %arg8[%c0_21, %c0_22] : memref<128x128xf32, #tpu.memory_space<vmem>>, vector<128x128xf32>
      tpu.vector_store %arg8[%c0_21, %c0_22], %26 {strides = array<i32>} : memref<128x128xf32, #tpu.memory_space<vmem>>, vector<128x128xf32>,
    } else {
    }
    return
  }
  func.func @transform_0(%arg0: i32, %arg1: i32) -> (i32, i32) {
    %c0_i32 = arith.constant 0 : i32
    %c0_i32_0 = arith.constant 0 : i32
    return %arg1, %c0_i32 : i32, i32
  }
  func.func @transform_1(%arg0: i32, %arg1: i32) -> (i32, i32) {
    %c0_i32 = arith.constant 0 : i32
    return %arg0, %arg1 : i32, i32
  }
  func.func @transform_2(%arg0: i32, %arg1: i32) -> (i32, i32) {
    %c0_i32 = arith.constant 0 : i32
    %c0_i32_0 = arith.constant 0 : i32
    %c0_i32_1 = arith.constant 0 : i32
    return %c0_i32, %c0_i32_0 : i32, i32
  }
  func.func @transform_3(%arg0: i32, %arg1: i32) -> (i32, i32) {
    %c0_i32 = arith.constant 0 : i32
    %c0_i32_0 = arith.constant 0 : i32
    return %arg0, %c0_i32 : i32, i32
  }
  func.func @transform_4(%arg0: i32, %arg1: i32) -> (i32, i32) {
    %c0_i32 = arith.constant 0 : i32
    %c0_i32_0 = arith.constant 0 : i32
    return %arg0, %c0_i32 : i32, i32
  }
  func.func @transform_5(%arg0: i32, %arg1: i32) -> (i32, i32) {
    %c0_i32 = arith.constant 0 : i32
    %c0_i32_0 = arith.constant 0 : i32
    return %arg0, %c0_i32 : i32, i32
  }
  func.func @transform_6(%arg0: i32, %arg1: i32) -> (i32, i32) {
    %c0_i32 = arith.constant 0 : i32
    %c0_i32_0 = arith.constant 0 : i32
    return %arg0, %c0_i32 : i32, i32
  }
}

</mosaic_0001>

<bundles_post_ra>
// kernel: moe_ogb_forward.7
= control target key start
LH: loop header
LB: loop body
LE: loop exit
PB: predicated region body
PF: predicated region fallthrough
CT: control target
= control target key end

     0   :  { %s1280_s18 = smov 0   ;;  %s1282_s19 = smov 0   ;;  %s1511_s0 = inlined_call_operand.vmem [shape: bf16[256,128], index: 0, kind: input, shape index: {}]   ;;  %s1512_s1 = inlined_call_operand.vmem [shape: bf16[256,256], index: 1, kind: input, shape index: {}]   ;;  %s1513_s2 = inlined_call_operand.vmem [shape: f32[1,128], index: 2, kind: input, shape index: {}]   ;;  %s1514_s3 = inlined_call_operand.vmem [shape: f32[256,1], index: 3, kind: input, shape index: {}]   ;;  %s1515_s4 = inlined_call_operand.vmem [shape: f32[256,128], index: 4, kind: input, shape index: {}, may-alias: {4,5}]   ;;  %s1516_s5 = inlined_call_operand.vmem [shape: f32[256,128], index: 5, kind: output, shape index: {}, may-alias: {4,5}]  }
   0x1   :  { %s1284_s20 = smov 0  }
   0x2 LB: > { %s27_s21 = sadd.s32 1, %s1243_s19  ;;  %p1032_p0 = scmp.ge.s32.totalorder %s1247_s20, 1  ;;  %s1247_s20 = sphi %s1284_s20, %s15_s20   ;;  %s1243_s19 = sphi %s1282_s19, %s1518_s19   ;;  %s1239_s18 = sphi %s1280_s18, %s1517_s18  }
   0x3   : > { %p29_p1 = scmp.ge.s32.totalorder %s27_s21, 2  ;;  %p241_p2 = scmp.lt.s32.totalorder %s1247_s20, 3 }
   0x5   : > { %s1520_s21 = smov (%p29_p1, %s27_s21), 0  ;;  %p242_p3 = pnand %p1032_p0, %p241_p2 }
   0x6   : > { %v1185_v0 = vld [vmem:[%s1511_s0 + $0x40] sm:$0xff] (!%p242_p3)   ;;  %s1033_s24 = sshll.u32 (!%p242_p3), %s1239_s18, 4  ;;  %v1187_v2 = vld [vmem:[%s1511_s0 + $0x48] sm:$0xff] (!%p242_p3)   ;;  %v1189_v4 = vld [vmem:[%s1511_s0 + $0x50] sm:$0xff] (!%p242_p3)   ;;  %v1249_v5 = vmov (!%p242_p3), 0  }
   0x7   : > { %245 = sbr.rel (%p242_p3) target bundleno = 287 (0x11f), region = 40  ;;  %v1186_v1 = vld [vmem:[%s1511_s0] sm:$0xff] (!%p242_p3)   ;;  %1078 = vmatprep.subr.bf16.mxu0 (!%p242_p3), %v1185_v0  ;;  %1142 = vmatprep.subr.bf16.mxu1 (!%p242_p3), %v1185_v0  ;;  %v1188_v3 = vld [vmem:[%s1511_s0 + $0x8] sm:$0xff] (!%p242_p3)   ;;  %p297_p4 = scmp.lt.s32.totalorder (!%p242_p3), %s1033_s24, 31  ;;  %v1190_v6 = vld [vmem:[%s1511_s0 + $0x10] sm:$0xff] (!%p242_p3)  }
   0x8   : > { %1079 = vmatpush3.bf16.msra.mxu0 (!%p242_p3), %v1186_v1  ;;  %1150 = vmatpush3.bf16.msra.mxu1 (!%p242_p3), %v1186_v1  ;;  %v1191_v7 = vld [vmem:[%s1511_s0 + $0x58] sm:$0xff] (!%p242_p3)   ;;  %v1193_v9 = vld [vmem:[%s1511_s0 + $0x60] sm:$0xff] (!%p242_p3)   ;;  %v1195_v11 = vld [vmem:[%s1511_s0 + $0x68] sm:$0xff] (!%p242_p3)  }
   0x9   : > { %1080 = vmatprep.subr.bf16.mxu0 (!%p242_p3), %v1187_v2  ;;  %1143 = vmatprep.subr.bf16.mxu1 (!%p242_p3), %v1187_v2  ;;  %v1192_v8 = vld [vmem:[%s1511_s0 + $0x18] sm:$0xff] (!%p242_p3)   ;;  %v1194_v10 = vld [vmem:[%s1511_s0 + $0x20] sm:$0xff] (!%p242_p3)   ;;  %v1196_v14 = vld [vmem:[%s1511_s0 + $0x28] sm:$0xff] (!%p242_p3)  }
   0xa   : > { %1184 = vset.pattern.permute.xlu1 (!%p242_p3), %v1249_v5  ;;  %1183 = vset.pattern.permute.xlu0 (!%p242_p3), %v1249_v5  ;;  %v1197_v15 = vld [vmem:[%s1511_s0 + $0x70] sm:$0xff] (!%p242_p3)   ;;  %v1199_v17 = vld [vmem:[%s1511_s0 + $0x78] sm:$0xff] (!%p242_p3)   ;;  %v1416_v60 = vld [vmem:[%s1513_s2] ss:$0 sm:$0xff] (!%p242_p3) }
   0xb   : > { %v1198_v16 = vld [vmem:[%s1511_s0 + $0x30] sm:$0xff] (!%p242_p3)   ;;  %v1200_v19 = vld [vmem:[%s1511_s0 + $0x38] sm:$0xff] (!%p242_p3)  }
   0xc   : > { %1081 = vmatpush3.bf16.msra.mxu0 (!%p242_p3), %v1188_v3  ;;  %1151 = vmatpush3.bf16.msra.mxu1 (!%p242_p3), %v1188_v3 }
   0xd   : > { %1082 = vmatprep.subr.bf16.mxu0 (!%p242_p3), %v1189_v4  ;;  %1144 = vmatprep.subr.bf16.mxu1 (!%p242_p3), %v1189_v4 }
   0xe   : > { %s1522_s24 = smov (!%p297_p4, %s1033_s24), 31 }
   0xf   : > { %s1325_s14 = sshll.u32 %s1522_s24, 3 }
  0x10   : > { %1083 = vmatpush3.bf16.msra.mxu0 %v1190_v6  ;;  %1152 = vmatpush3.bf16.msra.mxu1 %v1190_v6  ;;  %s1334_s22 = scalar_lea.vmem %s1512_s1, %s1325_s14  ;;  %s1357_s10 = scalar_lea.vmem %s1514_s3, %s1325_s14 }
  0x11   : > { %1084 = vmatprep.subr.bf16.mxu0 %v1191_v7  ;;  %1145 = vmatprep.subr.bf16.mxu1 %v1191_v7  ;;  %v1203_v12 = vld [vmem:[%s1334_s22 + $0x4] ss:$8 sps:$4 sm:$0xff]   ;;  %v775_v18 = vld [vmem:[%s1357_s10 + $0x10] sm:$0xff]  ;;  %v1201_v21 = vld [vmem:[%s1334_s22] ss:$8 sps:$4 sm:$0xff]   ;;  %s1411_s18 = scalar_lea.vmem %s1515_s4, %s1325_s14  ;;  %s1449_s26 = scalar_lea.vmem %s1516_s5, %s1325_s14 }
  0x12   : > { %v1206_v13 = vld [vmem:[%s1334_s22 + $0x44] ss:$8 sps:$4 sm:$0xff]   ;;  %618 = vmatprep.mubr.bf16.mxu0 %v1203_v12  ;;  %801 = vperm.xlu1 %1184, %v775_v18   ;;  %v1204_v22 = vld [vmem:[%s1334_s22 + $0x40] ss:$8 sps:$4 sm:$0xff]   ;;  %v776_v23 = vld [vmem:[%s1357_s10 + $0x18] sm:$0xff] }
  0x13   : > { %650 = vmatprep.mubr.bf16.mxu1 %v1206_v13  ;;  %v773_v20 = vld [vmem:[%s1357_s10] sm:$0xff]  ;;  %v774_v24 = vld [vmem:[%s1357_s10 + $0x8] sm:$0xff]  ;;  %v1207_v25 = vld [vmem:[%s1334_s22 + $0x14] ss:$8 sps:$4 sm:$0xff]  }
  0x14   : > { %1085 = vmatpush3.bf16.msra.mxu0 %v1192_v8  ;;  %1153 = vmatpush3.bf16.msra.mxu1 %v1192_v8  ;;  %v1209_v26 = vld [vmem:[%s1334_s22 + $0x54] ss:$8 sps:$4 sm:$0xff]   ;;  %v778_v27 = vld [vmem:[%s1357_s10 + $0x28] sm:$0xff]  ;;  %v777_v28 = vld [vmem:[%s1357_s10 + $0x20] sm:$0xff] }
  0x15   : > { %1086 = vmatprep.subr.bf16.mxu0 %v1193_v9  ;;  %1146 = vmatprep.subr.bf16.mxu1 %v1193_v9  ;;  %v1211_v29 = vld [vmem:[%s1334_s22 + $0x10] ss:$8 sps:$4 sm:$0xff]   ;;  %v1213_v33 = vld [vmem:[%s1334_s22 + $0x24] ss:$8 sps:$4 sm:$0xff]   ;;  %v1217_v37 = vld [vmem:[%s1334_s22 + $0x20] ss:$8 sps:$4 sm:$0xff]  }
  0x16   : > { %791 = vperm.xlu0 %1183, %v773_v20   ;;  %806 = vperm.xlu1 %1184, %v776_v23   ;;  %v1212_v30 = vld [vmem:[%s1334_s22 + $0x50] ss:$8 sps:$4 sm:$0xff]   ;;  %v1215_v34 = vld [vmem:[%s1334_s22 + $0x64] ss:$8 sps:$4 sm:$0xff]   ;;  %v1218_v38 = vld [vmem:[%s1334_s22 + $0x60] ss:$8 sps:$4 sm:$0xff]  }
  0x17   : > { %v780_v31 = vld [vmem:[%s1357_s10 + $0x38] sm:$0xff]  ;;  %v779_v32 = vld [vmem:[%s1357_s10 + $0x30] sm:$0xff]  ;;  %v782_v35 = vld [vmem:[%s1357_s10 + $0x48] sm:$0xff] }
  0x18   : > { %1087 = vmatpush3.bf16.msra.mxu0 %v1194_v10  ;;  %1154 = vmatpush3.bf16.msra.mxu1 %v1194_v10  ;;  %v781_v36 = vld [vmem:[%s1357_s10 + $0x40] sm:$0xff]  ;;  %v784_v39 = vld [vmem:[%s1357_s10 + $0x58] sm:$0xff]  ;;  %v783_v40 = vld [vmem:[%s1357_s10 + $0x50] sm:$0xff] }
  0x19   : > { %1088 = vmatprep.subr.bf16.mxu0 %v1195_v11  ;;  %1147 = vmatprep.subr.bf16.mxu1 %v1195_v11  ;;  %v1219_v41 = vld [vmem:[%s1334_s22 + $0x34] ss:$8 sps:$4 sm:$0xff]   ;;  %v786_v43 = vld [vmem:[%s1357_s10 + $0x68] sm:$0xff]  ;;  %v785_v44 = vld [vmem:[%s1357_s10 + $0x60] sm:$0xff] }
  0x1a   : > { %796 = vperm.xlu0 %1183, %v774_v24   ;;  %816 = vperm.xlu1 %1184, %v778_v27   ;;  %v1221_v42 = vld [vmem:[%s1334_s22 + $0x74] ss:$8 sps:$4 sm:$0xff]   ;;  %v1223_v45 = vld [vmem:[%s1334_s22 + $0x30] ss:$8 sps:$4 sm:$0xff]   ;;  %v757_v5 = vld [vmem:[%s1411_s18] sm:$0xff] }
  0x1b   : > { %v1224_v46 = vld [vmem:[%s1334_s22 + $0x70] ss:$8 sps:$4 sm:$0xff]   ;;  %v765_v7 = vld [vmem:[%s1411_s18 + $0x40] sm:$0xff]  ;;  %v758_v11 = vld [vmem:[%s1411_s18 + $0x8] sm:$0xff] }
  0x1c   : > { %1089 = vmatpush3.bf16.msra.mxu0 %v1196_v14  ;;  %1155 = vmatpush3.bf16.msra.mxu1 %v1196_v14  ;;  %v788_v47 = vld [vmem:[%s1357_s10 + $0x78] sm:$0xff]  ;;  %v787_v48 = vld [vmem:[%s1357_s10 + $0x70] sm:$0xff]  ;;  %v766_v12 = vld [vmem:[%s1411_s18 + $0x48] sm:$0xff] }
  0x1d   : > { %1090 = vmatprep.subr.bf16.mxu0 %v1197_v15  ;;  %1148 = vmatprep.subr.bf16.mxu1 %v1197_v15  ;;  %v759_v13 = vld [vmem:[%s1411_s18 + $0x10] sm:$0xff]  ;;  %v760_v15 = vld [vmem:[%s1411_s18 + $0x18] sm:$0xff]  ;;  %v1432_v18 = vld [vmem:[%s1411_s18 + $0x60] sm:$0xff] }
  0x1e   : > { %811 = vperm.xlu0 %1183, %v777_v28   ;;  %826 = vperm.xlu1 %1184, %v780_v31   ;;  %v767_v14 = vld [vmem:[%s1411_s18 + $0x50] sm:$0xff]  ;;  %v1437_v23 = vld [vmem:[%s1411_s18 + $0x28] sm:$0xff]  ;;  %v1455_v28 = vld [vmem:[%s1411_s18 + $0x38] sm:$0xff] }
  0x1f   : > { %v1440_v24 = vld [vmem:[%s1411_s18 + $0x68] sm:$0xff]  ;;  %v1452_v27 = vld [vmem:[%s1411_s18 + $0x70] sm:$0xff] }
  0x20   : > { %1091 = vmatpush3.bf16.msra.mxu0 %v1198_v16  ;;  %1156 = vmatpush3.bf16.msra.mxu1 %v1198_v16  ;;  %v768_v16 = vld [vmem:[%s1411_s18 + $0x58] sm:$0xff] }
  0x21   : > { %1092 = vmatprep.subr.bf16.mxu0 %v1199_v17  ;;  %1149 = vmatprep.subr.bf16.mxu1 %v1199_v17  ;;  %v1429_v17 = vld [vmem:[%s1411_s18 + $0x20] sm:$0xff] }
  0x22   : > { %821 = vperm.xlu0 %1183, %v779_v32   ;;  %836 = vperm.xlu1 %1184, %v782_v35  }
  0x24   : > { %1093 = vmatpush3.bf16.msra.mxu0 %v1200_v19  ;;  %1157 = vmatpush3.bf16.msra.mxu1 %v1200_v19 }
  0x26   : > { %831 = vperm.xlu0 %1183, %v781_v36   ;;  %846 = vperm.xlu1 %1184, %v784_v39  }
  0x27   : > { %619 = vmatmul.mubr.bf16.vlgmr.msra.gmra.mrb[0].mxu0 %v1201_v21  ;;  %651 = vmatmul.mubr.bf16.vlgmr.msra.gmra.mrb[0].mxu1 %v1204_v22 }
  0x28   : > { %626 = vmatprep.mubr.bf16.mxu0 %v1207_v25  ;;  %658 = vmatprep.mubr.bf16.mxu1 %v1209_v26  ;;  %v1443_v25 = vld [vmem:[%s1411_s18 + $0x30] sm:$0xff] }
  0x2a   : > { %841 = vperm.xlu0 %1183, %v783_v40   ;;  %856 = vperm.xlu1 %1184, %v786_v43  }
  0x2e   : > { %851 = vperm.xlu0 %1183, %v785_v44   ;;  %866 = vperm.xlu1 %1184, %v788_v47  }
  0x2f   : > { %627 = vmatmul.mubr.bf16.gmra.mrb[4].mxu0 %v1211_v29  ;;  %659 = vmatmul.mubr.bf16.gmra.mrb[4].mxu1 %v1212_v30  ;;  %v1458_v29 = vld [vmem:[%s1411_s18 + $0x78] sm:$0xff] }
  0x30   : > { %634 = vmatprep.mubr.bf16.mxu0 %v1213_v33  ;;  %666 = vmatprep.mubr.bf16.mxu1 %v1215_v34 }
  0x32   : > { %861 = vperm.xlu0 %1183, %v787_v48  }
  0x37   : > { %635 = vmatmul.mubr.bf16.gmra.mrb[8].mxu0 %v1217_v37  ;;  %667 = vmatmul.mubr.bf16.gmra.mrb[8].mxu1 %v1218_v38 }
  0x38   : > { %642 = vmatprep.mubr.bf16.mxu0 %v1219_v41  ;;  %674 = vmatprep.mubr.bf16.mxu1 %v1221_v42 }
  0x3f   : > { %643 = vmatmul.mubr.bf16.gmra.mrb[12].mxu0 %v1223_v45  ;;  %675 = vmatmul.mubr.bf16.gmra.mrb[12].mxu1 %v1224_v46 }
  0x91   : > { %v1395_v49 = vpop.permute.xlu1 %801 }
  0x95   : > { %v792_v50 = vpop.permute.xlu0 %791  ;;  %v1397_v51 = vpop.permute.xlu1 %806 }
  0x99   : > { %v797_v52 = vpop.permute.xlu0 %796  ;;  %v1399_v53 = vpop.permute.xlu1 %816 }
  0x9d   : > { %v1401_v54 = vpop.permute.xlu0 %811  ;;  %v1403_v55 = vpop.permute.xlu1 %826 }
  0xa1   : > { %v1405_v56 = vpop.permute.xlu0 %821  ;;  %v837_v26 = vpop.permute.xlu1 %836 }
  0xa5   : > { %v832_v10 = vpop.permute.xlu0 %831 }
  0xfa   : > { %v1094_v57 = vpop.f32.mrb[0].mxu0  ;;  %v1118_v58 = vpop.f32.mrb[0].mxu1 }
  0xfb   : > { %v1095_v59 = vpop.f32.mrb[1].mxu0  ;;  %v1119_v61 = vpop.f32.mrb[1].mxu1 }
  0xfc   : > { %v1096_v62 = vadd.f32 %v1095_v59, %v1094_v57  ;;  %v1120_v63 = vadd.f32 %v1119_v61, %v1118_v58  ;;  %v1097_v0 = vpop.f32.mrb[2].mxu0  ;;  %v1121_v1 = vpop.f32.mrb[2].mxu1 }
  0xfd   : > { %v1098_v2 = vpop.f32.mrb[3].mxu0  ;;  %v1122_v3 = vpop.f32.mrb[3].mxu1 }
  0xfe   : > { %v741_v4 = vadd.f32 %v1096_v62, %v1416_v60  ;;  %v749_v6 = vadd.f32 %v1120_v63, %v1416_v60  ;;  %v1099_v8 = vadd.f32 %v1098_v2, %v1097_v0  ;;  %v1123_v9 = vadd.f32 %v1122_v3, %v1121_v1  ;;  %v847_v62 = vpop.permute.xlu1 %846 }
 0x100   : > { %v869_v19 = vmul.f32 %v792_v50, %v741_v4  ;;  %v877_v20 = vmul.f32 %v832_v10, %v749_v6  ;;  %v742_v21 = vadd.f32 %v1099_v8, %v1416_v60  ;;  %v750_v22 = vadd.f32 %v1123_v9, %v1416_v60 }
 0x102   : > { %v885_v30 = vadd.f32 %v869_v19, %v757_v5  ;;  %v893_v31 = vadd.f32 %v877_v20, %v765_v7  ;;  %v870_v32 = vmul.f32 %v797_v52, %v742_v21  ;;  %v878_v33 = vmul.f32 %v837_v26, %v750_v22  ;;  %v1100_v34 = vpop.f32.mrb[4].mxu0  ;;  %v1124_v35 = vpop.f32.mrb[4].mxu1 }
 0x103   : > { %v1101_v36 = vpop.f32.mrb[5].mxu0  ;;  %v1125_v37 = vpop.f32.mrb[5].mxu1 }
 0x104   : > { %v886_v38 = vadd.f32 %v870_v32, %v758_v11  ;;  %v894_v39 = vadd.f32 %v878_v33, %v766_v12  ;;  %v1102_v40 = vadd.f32 %v1101_v36, %v1100_v34  ;;  %v1126_v41 = vadd.f32 %v1125_v37, %v1124_v35  ;;  %v1103_v42 = vpop.f32.mrb[6].mxu0  ;;  %v1127_v43 = vpop.f32.mrb[6].mxu1  ;;  %901 = vst [vmem:[%s1449_s26] sm:$0xff] %v885_v30 }
 0x105   : > { %909 = vst [vmem:[%s1449_s26 + $0x40] sm:$0xff] %v893_v31  ;;  %v1104_v44 = vpop.f32.mrb[7].mxu0  ;;  %v1128_v45 = vpop.f32.mrb[7].mxu1 }
 0x106   : > { %v743_v46 = vadd.f32 %v1102_v40, %v1416_v60  ;;  %v751_v47 = vadd.f32 %v1126_v41, %v1416_v60  ;;  %v1105_v48 = vadd.f32 %v1104_v44, %v1103_v42  ;;  %v1129_v50 = vadd.f32 %v1128_v45, %v1127_v43  ;;  %902 = vst [vmem:[%s1449_s26 + $0x8] sm:$0xff] %v886_v38  ;;  %v842_v52 = vpop.permute.xlu0 %841  ;;  %v857_v30 = vpop.permute.xlu1 %856 }
 0x107   : > { %910 = vst [vmem:[%s1449_s26 + $0x48] sm:$0xff] %v894_v39 }
 0x108   : > { %v871_v57 = vmul.f32 %v1395_v49, %v743_v46  ;;  %v879_v58 = vmul.f32 %v842_v52, %v751_v47  ;;  %v744_v59 = vadd.f32 %v1105_v48, %v1416_v60  ;;  %v752_v61 = vadd.f32 %v1129_v50, %v1416_v60 }
 0x10a   : > { %v887_v63 = vadd.f32 %v871_v57, %v759_v13  ;;  %v895_v0 = vadd.f32 %v879_v58, %v767_v14  ;;  %v872_v1 = vmul.f32 %v1397_v51, %v744_v59  ;;  %v880_v2 = vmul.f32 %v847_v62, %v752_v61  ;;  %v1106_v3 = vpop.f32.mrb[8].mxu0  ;;  %v1130_v4 = vpop.f32.mrb[8].mxu1 }
 0x10b   : > { %v1107_v5 = vpop.f32.mrb[9].mxu0  ;;  %v1131_v6 = vpop.f32.mrb[9].mxu1 }
 0x10c   : > { %v888_v49 = vadd.f32 %v872_v1, %v760_v15  ;;  %v896_v7 = vadd.f32 %v880_v2, %v768_v16  ;;  %v1108_v8 = vadd.f32 %v1107_v5, %v1106_v3  ;;  %v1132_v9 = vadd.f32 %v1131_v6, %v1130_v4  ;;  %v1109_v10 = vpop.f32.mrb[10].mxu0  ;;  %v1133_v11 = vpop.f32.mrb[10].mxu1  ;;  %903 = vst [vmem:[%s1449_s26 + $0x10] sm:$0xff] %v887_v63 }
 0x10d   : > { %911 = vst [vmem:[%s1449_s26 + $0x50] sm:$0xff] %v895_v0  ;;  %v1110_v12 = vpop.f32.mrb[11].mxu0  ;;  %v1134_v13 = vpop.f32.mrb[11].mxu1 }
 0x10e   : > { %v745_v14 = vadd.f32 %v1108_v8, %v1416_v60  ;;  %v753_v51 = vadd.f32 %v1132_v9, %v1416_v60  ;;  %v1111_v19 = vadd.f32 %v1110_v12, %v1109_v10  ;;  %v1135_v20 = vadd.f32 %v1134_v13, %v1133_v11  ;;  %904 = vst [vmem:[%s1449_s26 + $0x18] sm:$0xff] %v888_v49  ;;  %v852_v21 = vpop.permute.xlu0 %851  ;;  %v867_v52 = vpop.permute.xlu1 %866 }
 0x10f   : > { %912 = vst [vmem:[%s1449_s26 + $0x58] sm:$0xff] %v896_v7 }
 0x110   : > { %v873_v15 = vmul.f32 %v1401_v54, %v745_v14  ;;  %v881_v16 = vmul.f32 %v852_v21, %v753_v51  ;;  %v746_v22 = vadd.f32 %v1111_v19, %v1416_v60  ;;  %v754_v26 = vadd.f32 %v1135_v20, %v1416_v60 }
 0x112   : > { %v889_v31 = vadd.f32 %v873_v15, %v1429_v17  ;;  %v897_v32 = vadd.f32 %v881_v16, %v1432_v18  ;;  %v874_v33 = vmul.f32 %v1399_v53, %v746_v22  ;;  %v882_v34 = vmul.f32 %v857_v30, %v754_v26  ;;  %v1112_v35 = vpop.f32.mrb[12].mxu0  ;;  %v1136_v36 = vpop.f32.mrb[12].mxu1 }
 0x113   : > { %v1113_v37 = vpop.f32.mrb[13].mxu0  ;;  %v1137_v54 = vpop.f32.mrb[13].mxu1 }
 0x114   : > { %v890_v38 = vadd.f32 %v874_v33, %v1437_v23  ;;  %v898_v39 = vadd.f32 %v882_v34, %v1440_v24  ;;  %v1114_v40 = vadd.f32 %v1113_v37, %v1112_v35  ;;  %v1138_v41 = vadd.f32 %v1137_v54, %v1136_v36  ;;  %v1115_v42 = vpop.f32.mrb[14].mxu0  ;;  %v1139_v43 = vpop.f32.mrb[14].mxu1  ;;  %905 = vst [vmem:[%s1449_s26 + $0x20] sm:$0xff] %v889_v31 }
 0x115   : > { %913 = vst [vmem:[%s1449_s26 + $0x60] sm:$0xff] %v897_v32  ;;  %v1116_v17 = vpop.f32.mrb[15].mxu0  ;;  %v1140_v18 = vpop.f32.mrb[15].mxu1 }
 0x116   : > { %v747_v53 = vadd.f32 %v1114_v40, %v1416_v60  ;;  %v755_v44 = vadd.f32 %v1138_v41, %v1416_v60  ;;  %v1117_v45 = vadd.f32 %v1116_v17, %v1115_v42  ;;  %v1141_v46 = vadd.f32 %v1140_v18, %v1139_v43  ;;  %906 = vst [vmem:[%s1449_s26 + $0x28] sm:$0xff] %v890_v38  ;;  %v862_v23 = vpop.permute.xlu0 %861 }
 0x117   : > { %914 = vst [vmem:[%s1449_s26 + $0x68] sm:$0xff] %v898_v39 }
 0x118   : > { %v875_v24 = vmul.f32 %v1405_v56, %v747_v53  ;;  %v883_v47 = vmul.f32 %v862_v23, %v755_v44  ;;  %v748_v48 = vadd.f32 %v1117_v45, %v1416_v60  ;;  %v756_v50 = vadd.f32 %v1141_v46, %v1416_v60 }
 0x11a   : > { %v891_v57 = vadd.f32 %v875_v24, %v1443_v25  ;;  %v899_v58 = vadd.f32 %v883_v47, %v1452_v27  ;;  %v876_v59 = vmul.f32 %v1403_v55, %v748_v48  ;;  %v884_v61 = vmul.f32 %v867_v52, %v756_v50 }
 0x11c   : > { %v892_v62 = vadd.f32 %v876_v59, %v1455_v28  ;;  %v900_v63 = vadd.f32 %v884_v61, %v1458_v29  ;;  %907 = vst [vmem:[%s1449_s26 + $0x30] sm:$0xff] %v891_v57  ;;  %915 = vst [vmem:[%s1449_s26 + $0x70] sm:$0xff] %v899_v58 }
 0x11e   : > { %908 = vst [vmem:[%s1449_s26 + $0x38] sm:$0xff] %v892_v62  ;;  %916 = vst [vmem:[%s1449_s26 + $0x78] sm:$0xff] %v900_v63 }
 0x11f PF: > { %s15_s20 = sadd.s32 1, %s1247_s20   ;;  %s1517_s18 = smov %s1243_s19 }
 0x120   : > { %p12_p5 = scmp.ge.s32.totalorder %s15_s20, 4   ;;  %s1518_s19 = smov %s1520_s21 }
 0x122   :  { %14 = sbr.rel (!%p12_p5) target bundleno = 2 (0x2), region = 87 }

// kernel: moe_ogb_forward.5
= control target key start
LH: loop header
LB: loop body
LE: loop exit
PB: predicated region body
PF: predicated region fallthrough
CT: control target
= control target key end

     0   :  { %s2005_s21 = smov 0   ;;  %s2007_s22 = smov 0   ;;  %s2394_s0 = inlined_call_operand.vmem [shape: bf16[256,384], index: 0, kind: input, shape index: {}]   ;;  %s2395_s1 = inlined_call_operand.vmem [shape: bf16[256,256], index: 1, kind: input, shape index: {}]   ;;  %s2396_s2 = inlined_call_operand.vmem [shape: f32[1,384], index: 2, kind: input, shape index: {}]   ;;  %s2397_s3 = inlined_call_operand.vmem [shape: f32[256,1], index: 3, kind: input, shape index: {}]   ;;  %s2398_s4 = inlined_call_operand.vmem [shape: f32[256,128], index: 4, kind: input, shape index: {}, may-alias: {4,6}]   ;;  %s2399_s5 = inlined_call_operand.vmem [shape: bf16[256,256], index: 5, kind: output, shape index: {0}]   ;;  %s2400_s6 = inlined_call_operand.vmem [shape: f32[256,128], index: 6, kind: output, shape index: {1}, may-alias: {4,6}]  }
   0x1   :  { %s2009_s23 = smov 0  }
   0x2 LB: > { %s29_s24 = sadd.s32 1, %s1963_s22  ;;  %p1685_p0 = scmp.ge.s32.totalorder %s1967_s23, 1  ;;  %s1967_s23 = sphi %s2009_s23, %s17_s23   ;;  %s1963_s22 = sphi %s2007_s22, %s2402_s22   ;;  %s1959_s21 = sphi %s2005_s21, %s2401_s21  }
   0x3   : > { %p31_p1 = scmp.ge.s32.totalorder %s29_s24, 2  ;;  %p270_p2 = scmp.lt.s32.totalorder %s1967_s23, 3 }
   0x5   : > { %s2404_s24 = smov (%p31_p1, %s29_s24), 0  ;;  %p271_p3 = pnand %p1685_p0, %p270_p2 }
   0x6   : > { %v1857_v0 = vld [vmem:[%s2394_s0 + $0x4] ss:$12 sps:$4 sm:$0xff] (!%p271_p3)   ;;  %v1859_v1 = vld [vmem:[%s2394_s0] ss:$12 sps:$4 sm:$0xff] (!%p271_p3)   ;;  %v1969_v2 = vmov (!%p271_p3), 0   ;;  %s1686_s7 = sshll.u32 (!%p271_p3), %s1959_s21, 4 }
   0x7   : > { %274 = sbr.rel (%p271_p3) target bundleno = 350 (0x15e), region = 40  ;;  %1855 = vset.pattern.permute.xlu0 (!%p271_p3), %v1969_v2  ;;  %1856 = vset.pattern.permute.xlu1 (!%p271_p3), %v1969_v2  ;;  %v1860_v3 = vld [vmem:[%s2394_s0 + $0xc8] ss:$12 sps:$4 sm:$0xff] (!%p271_p3)   ;;  %v1864_v6 = vld [vmem:[%s2394_s0 + $0x18] ss:$12 sps:$4 sm:$0xff] (!%p271_p3)   ;;  %p336_p4 = scmp.lt.s32.totalorder (!%p271_p3), %s1686_s7, 31 }
   0x8   : > { %888 = vmatprep.subr.bf16.mxu0 (!%p271_p3), %v1857_v0  ;;  %v1861_v4 = vld [vmem:[%s2394_s0 + $0x8] ss:$12 sps:$4 sm:$0xff] (!%p271_p3)   ;;  %1766 = vmatprep.subr.bf16.mxu1 (!%p271_p3), %v1860_v3  ;;  %v1865_v7 = vld [vmem:[%s2394_s0 + $0xe0] ss:$12 sps:$4 sm:$0xff] (!%p271_p3)   ;;  %v1869_v10 = vld [vmem:[%s2394_s0 + $0x30] ss:$12 sps:$4 sm:$0xff] (!%p271_p3)  }
   0x9   : > { %889 = vmatpush1.bf16.msra.mxu0 (!%p271_p3), %v1859_v1  ;;  %v1862_v5 = vld [vmem:[%s2394_s0 + $0x1c] ss:$12 sps:$4 sm:$0xff] (!%p271_p3)   ;;  %1767 = vmatpush3.bf16.msra.mxu1 (!%p271_p3), %v1861_v4  ;;  %v1866_v8 = vld [vmem:[%s2394_s0 + $0x20] ss:$12 sps:$4 sm:$0xff] (!%p271_p3)   ;;  %v1870_v11 = vld [vmem:[%s2394_s0 + $0xf8] ss:$12 sps:$4 sm:$0xff] (!%p271_p3)  }
   0xa   : > { %890 = vmatprep.subr.bf16.mxu0 (!%p271_p3), %v1862_v5  ;;  %1768 = vmatprep.subr.bf16.mxu1 (!%p271_p3), %v1865_v7  ;;  %v1867_v9 = vld [vmem:[%s2394_s0 + $0x34] ss:$12 sps:$4 sm:$0xff] (!%p271_p3)   ;;  %v1871_v12 = vld [vmem:[%s2394_s0 + $0x38] ss:$12 sps:$4 sm:$0xff] (!%p271_p3)   ;;  %v1875_v15 = vld [vmem:[%s2394_s0 + $0x110] ss:$12 sps:$4 sm:$0xff] (!%p271_p3)  }
   0xb   : > { %v1872_v13 = vld [vmem:[%s2394_s0 + $0x4c] ss:$12 sps:$4 sm:$0xff] (!%p271_p3)   ;;  %v1874_v14 = vld [vmem:[%s2394_s0 + $0x48] ss:$12 sps:$4 sm:$0xff] (!%p271_p3)   ;;  %v1876_v16 = vld [vmem:[%s2394_s0 + $0x50] ss:$12 sps:$4 sm:$0xff] (!%p271_p3)  }
   0xc   : > { %v1877_v17 = vld [vmem:[%s2394_s0 + $0x64] ss:$12 sps:$4 sm:$0xff] (!%p271_p3)   ;;  %v1879_v18 = vld [vmem:[%s2394_s0 + $0x60] ss:$12 sps:$4 sm:$0xff] (!%p271_p3)   ;;  %v1880_v19 = vld [vmem:[%s2394_s0 + $0x128] ss:$12 sps:$4 sm:$0xff] (!%p271_p3)  }
   0xd   : > { %891 = vmatpush1.bf16.msra.mxu0 (!%p271_p3), %v1864_v6  ;;  %1769 = vmatpush3.bf16.msra.mxu1 (!%p271_p3), %v1866_v8  ;;  %v1881_v20 = vld [vmem:[%s2394_s0 + $0x68] ss:$12 sps:$4 sm:$0xff] (!%p271_p3)   ;;  %v1885_v22 = vld [vmem:[%s2394_s0 + $0x140] ss:$12 sps:$4 sm:$0xff] (!%p271_p3)   ;;  %v1884_v23 = vld [vmem:[%s2394_s0 + $0x78] ss:$12 sps:$4 sm:$0xff] (!%p271_p3)  }
   0xe   : > { %892 = vmatprep.subr.bf16.mxu0 %v1867_v9  ;;  %1770 = vmatprep.subr.bf16.mxu1 %v1870_v11  ;;  %v1882_v21 = vld [vmem:[%s2394_s0 + $0x7c] ss:$12 sps:$4 sm:$0xff]   ;;  %s2406_s7 = smov (!%p336_p4, %s1686_s7), 31  ;;  %v1887_v24 = vld [vmem:[%s2394_s0 + $0x94] ss:$12 sps:$4 sm:$0xff]  }
   0xf   : > { %v1886_v25 = vld [vmem:[%s2394_s0 + $0x80] ss:$12 sps:$4 sm:$0xff]   ;;  %v1890_v26 = vld [vmem:[%s2394_s0 + $0x158] ss:$12 sps:$4 sm:$0xff]   ;;  %v1889_v27 = vld [vmem:[%s2394_s0 + $0x90] ss:$12 sps:$4 sm:$0xff]  }
  0x10   : > { %s2107_s17 = sshll.u32 %s2406_s7, 3  ;;  %v1892_v28 = vld [vmem:[%s2394_s0 + $0xac] ss:$12 sps:$4 sm:$0xff]   ;;  %v1895_v30 = vld [vmem:[%s2394_s0 + $0x170] ss:$12 sps:$4 sm:$0xff]  }
  0x11   : > { %893 = vmatpush1.bf16.msra.mxu0 %v1869_v10  ;;  %1771 = vmatpush3.bf16.msra.mxu1 %v1871_v12  ;;  %v1891_v29 = vld [vmem:[%s2394_s0 + $0x98] ss:$12 sps:$4 sm:$0xff]   ;;  %s2122_s7 = scalar_lea.vmem %s2395_s1, %s2107_s17  ;;  %v1894_v31 = vld [vmem:[%s2394_s0 + $0xa8] ss:$12 sps:$4 sm:$0xff]   ;;  %v1896_v32 = vld [vmem:[%s2394_s0 + $0xb0] ss:$12 sps:$4 sm:$0xff]   ;;  %s2178_s13 = scalar_lea.vmem %s2397_s3, %s2107_s17 }
  0x12   : > { %894 = vmatprep.subr.bf16.mxu0 %v1872_v13  ;;  %1772 = vmatprep.subr.bf16.mxu1 %v1875_v15  ;;  %v1897_v33 = vld [vmem:[%s2394_s0 + $0xc4] ss:$12 sps:$4 sm:$0xff]   ;;  %v1899_v35 = vld [vmem:[%s2394_s0 + $0xc0] ss:$12 sps:$4 sm:$0xff]   ;;  %v1903_v37 = vld [vmem:[%s2394_s0 + $0xdc] ss:$12 sps:$4 sm:$0xff]   ;;  %s2275_s16 = scalar_lea.vmem %s2400_s6, %s2107_s17 }
  0x13   : > { %v1902_v34 = vld [vmem:[%s2122_s7 + $0x4] ss:$8 sps:$4 sm:$0xff]   ;;  %v2138_v36 = vld [vmem:[%s2122_s7] ss:$8 sps:$4 sm:$0xff]   ;;  %v2144_v38 = vld [vmem:[%s2122_s7 + $0x14] ss:$8 sps:$4 sm:$0xff]  }
  0x14   : > { %1033 = vmatprep.mubr.bf16.mxu1 %v1902_v34  ;;  %920 = vmatprep.mubr.bf16.mxu0 %v1902_v34  ;;  %v1905_v39 = vld [vmem:[%s2394_s0 + $0xd8] ss:$12 sps:$4 sm:$0xff]   ;;  %v1906_v40 = vld [vmem:[%s2394_s0 + $0xf4] ss:$12 sps:$4 sm:$0xff]   ;;  %v1908_v41 = vld [vmem:[%s2394_s0 + $0xf0] ss:$12 sps:$4 sm:$0xff]  }
  0x15   : > { %895 = vmatpush1.bf16.msra.mxu0 %v1874_v14  ;;  %1773 = vmatpush3.bf16.msra.mxu1 %v1876_v16  ;;  %v2158_v42 = vld [vmem:[%s2122_s7 + $0x10] ss:$8 sps:$4 sm:$0xff]   ;;  %v2164_v44 = vld [vmem:[%s2122_s7 + $0x24] ss:$8 sps:$4 sm:$0xff]   ;;  %v1914_v45 = vld [vmem:[%s2394_s0 + $0x108] ss:$12 sps:$4 sm:$0xff]  }
  0x16   : > { %896 = vmatprep.subr.bf16.mxu0 %v1877_v17  ;;  %1774 = vmatprep.subr.bf16.mxu1 %v1880_v19  ;;  %v1912_v43 = vld [vmem:[%s2394_s0 + $0x10c] ss:$12 sps:$4 sm:$0xff]   ;;  %v1915_v46 = vld [vmem:[%s2394_s0 + $0x124] ss:$12 sps:$4 sm:$0xff]   ;;  %v2184_v48 = vld [vmem:[%s2122_s7 + $0x20] ss:$8 sps:$4 sm:$0xff]   ;;  %v1247_v17 = vlaneseq }
  0x17   : > { %v1917_v47 = vld [vmem:[%s2394_s0 + $0x120] ss:$12 sps:$4 sm:$0xff]   ;;  %v1921_v49 = vld [vmem:[%s2394_s0 + $0x13c] ss:$12 sps:$4 sm:$0xff]   ;;  %v1392_v51 = vld [vmem:[%s2178_s13 + $0x10] sm:$0xff] }
  0x18   : > { %v1390_v50 = vld [vmem:[%s2178_s13] sm:$0xff]  ;;  %v2192_v52 = vld [vmem:[%s2122_s7 + $0x34] ss:$8 sps:$4 sm:$0xff]   ;;  %1418 = vperm.xlu1 %1856, %v1392_v51   ;;  %v1391_v53 = vld [vmem:[%s2178_s13 + $0x8] sm:$0xff] }
  0x19   : > { %897 = vmatpush1.bf16.msra.mxu0 %v1879_v18  ;;  %1775 = vmatpush3.bf16.msra.mxu1 %v1881_v20  ;;  %v1923_v54 = vld [vmem:[%s2394_s0 + $0x138] ss:$12 sps:$4 sm:$0xff]   ;;  %v1924_v56 = vld [vmem:[%s2394_s0 + $0x154] ss:$12 sps:$4 sm:$0xff]   ;;  %v1926_v58 = vld [vmem:[%s2394_s0 + $0x150] ss:$12 sps:$4 sm:$0xff]  }
  0x1a   : > { %898 = vmatprep.subr.bf16.mxu0 %v1882_v21  ;;  %1776 = vmatprep.subr.bf16.mxu1 %v1885_v22  ;;  %v1393_v55 = vld [vmem:[%s2178_s13 + $0x18] sm:$0xff]  ;;  %v1394_v57 = vld [vmem:[%s2178_s13 + $0x20] sm:$0xff]  ;;  %v1395_v59 = vld [vmem:[%s2178_s13 + $0x28] sm:$0xff]  ;;  %v2240_v18 = vshrl.u32 %v1247_v17, 7 }
  0x1b   : > { %1408 = vperm.xlu0 %1855, %v1390_v50   ;;  %v1929_v60 = vld [vmem:[%s2122_s7 + $0x30] ss:$8 sps:$4 sm:$0xff]   ;;  %v1933_v62 = vld [vmem:[%s2122_s7 + $0x44] ss:$8 sps:$4 sm:$0xff]   ;;  %v1932_v0 = vld [vmem:[%s2394_s0 + $0x168] ss:$12 sps:$4 sm:$0xff]  }
  0x1c   : > { %1423 = vperm.xlu1 %1856, %v1393_v55   ;;  %v1930_v61 = vld [vmem:[%s2394_s0 + $0x16c] ss:$12 sps:$4 sm:$0xff]   ;;  %v1396_v63 = vld [vmem:[%s2178_s13 + $0x30] sm:$0xff]  ;;  %v1398_v2 = vld [vmem:[%s2178_s13 + $0x40] sm:$0xff]  ;;  %v1257_v19 = vsub.s32 2, %v2240_v18 }
  0x1d   : > { %899 = vmatpush1.bf16.msra.mxu0 %v1884_v23  ;;  %1777 = vmatpush3.bf16.msra.mxu1 %v1886_v25  ;;  %v1397_v1 = vld [vmem:[%s2178_s13 + $0x38] sm:$0xff]  ;;  %v1399_v3 = vld [vmem:[%s2178_s13 + $0x48] sm:$0xff]  ;;  %v1400_v6 = vld [vmem:[%s2178_s13 + $0x50] sm:$0xff] }
  0x1e   : > { %900 = vmatprep.subr.bf16.mxu0 %v1887_v24  ;;  %1778 = vmatprep.subr.bf16.mxu1 %v1890_v26  ;;  %v1935_v4 = vld [vmem:[%s2122_s7 + $0x40] ss:$8 sps:$4 sm:$0xff]   ;;  %v1936_v5 = vld [vmem:[%s2122_s7 + $0x54] ss:$8 sps:$4 sm:$0xff]   ;;  %v1938_v10 = vld [vmem:[%s2122_s7 + $0x50] ss:$8 sps:$4 sm:$0xff]  }
  0x1f   : > { %1413 = vperm.xlu0 %1855, %v1391_v53   ;;  %v1401_v7 = vld [vmem:[%s2178_s13 + $0x58] sm:$0xff]  ;;  %v1402_v8 = vld [vmem:[%s2178_s13 + $0x60] sm:$0xff]  ;;  %v1403_v9 = vld [vmem:[%s2178_s13 + $0x68] sm:$0xff] }
  0x20   : > { %1433 = vperm.xlu1 %1856, %v1395_v59   ;;  %v1939_v11 = vld [vmem:[%s2122_s7 + $0x64] ss:$8 sps:$4 sm:$0xff]   ;;  %v1404_v12 = vld [vmem:[%s2178_s13 + $0x70] sm:$0xff]  ;;  %v1405_v13 = vld [vmem:[%s2178_s13 + $0x78] sm:$0xff]  ;;  %s356_s13 = scalar_lea.vmem %s2398_s4, %s2107_s17  ;;  %s1693_s17 = sshll.u32 %s1959_s21, 3 }
  0x21   : > { %901 = vmatpush1.bf16.msra.mxu0 %v1889_v27  ;;  %1779 = vmatpush3.bf16.msra.mxu1 %v1891_v29  ;;  %v1941_v14 = vld [vmem:[%s2122_s7 + $0x60] ss:$8 sps:$4 sm:$0xff]   ;;  %v1942_v15 = vld [vmem:[%s2122_s7 + $0x74] ss:$8 sps:$4 sm:$0xff]   ;;  %v1944_v16 = vld [vmem:[%s2122_s7 + $0x70] ss:$8 sps:$4 sm:$0xff]  }
  0x22   : > { %902 = vmatprep.subr.bf16.mxu0 %v1892_v28  ;;  %1780 = vmatprep.subr.bf16.mxu1 %v1895_v30  ;;  %v2246_v20 = vld [vmem:[%s2396_s2] sm:$0x7]  ;;  %v1377_v34 = vld [vmem:[%s356_s13 + $0x18] sm:$0xff]  ;;  %p359_p5 = scmp.lt.s32.totalorder %s1693_s17, 15 }
  0x23   : > { %1428 = vperm.xlu0 %1855, %v1394_v57   ;;  %v2249_v23 = vrot.slane %v2246_v20, %v1257_v19  ;;  %v1374_v28 = vld [vmem:[%s356_s13] sm:$0xff] }
  0x24   : > { %1443 = vperm.xlu1 %1856, %v1397_v1   ;;  %s2408_s17 = smov (!%p359_p5, %s1693_s17), 15 }
  0x25   : > { %903 = vmatpush1.bf16.msra.mxu0 %v1894_v31  ;;  %1781 = vmatpush3.bf16.msra.mxu1 %v1896_v32  ;;  %v1375_v31 = vld [vmem:[%s356_s13 + $0x8] sm:$0xff]  ;;  %s1765_s21 = sshll.u32 %s2408_s17, 4 }
  0x26   : > { %904 = vmatprep.subr.bf16.mxu0 %v1897_v33  ;;  %v1376_v33 = vld [vmem:[%s356_s13 + $0x10] sm:$0xff]  ;;  %s2314_s20 = scalar_lea.vmem %s2399_s5, %s1765_s21 }
  0x27   : > { %1438 = vperm.xlu0 %1855, %v1396_v63  }
  0x28   : > { %1034 = vmatmul.mubr.bf16.vlgmr.msra.gmra.mrb[0].mxu1 %v2138_v36  ;;  %1453 = vperm.xlu1 %1856, %v1399_v3  }
  0x29   : > { %905 = vmatpush1.bf16.msra.mxu0 %v1899_v35  ;;  %1041 = vmatprep.mubr.bf16.mxu1 %v2144_v38  ;;  %v1379_v35 = vld [vmem:[%s356_s13 + $0x28] sm:$0xff] }
  0x2a   : > { %906 = vmatprep.subr.bf16.mxu0 %v1903_v37  ;;  %v2256_v37 = vld [vmem:[%s356_s13 + $0x38] sm:$0xff] }
  0x2b   : > { %1448 = vperm.xlu0 %1855, %v1398_v2  }
  0x2c   : > { %1463 = vperm.xlu1 %1856, %v1401_v7  }
  0x2d   : > { %907 = vmatpush1.bf16.msra.mxu0 %v1905_v39  ;;  %v2260_v39 = vld [vmem:[%s356_s13 + $0x48] sm:$0xff] }
  0x2e   : > { %908 = vmatprep.subr.bf16.mxu0 %v1906_v40  ;;  %v2262_v40 = vld [vmem:[%s356_s13 + $0x40] sm:$0xff] }
  0x2f   : > { %1458 = vperm.xlu0 %1855, %v1400_v6  }
  0x30   : > { %1042 = vmatmul.mubr.bf16.gmra.mrb[4].mxu1 %v2158_v42  ;;  %1473 = vperm.xlu1 %1856, %v1403_v9  }
  0x31   : > { %909 = vmatpush1.bf16.msra.mxu0 %v1908_v41  ;;  %1049 = vmatprep.mubr.bf16.mxu1 %v2164_v44 }
  0x32   : > { %910 = vmatprep.subr.bf16.mxu0 %v1912_v43  ;;  %v2265_v43 = vld [vmem:[%s356_s13 + $0x58] sm:$0xff] }
  0x33   : > { %1468 = vperm.xlu0 %1855, %v1402_v8  }
  0x34   : > { %1483 = vperm.xlu1 %1856, %v1405_v13  }
  0x35   : > { %911 = vmatpush1.bf16.msra.mxu0 %v1914_v45  ;;  %v2269_v45 = vld [vmem:[%s356_s13 + $0x68] sm:$0xff] }
  0x36   : > { %912 = vmatprep.subr.bf16.mxu0 %v1915_v46 }
  0x37   : > { %1478 = vperm.xlu0 %1855, %v1404_v12   ;;  %v1249_v12 = vsub.s32 0, %v2240_v18 }
  0x38   : > { %1050 = vmatmul.mubr.bf16.gmra.mrb[8].mxu1 %v2184_v48 }
  0x39   : > { %913 = vmatpush1.bf16.msra.mxu0 %v1917_v47  ;;  %1057 = vmatprep.mubr.bf16.mxu1 %v2192_v52  ;;  %v2277_v47 = vld [vmem:[%s356_s13 + $0x60] sm:$0xff] }
  0x3a   : > { %914 = vmatprep.subr.bf16.mxu0 %v1921_v49  ;;  %v2281_v49 = vld [vmem:[%s356_s13 + $0x70] sm:$0xff] }
  0x3d   : > { %915 = vmatpush1.bf16.msra.mxu0 %v1923_v54 }
  0x3e   : > { %916 = vmatprep.subr.bf16.mxu0 %v1924_v56 }
  0x40   : > { %1058 = vmatmul.mubr.bf16.gmra.mrb[12].mxu1 %v1929_v60 }
  0x41   : > { %917 = vmatpush1.bf16.msra.mxu0 %v1926_v58  ;;  %1065 = vmatprep.mubr.bf16.mxu1 %v1933_v62 }
  0x42   : > { %918 = vmatprep.subr.bf16.mxu0 %v1930_v61 }
  0x45   : > { %919 = vmatpush1.bf16.msra.mxu0 %v1932_v0 }
  0x48   : > { %921 = vmatmul.mubr.bf16.vlgmr.msra.gmra.mrb[0].mxu0 %v2138_v36  ;;  %1066 = vmatmul.mubr.bf16.gmra.mrb[16].mxu1 %v1935_v4  ;;  %v1378_v36 = vld [vmem:[%s356_s13 + $0x20] sm:$0xff] }
  0x49   : > { %930 = vmatprep.mubr.bf16.mxu0 %v2144_v38  ;;  %1073 = vmatprep.mubr.bf16.mxu1 %v1936_v5  ;;  %v2258_v38 = vld [vmem:[%s356_s13 + $0x30] sm:$0xff] }
  0x50   : > { %931 = vmatmul.mubr.bf16.gmra.mrb[4].mxu0 %v2158_v42  ;;  %1074 = vmatmul.mubr.bf16.gmra.mrb[20].mxu1 %v1938_v10 }
  0x51   : > { %940 = vmatprep.mubr.bf16.mxu0 %v2164_v44  ;;  %1081 = vmatprep.mubr.bf16.mxu1 %v1939_v11  ;;  %v2267_v44 = vld [vmem:[%s356_s13 + $0x50] sm:$0xff] }
  0x58   : > { %941 = vmatmul.mubr.bf16.gmra.mrb[8].mxu0 %v2184_v48  ;;  %1082 = vmatmul.mubr.bf16.gmra.mrb[24].mxu1 %v1941_v14  ;;  %v2279_v48 = vld [vmem:[%s356_s13 + $0x78] sm:$0xff] }
  0x59   : > { %950 = vmatprep.mubr.bf16.mxu0 %v2192_v52  ;;  %1089 = vmatprep.mubr.bf16.mxu1 %v1942_v15 }
  0x60   : > { %951 = vmatmul.mubr.bf16.gmra.mrb[12].mxu0 %v1929_v60  ;;  %1090 = vmatmul.mubr.bf16.gmra.mrb[28].mxu1 %v1944_v16 }
  0x61   : > { %960 = vmatprep.mubr.bf16.mxu0 %v1933_v62 }
  0x68   : > { %961 = vmatmul.mubr.bf16.gmra.mrb[16].mxu0 %v1935_v4 }
  0x69   : > { %970 = vmatprep.mubr.bf16.mxu0 %v1936_v5 }
  0x70   : > { %971 = vmatmul.mubr.bf16.gmra.mrb[20].mxu0 %v1938_v10 }
  0x71   : > { %980 = vmatprep.mubr.bf16.mxu0 %v1939_v11 }
  0x78   : > { %981 = vmatmul.mubr.bf16.gmra.mrb[24].mxu0 %v1941_v14  ;;  %v1253_v14 = vsub.s32 1, %v2240_v18 }
  0x79   : > { %990 = vmatprep.mubr.bf16.mxu0 %v1942_v15 }
  0x80   : > { %991 = vmatmul.mubr.bf16.gmra.mrb[28].mxu0 %v1944_v16 }
  0x97   : > { %v1419_v46 = vpop.permute.xlu1 %1418 }
  0x9a   : > { %v1409_v21 = vpop.permute.xlu0 %1408 }
  0x9b   : > { %v1424_v60 = vpop.permute.xlu1 %1423 }
  0x9e   : > { %v1414_v32 = vpop.permute.xlu0 %1413 }
  0x9f   : > { %v1434_v13 = vpop.permute.xlu1 %1433 }
  0xa2   : > { %v1429_v9 = vpop.permute.xlu0 %1428 }
  0xa6   : > { %v1439_v18 = vpop.permute.xlu0 %1438 }
  0xfb   : > { %v1782_v22 = vpop.f32.mrb[0].mxu1 }
  0xfc   : > { %v1783_v24 = vpop.f32.mrb[1].mxu1 }
  0xfd   : > { %v1784_v25 = vadd.f32 %v1783_v24, %v1782_v22  ;;  %v1785_v26 = vpop.f32.mrb[2].mxu1 }
  0xfe   : > { %v1786_v27 = vpop.f32.mrb[3].mxu1 }
  0xff   : > { %v1264_v29 = vadd.f32 %v1784_v25, %v2249_v23  ;;  %v1787_v30 = vadd.f32 %v1786_v27, %v1785_v26  ;;  %v2296_v25 = vrot.slane %v2246_v20, %v1249_v12  ;;  %v2299_v27 = vrot.slane %v2246_v20, %v1253_v14 }
 0x101   : > { %v1486_v41 = vmul.f32 %v1409_v21, %v1264_v29  ;;  %v1267_v42 = vadd.f32 %v1787_v30, %v2249_v23 }
 0x103   : > { %v1502_v50 = vadd.f32 %v1486_v41, %v1374_v28  ;;  %v1487_v51 = vmul.f32 %v1414_v32, %v1267_v42  ;;  %v1788_v52 = vpop.f32.mrb[4].mxu1 }
 0x104   : > { %v1789_v53 = vpop.f32.mrb[5].mxu1 }
 0x105   : > { %v1503_v54 = vadd.f32 %v1487_v51, %v1375_v31  ;;  %v1790_v55 = vadd.f32 %v1789_v53, %v1788_v52  ;;  %v1791_v56 = vpop.f32.mrb[6].mxu1  ;;  %1518 = vst [vmem:[%s2275_s16] sm:$0xff] %v1502_v50 }
 0x106   : > { %v1792_v57 = vpop.f32.mrb[7].mxu1 }
 0x107   : > { %v1270_v58 = vadd.f32 %v1790_v55, %v2249_v23  ;;  %v1793_v59 = vadd.f32 %v1792_v57, %v1791_v56  ;;  %1519 = vst [vmem:[%s2275_s16 + $0x8] sm:$0xff] %v1503_v54 }
 0x109   : > { %v1488_v61 = vmul.f32 %v1419_v46, %v1270_v58  ;;  %v1273_v62 = vadd.f32 %v1793_v59, %v2249_v23 }
 0x10b   : > { %v1504_v63 = vadd.f32 %v1488_v61, %v1376_v33  ;;  %v1794_v0 = vpop.f32.mrb[8].mxu1  ;;  %v1489_v1 = vmul.f32 %v1424_v60, %v1273_v62 }
 0x10c   : > { %v1795_v2 = vpop.f32.mrb[9].mxu1 }
 0x10d   : > { %v1796_v3 = vadd.f32 %v1795_v2, %v1794_v0  ;;  %v1797_v4 = vpop.f32.mrb[10].mxu1  ;;  %v1505_v5 = vadd.f32 %v1489_v1, %v1377_v34  ;;  %1520 = vst [vmem:[%s2275_s16 + $0x10] sm:$0xff] %v1504_v63  ;;  %v1449_v0 = vpop.permute.xlu0 %1448 }
 0x10e   : > { %v1798_v6 = vpop.f32.mrb[11].mxu1 }
 0x10f   : > { %v1799_v7 = vadd.f32 %v1798_v6, %v1797_v4  ;;  %v1276_v8 = vadd.f32 %v1796_v3, %v2249_v23  ;;  %1521 = vst [vmem:[%s2275_s16 + $0x18] sm:$0xff] %v1505_v5 }
 0x111   : > { %v1279_v10 = vadd.f32 %v1799_v7, %v2249_v23  ;;  %v1490_v11 = vmul.f32 %v1429_v9, %v1276_v8 }
 0x113   : > { %v1800_v15 = vpop.f32.mrb[12].mxu1  ;;  %v1491_v16 = vmul.f32 %v1434_v13, %v1279_v10  ;;  %v1506_v17 = vadd.f32 %v1490_v11, %v1378_v36 }
 0x114   : > { %v1801_v19 = vpop.f32.mrb[13].mxu1 }
 0x115   : > { %v1802_v21 = vadd.f32 %v1801_v19, %v1800_v15  ;;  %v1803_v22 = vpop.f32.mrb[14].mxu1  ;;  %v1507_v24 = vadd.f32 %v1491_v16, %v1379_v35  ;;  %1522 = vst [vmem:[%s2275_s16 + $0x20] sm:$0xff] %v1506_v17  ;;  %v1444_v35 = vpop.permute.xlu1 %1443 }
 0x116   : > { %v1804_v26 = vpop.f32.mrb[15].mxu1 }
 0x117   : > { %v1805_v28 = vadd.f32 %v1804_v26, %v1803_v22  ;;  %v1282_v29 = vadd.f32 %v1802_v21, %v2249_v23  ;;  %1523 = vst [vmem:[%s2275_s16 + $0x28] sm:$0xff] %v1507_v24 }
 0x119   : > { %v1285_v31 = vadd.f32 %v1805_v28, %v2249_v23  ;;  %v1492_v32 = vmul.f32 %v1439_v18, %v1282_v29  ;;  %v1454_v6 = vpop.permute.xlu1 %1453 }
 0x11b   : > { %v922_v30 = vpop.f32.mrb[0].mxu0  ;;  %v1806_v20 = vpop.f32.mrb[16].mxu1  ;;  %v1493_v42 = vmul.f32 %v1444_v35, %v1285_v31  ;;  %v1508_v46 = vadd.f32 %v1492_v32, %v2258_v38 }
 0x11c   : > { %v1262_v33 = vadd.f32 %v2296_v25, %v922_v30  ;;  %v924_v34 = vpop.f32.mrb[1].mxu0  ;;  %v1807_v52 = vpop.f32.mrb[17].mxu1 }
 0x11d   : > { %v1263_v36 = vadd.f32 %v2299_v27, %v924_v34  ;;  %v926_v41 = vpop.f32.mrb[2].mxu0  ;;  %v1808_v54 = vadd.f32 %v1807_v52, %v1806_v20  ;;  %v1809_v55 = vpop.f32.mrb[18].mxu1  ;;  %v1509_v56 = vadd.f32 %v1493_v42, %v2256_v37  ;;  %1524 = vst [vmem:[%s2275_s16 + $0x30] sm:$0xff] %v1508_v46 }
 0x11e   : > { %v1265_v50 = vadd.f32 %v2296_v25, %v926_v41  ;;  %v928_v51 = vpop.f32.mrb[3].mxu0  ;;  %v1310_v57 = vmax.f32 %v1262_v33, 0.0  ;;  %v1810_v59 = vpop.f32.mrb[19].mxu1 }
 0x11f   : > { %v1266_v53 = vadd.f32 %v2299_v27, %v928_v51  ;;  %v1311_v60 = vmax.f32 %v1263_v36, 0.0  ;;  %v1811_v61 = vadd.f32 %v1810_v59, %v1809_v55  ;;  %v1288_v62 = vadd.f32 %v1808_v54, %v2249_v23  ;;  %1525 = vst [vmem:[%s2275_s16 + $0x38] sm:$0xff] %v1509_v56  ;;  %v1459_v30 = vpop.permute.xlu0 %1458  ;;  %v1464_v36 = vpop.permute.xlu1 %1463 }
 0x120   : > { %v1312_v58 = vmax.f32 %v1265_v50, 0.0 }
 0x121   : > { %v1313_v38 = vmax.f32 %v1266_v53, 0.0  ;;  %v1291_v2 = vadd.f32 %v1811_v61, %v2249_v23  ;;  %v1494_v3 = vmul.f32 %v1449_v0, %v1288_v62 }
 0x122   : > { %v1342_v63 = vpack.c.bf16 %v1312_v58, %v1310_v57 }
 0x123   : > { %v1343_v37 = vpack.c.bf16 %v1313_v38, %v1311_v60  ;;  %v932_v1 = vpop.f32.mrb[4].mxu0  ;;  %v1812_v9 = vpop.f32.mrb[20].mxu1  ;;  %v1495_v10 = vmul.f32 %v1454_v6, %v1291_v2  ;;  %v1510_v11 = vadd.f32 %v1494_v3, %v2262_v40 }
 0x124   : > { %1358 = vst [vmem:[%s2314_s20] sm:$0xff] %v1342_v63  ;;  %v1268_v4 = vadd.f32 %v2296_v25, %v932_v1  ;;  %v934_v5 = vpop.f32.mrb[5].mxu0  ;;  %v1813_v14 = vpop.f32.mrb[21].mxu1 }
 0x125   : > { %1359 = vst [vmem:[%s2314_s20 + $0x8] sm:$0xff] %v1343_v37  ;;  %v1269_v7 = vadd.f32 %v2299_v27, %v934_v5  ;;  %v936_v8 = vpop.f32.mrb[6].mxu0  ;;  %v1814_v16 = vadd.f32 %v1813_v14, %v1812_v9  ;;  %v1815_v17 = vpop.f32.mrb[22].mxu1  ;;  %v1511_v19 = vadd.f32 %v1495_v10, %v2260_v39  ;;  %1526 = vst [vmem:[%s2275_s16 + $0x40] sm:$0xff] %v1510_v11 }
 0x126   : > { %v1271_v12 = vadd.f32 %v2296_v25, %v936_v8  ;;  %v938_v13 = vpop.f32.mrb[7].mxu0  ;;  %v1314_v21 = vmax.f32 %v1268_v4, 0.0  ;;  %v1816_v24 = vpop.f32.mrb[23].mxu1 }
 0x127   : > { %v1272_v15 = vadd.f32 %v2299_v27, %v938_v13  ;;  %v1315_v26 = vmax.f32 %v1269_v7, 0.0  ;;  %v1817_v40 = vadd.f32 %v1816_v24, %v1815_v17  ;;  %v1294_v29 = vadd.f32 %v1814_v16, %v2249_v23  ;;  %1527 = vst [vmem:[%s2275_s16 + $0x48] sm:$0xff] %v1511_v19  ;;  %v1469_v0 = vpop.permute.xlu0 %1468  ;;  %v1474_v5 = vpop.permute.xlu1 %1473 }
 0x128   : > { %v1316_v22 = vmax.f32 %v1271_v12, 0.0 }
 0x129   : > { %v1317_v28 = vmax.f32 %v1272_v15, 0.0  ;;  %v1297_v33 = vadd.f32 %v1817_v40, %v2249_v23  ;;  %v1496_v34 = vmul.f32 %v1459_v30, %v1294_v29 }
 0x12a   : > { %v1344_v18 = vpack.c.bf16 %v1316_v22, %v1314_v21 }
 0x12b   : > { %v1345_v31 = vpack.c.bf16 %v1317_v28, %v1315_v26  ;;  %v942_v32 = vpop.f32.mrb[8].mxu0  ;;  %v1818_v42 = vpop.f32.mrb[24].mxu1  ;;  %v1497_v46 = vmul.f32 %v1464_v36, %v1297_v33  ;;  %v1512_v50 = vadd.f32 %v1496_v34, %v2267_v44 }
 0x12c   : > { %1360 = vst [vmem:[%s2314_s20 + $0x10] sm:$0xff] %v1344_v18  ;;  %v1274_v39 = vadd.f32 %v2296_v25, %v942_v32  ;;  %v944_v35 = vpop.f32.mrb[9].mxu0  ;;  %v1819_v53 = vpop.f32.mrb[25].mxu1 }
 0x12d   : > { %1361 = vst [vmem:[%s2314_s20 + $0x18] sm:$0xff] %v1345_v31  ;;  %v1275_v41 = vadd.f32 %v2299_v27, %v944_v35  ;;  %v946_v20 = vpop.f32.mrb[10].mxu0  ;;  %v1820_v55 = vadd.f32 %v1819_v53, %v1818_v42  ;;  %v1821_v56 = vpop.f32.mrb[26].mxu1  ;;  %v1513_v57 = vadd.f32 %v1497_v46, %v2265_v43  ;;  %1528 = vst [vmem:[%s2275_s16 + $0x50] sm:$0xff] %v1512_v50 }
 0x12e   : > { %v1277_v51 = vadd.f32 %v2296_v25, %v946_v20  ;;  %v948_v52 = vpop.f32.mrb[11].mxu0  ;;  %v1318_v58 = vmax.f32 %v1274_v39, 0.0  ;;  %v1822_v60 = vpop.f32.mrb[27].mxu1 }
 0x12f   : > { %v1278_v54 = vadd.f32 %v2299_v27, %v948_v52  ;;  %v1319_v38 = vmax.f32 %v1275_v41, 0.0  ;;  %v1823_v44 = vadd.f32 %v1822_v60, %v1821_v56  ;;  %v1300_v62 = vadd.f32 %v1820_v55, %v2249_v23  ;;  %1529 = vst [vmem:[%s2275_s16 + $0x58] sm:$0xff] %v1513_v57  ;;  %v1479_v24 = vpop.permute.xlu0 %1478  ;;  %v1484_v18 = vpop.permute.xlu1 %1483 }
 0x130   : > { %v1320_v59 = vmax.f32 %v1277_v51, 0.0 }
 0x131   : > { %v1321_v61 = vmax.f32 %v1278_v54, 0.0  ;;  %v1303_v2 = vadd.f32 %v1823_v44, %v2249_v23  ;;  %v1498_v3 = vmul.f32 %v1469_v0, %v1300_v62 }
 0x132   : > { %v1346_v63 = vpack.c.bf16 %v1320_v59, %v1318_v58 }
 0x133   : > { %v1347_v37 = vpack.c.bf16 %v1321_v61, %v1319_v38  ;;  %v952_v1 = vpop.f32.mrb[12].mxu0  ;;  %v1824_v8 = vpop.f32.mrb[28].mxu1  ;;  %v1499_v9 = vmul.f32 %v1474_v5, %v1303_v2  ;;  %v1514_v10 = vadd.f32 %v1498_v3, %v2277_v47 }
 0x134   : > { %1362 = vst [vmem:[%s2314_s20 + $0x20] sm:$0xff] %v1346_v63  ;;  %v1280_v43 = vadd.f32 %v2296_v25, %v952_v1  ;;  %v954_v4 = vpop.f32.mrb[13].mxu0  ;;  %v1825_v13 = vpop.f32.mrb[29].mxu1 }
 0x135   : > { %1363 = vst [vmem:[%s2314_s20 + $0x28] sm:$0xff] %v1347_v37  ;;  %v1281_v6 = vadd.f32 %v2299_v27, %v954_v4  ;;  %v956_v7 = vpop.f32.mrb[14].mxu0  ;;  %v1826_v15 = vadd.f32 %v1825_v13, %v1824_v8  ;;  %v1827_v16 = vpop.f32.mrb[30].mxu1  ;;  %v1515_v17 = vadd.f32 %v1499_v9, %v2269_v45  ;;  %1530 = vst [vmem:[%s2275_s16 + $0x60] sm:$0xff] %v1514_v10 }
 0x136   : > { %v1283_v11 = vadd.f32 %v2296_v25, %v956_v7  ;;  %v958_v12 = vpop.f32.mrb[15].mxu0  ;;  %v1322_v19 = vmax.f32 %v1280_v43, 0.0  ;;  %v1828_v22 = vpop.f32.mrb[31].mxu1 }
 0x137   : > { %v1284_v14 = vadd.f32 %v2299_v27, %v958_v12  ;;  %v1323_v26 = vmax.f32 %v1281_v6, 0.0  ;;  %v1829_v28 = vadd.f32 %v1828_v22, %v1827_v16  ;;  %v1306_v40 = vadd.f32 %v1826_v15, %v2249_v23  ;;  %1531 = vst [vmem:[%s2275_s16 + $0x68] sm:$0xff] %v1515_v17 }
 0x138   : > { %v1324_v21 = vmax.f32 %v1283_v11, 0.0 }
 0x139   : > { %v1325_v47 = vmax.f32 %v1284_v14, 0.0  ;;  %v1309_v45 = vadd.f32 %v1829_v28, %v2249_v23  ;;  %v1500_v32 = vmul.f32 %v1479_v24, %v1306_v40 }
 0x13a   : > { %v1348_v29 = vpack.c.bf16 %v1324_v21, %v1322_v19 }
 0x13b   : > { %v1349_v30 = vpack.c.bf16 %v1325_v47, %v1323_v26  ;;  %v962_v31 = vpop.f32.mrb[16].mxu0  ;;  %v1501_v39 = vmul.f32 %v1484_v18, %v1309_v45  ;;  %v1516_v35 = vadd.f32 %v1500_v32, %v2281_v49 }
 0x13c   : > { %1364 = vst [vmem:[%s2314_s20 + $0x30] sm:$0xff] %v1348_v29  ;;  %v1286_v33 = vadd.f32 %v2296_v25, %v962_v31  ;;  %v964_v34 = vpop.f32.mrb[17].mxu0 }
 0x13d   : > { %1365 = vst [vmem:[%s2314_s20 + $0x38] sm:$0xff] %v1349_v30  ;;  %v1287_v36 = vadd.f32 %v2299_v27, %v964_v34  ;;  %v966_v41 = vpop.f32.mrb[18].mxu0  ;;  %v1517_v23 = vadd.f32 %v1501_v39, %v2279_v48  ;;  %1532 = vst [vmem:[%s2275_s16 + $0x70] sm:$0xff] %v1516_v35 }
 0x13e   : > { %v1289_v20 = vadd.f32 %v2296_v25, %v966_v41  ;;  %v968_v42 = vpop.f32.mrb[19].mxu0  ;;  %v1326_v50 = vmax.f32 %v1286_v33, 0.0 }
 0x13f   : > { %v1290_v46 = vadd.f32 %v2299_v27, %v968_v42  ;;  %1533 = vst [vmem:[%s2275_s16 + $0x78] sm:$0xff] %v1517_v23  ;;  %v1327_v52 = vmax.f32 %v1287_v36, 0.0 }
 0x140   : > { %v1328_v51 = vmax.f32 %v1289_v20, 0.0 }
 0x141   : > { %v1329_v53 = vmax.f32 %v1290_v46, 0.0 }
 0x142   : > { %v1350_v54 = vpack.c.bf16 %v1328_v51, %v1326_v50 }
 0x143   : > { %v1351_v49 = vpack.c.bf16 %v1329_v53, %v1327_v52  ;;  %v972_v55 = vpop.f32.mrb[20].mxu0 }
 0x144   : > { %1366 = vst [vmem:[%s2314_s20 + $0x40] sm:$0xff] %v1350_v54  ;;  %v1292_v56 = vadd.f32 %v2296_v25, %v972_v55  ;;  %v974_v57 = vpop.f32.mrb[21].mxu0 }
 0x145   : > { %1367 = vst [vmem:[%s2314_s20 + $0x48] sm:$0xff] %v1351_v49  ;;  %v1293_v48 = vadd.f32 %v2299_v27, %v974_v57  ;;  %v976_v58 = vpop.f32.mrb[22].mxu0 }
 0x146   : > { %v1295_v59 = vadd.f32 %v2296_v25, %v976_v58  ;;  %v978_v60 = vpop.f32.mrb[23].mxu0  ;;  %v1330_v61 = vmax.f32 %v1292_v56, 0.0 }
 0x147   : > { %v1296_v38 = vadd.f32 %v2299_v27, %v978_v60  ;;  %v1331_v62 = vmax.f32 %v1293_v48, 0.0 }
 0x148   : > { %v1332_v44 = vmax.f32 %v1295_v59, 0.0 }
 0x149   : > { %v1333_v63 = vmax.f32 %v1296_v38, 0.0 }
 0x14a   : > { %v1352_v0 = vpack.c.bf16 %v1332_v44, %v1330_v61 }
 0x14b   : > { %v1353_v37 = vpack.c.bf16 %v1333_v63, %v1331_v62  ;;  %v982_v1 = vpop.f32.mrb[24].mxu0 }
 0x14c   : > { %1368 = vst [vmem:[%s2314_s20 + $0x50] sm:$0xff] %v1352_v0  ;;  %v1298_v2 = vadd.f32 %v2296_v25, %v982_v1  ;;  %v984_v3 = vpop.f32.mrb[25].mxu0 }
 0x14d   : > { %1369 = vst [vmem:[%s2314_s20 + $0x58] sm:$0xff] %v1353_v37  ;;  %v1299_v43 = vadd.f32 %v2299_v27, %v984_v3  ;;  %v986_v4 = vpop.f32.mrb[26].mxu0 }
 0x14e   : > { %v1301_v5 = vadd.f32 %v2296_v25, %v986_v4  ;;  %v988_v6 = vpop.f32.mrb[27].mxu0  ;;  %v1334_v8 = vmax.f32 %v1298_v2, 0.0 }
 0x14f   : > { %v1302_v7 = vadd.f32 %v2299_v27, %v988_v6  ;;  %v1335_v10 = vmax.f32 %v1299_v43, 0.0 }
 0x150   : > { %v1336_v9 = vmax.f32 %v1301_v5, 0.0 }
 0x151   : > { %v1337_v11 = vmax.f32 %v1302_v7, 0.0 }
 0x152   : > { %v1354_v12 = vpack.c.bf16 %v1336_v9, %v1334_v8 }
 0x153   : > { %v1355_v13 = vpack.c.bf16 %v1337_v11, %v1335_v10  ;;  %v992_v14 = vpop.f32.mrb[28].mxu0 }
 0x154   : > { %1370 = vst [vmem:[%s2314_s20 + $0x60] sm:$0xff] %v1354_v12  ;;  %v1304_v15 = vadd.f32 %v2296_v25, %v992_v14  ;;  %v994_v16 = vpop.f32.mrb[29].mxu0 }
 0x155   : > { %1371 = vst [vmem:[%s2314_s20 + $0x68] sm:$0xff] %v1355_v13  ;;  %v1305_v17 = vadd.f32 %v2299_v27, %v994_v16  ;;  %v996_v19 = vpop.f32.mrb[30].mxu0 }
 0x156   : > { %v1307_v21 = vadd.f32 %v2296_v25, %v996_v19  ;;  %v998_v22 = vpop.f32.mrb[31].mxu0  ;;  %v1338_v26 = vmax.f32 %v1304_v15, 0.0 }
 0x157   : > { %v1308_v24 = vadd.f32 %v2299_v27, %v998_v22  ;;  %v1339_v28 = vmax.f32 %v1305_v17, 0.0 }
 0x158   : > { %v1340_v47 = vmax.f32 %v1307_v21, 0.0 }
 0x159   : > { %v1341_v40 = vmax.f32 %v1308_v24, 0.0 }
 0x15a   : > { %v1356_v29 = vpack.c.bf16 %v1340_v47, %v1338_v26 }
 0x15b   : > { %v1357_v18 = vpack.c.bf16 %v1341_v40, %v1339_v28 }
 0x15c   : > { %1372 = vst [vmem:[%s2314_s20 + $0x70] sm:$0xff] %v1356_v29 }
 0x15d   : > { %1373 = vst [vmem:[%s2314_s20 + $0x78] sm:$0xff] %v1357_v18 }
 0x15e PF: > { %s17_s23 = sadd.s32 1, %s1967_s23   ;;  %s2401_s21 = smov %s1963_s22 }
 0x15f   : > { %p14_p6 = scmp.ge.s32.totalorder %s17_s23, 4   ;;  %s2402_s22 = smov %s2404_s24 }
 0x161   :  { %16 = sbr.rel (!%p14_p6) target bundleno = 2 (0x2), region = 99 }

// kernel: moe_ogb_forward.4
= control target key start
LH: loop header
LB: loop body
LE: loop exit
PB: predicated region body
PF: predicated region fallthrough
CT: control target
= control target key end

     0   :  { %s2200_s21 = smov 0   ;;  %s2202_s22 = smov 0   ;;  %s2661_s0 = inlined_call_operand.vmem [shape: bf16[256,512], index: 0, kind: input, shape index: {}]   ;;  %s2662_s1 = inlined_call_operand.vmem [shape: bf16[256,256], index: 1, kind: input, shape index: {}]   ;;  %s2663_s2 = inlined_call_operand.vmem [shape: f32[1,512], index: 2, kind: input, shape index: {}]   ;;  %s2664_s3 = inlined_call_operand.vmem [shape: f32[256,1], index: 3, kind: input, shape index: {}]   ;;  %s2665_s4 = inlined_call_operand.vmem [shape: f32[256,128], index: 4, kind: input, shape index: {}, may-alias: {4,6}]   ;;  %s2666_s5 = inlined_call_operand.vmem [shape: bf16[256,384], index: 5, kind: output, shape index: {0}]   ;;  %s2667_s6 = inlined_call_operand.vmem [shape: f32[256,128], index: 6, kind: output, shape index: {1}, may-alias: {4,6}]  }
   0x1   :  { %s2204_s23 = smov 0  }
   0x2 LB: > { %s29_s24 = sadd.s32 1, %s2158_s22  ;;  %p1897_p0 = scmp.ge.s32.totalorder %s2162_s23, 1  ;;  %s2162_s23 = sphi %s2204_s23, %s17_s23   ;;  %s2158_s22 = sphi %s2202_s22, %s2669_s22   ;;  %s2154_s21 = sphi %s2200_s21, %s2668_s21  }
   0x3   : > { %p31_p1 = scmp.ge.s32.totalorder %s29_s24, 2  ;;  %p270_p2 = scmp.lt.s32.totalorder %s2162_s23, 3 }
   0x5   : > { %s2671_s24 = smov (%p31_p1, %s29_s24), 0  ;;  %p271_p3 = pnand %p1897_p0, %p270_p2 }
   0x6   : > { %v2020_v0 = vld [vmem:[%s2661_s0 + $0x4] ss:$16 sps:$4 sm:$0xff] (!%p271_p3)   ;;  %v2022_v1 = vld [vmem:[%s2661_s0 + $0xc] ss:$16 sps:$4 sm:$0xff] (!%p271_p3)   ;;  %v2164_v2 = vmov (!%p271_p3), 0   ;;  %s1898_s25 = sshll.u32 (!%p271_p3), %s2154_s21, 4 }
   0x7   : > { %274 = sbr.rel (%p271_p3) target bundleno = 350 (0x15e), region = 40  ;;  %2018 = vset.pattern.permute.xlu0 (!%p271_p3), %v2164_v2  ;;  %2019 = vset.pattern.permute.xlu1 (!%p271_p3), %v2164_v2  ;;  %v2024_v3 = vld [vmem:[%s2661_s0] ss:$16 sps:$4 sm:$0xff] (!%p271_p3)   ;;  %v2025_v4 = vld [vmem:[%s2661_s0 + $0x8] ss:$16 sps:$4 sm:$0xff] (!%p271_p3)   ;;  %p336_p4 = scmp.lt.s32.totalorder (!%p271_p3), %s1898_s25, 31 }
   0x8   : > { %983 = vmatprep.subr.bf16.mxu0 (!%p271_p3), %v2020_v0  ;;  %1096 = vmatprep.subr.bf16.mxu1 (!%p271_p3), %v2022_v1  ;;  %v2026_v5 = vld [vmem:[%s2661_s0 + $0x24] ss:$16 sps:$4 sm:$0xff] (!%p271_p3)   ;;  %v2028_v6 = vld [vmem:[%s2661_s0 + $0x2c] ss:$16 sps:$4 sm:$0xff] (!%p271_p3)   ;;  %v2030_v7 = vld [vmem:[%s2661_s0 + $0x20] ss:$16 sps:$4 sm:$0xff] (!%p271_p3)  }
   0x9   : > { %984 = vmatpush1.bf16.msra.mxu0 (!%p271_p3), %v2024_v3  ;;  %1097 = vmatpush1.bf16.msra.mxu1 (!%p271_p3), %v2025_v4  ;;  %v2031_v8 = vld [vmem:[%s2661_s0 + $0x28] ss:$16 sps:$4 sm:$0xff] (!%p271_p3)   ;;  %v2032_v9 = vld [vmem:[%s2661_s0 + $0x44] ss:$16 sps:$4 sm:$0xff] (!%p271_p3)   ;;  %v2034_v10 = vld [vmem:[%s2661_s0 + $0x4c] ss:$16 sps:$4 sm:$0xff] (!%p271_p3)  }
   0xa   : > { %985 = vmatprep.subr.bf16.mxu0 (!%p271_p3), %v2026_v5  ;;  %1098 = vmatprep.subr.bf16.mxu1 (!%p271_p3), %v2028_v6  ;;  %v2036_v11 = vld [vmem:[%s2661_s0 + $0x40] ss:$16 sps:$4 sm:$0xff] (!%p271_p3)   ;;  %v2037_v12 = vld [vmem:[%s2661_s0 + $0x48] ss:$16 sps:$4 sm:$0xff] (!%p271_p3)   ;;  %v2038_v13 = vld [vmem:[%s2661_s0 + $0x64] ss:$16 sps:$4 sm:$0xff] (!%p271_p3)  }
   0xb   : > { %v2040_v14 = vld [vmem:[%s2661_s0 + $0x6c] ss:$16 sps:$4 sm:$0xff] (!%p271_p3)   ;;  %v2042_v15 = vld [vmem:[%s2661_s0 + $0x60] ss:$16 sps:$4 sm:$0xff] (!%p271_p3)   ;;  %v2043_v16 = vld [vmem:[%s2661_s0 + $0x68] ss:$16 sps:$4 sm:$0xff] (!%p271_p3)  }
   0xc   : > { %v2044_v17 = vld [vmem:[%s2661_s0 + $0x84] ss:$16 sps:$4 sm:$0xff] (!%p271_p3)   ;;  %v2046_v18 = vld [vmem:[%s2661_s0 + $0x8c] ss:$16 sps:$4 sm:$0xff] (!%p271_p3)   ;;  %v2048_v19 = vld [vmem:[%s2661_s0 + $0x80] ss:$16 sps:$4 sm:$0xff] (!%p271_p3)  }
   0xd   : > { %986 = vmatpush1.bf16.msra.mxu0 (!%p271_p3), %v2030_v7  ;;  %1099 = vmatpush1.bf16.msra.mxu1 (!%p271_p3), %v2031_v8  ;;  %v2049_v20 = vld [vmem:[%s2661_s0 + $0x88] ss:$16 sps:$4 sm:$0xff] (!%p271_p3)   ;;  %v2050_v21 = vld [vmem:[%s2661_s0 + $0xa4] ss:$16 sps:$4 sm:$0xff] (!%p271_p3)   ;;  %v2052_v22 = vld [vmem:[%s2661_s0 + $0xac] ss:$16 sps:$4 sm:$0xff] (!%p271_p3)  }
   0xe   : > { %987 = vmatprep.subr.bf16.mxu0 %v2032_v9  ;;  %1100 = vmatprep.subr.bf16.mxu1 %v2034_v10  ;;  %v2054_v23 = vld [vmem:[%s2661_s0 + $0xa0] ss:$16 sps:$4 sm:$0xff]   ;;  %v2055_v24 = vld [vmem:[%s2661_s0 + $0xa8] ss:$16 sps:$4 sm:$0xff]   ;;  %v2056_v25 = vld [vmem:[%s2661_s0 + $0xc4] ss:$16 sps:$4 sm:$0xff]  }
   0xf   : > { %v2058_v26 = vld [vmem:[%s2661_s0 + $0xcc] ss:$16 sps:$4 sm:$0xff]   ;;  %v2060_v27 = vld [vmem:[%s2661_s0 + $0xc0] ss:$16 sps:$4 sm:$0xff]   ;;  %v2061_v28 = vld [vmem:[%s2661_s0 + $0xc8] ss:$16 sps:$4 sm:$0xff]  }
  0x10   : > { %v2062_v29 = vld [vmem:[%s2661_s0 + $0xe4] ss:$16 sps:$4 sm:$0xff]   ;;  %v2064_v30 = vld [vmem:[%s2661_s0 + $0xec] ss:$16 sps:$4 sm:$0xff]   ;;  %v2066_v31 = vld [vmem:[%s2661_s0 + $0xe0] ss:$16 sps:$4 sm:$0xff]  }
  0x11   : > { %988 = vmatpush1.bf16.msra.mxu0 %v2036_v11  ;;  %1101 = vmatpush1.bf16.msra.mxu1 %v2037_v12  ;;  %v2067_v32 = vld [vmem:[%s2661_s0 + $0xe8] ss:$16 sps:$4 sm:$0xff]   ;;  %v2068_v33 = vld [vmem:[%s2661_s0 + $0x104] ss:$16 sps:$4 sm:$0xff]   ;;  %v2070_v34 = vld [vmem:[%s2661_s0 + $0x10c] ss:$16 sps:$4 sm:$0xff]  }
  0x12   : > { %989 = vmatprep.subr.bf16.mxu0 %v2038_v13  ;;  %1102 = vmatprep.subr.bf16.mxu1 %v2040_v14  ;;  %v2072_v35 = vld [vmem:[%s2661_s0 + $0x100] ss:$16 sps:$4 sm:$0xff]   ;;  %v2073_v36 = vld [vmem:[%s2661_s0 + $0x108] ss:$16 sps:$4 sm:$0xff]   ;;  %v2074_v37 = vld [vmem:[%s2661_s0 + $0x124] ss:$16 sps:$4 sm:$0xff]  }
  0x13   : > { %v2076_v38 = vld [vmem:[%s2661_s0 + $0x12c] ss:$16 sps:$4 sm:$0xff]   ;;  %s2673_s25 = smov (!%p336_p4, %s1898_s25), 31  ;;  %v2078_v39 = vld [vmem:[%s2661_s0 + $0x120] ss:$16 sps:$4 sm:$0xff]  }
  0x14   : > { %v2079_v40 = vld [vmem:[%s2661_s0 + $0x128] ss:$16 sps:$4 sm:$0xff]   ;;  %v2080_v41 = vld [vmem:[%s2661_s0 + $0x144] ss:$16 sps:$4 sm:$0xff]   ;;  %v2082_v42 = vld [vmem:[%s2661_s0 + $0x14c] ss:$16 sps:$4 sm:$0xff]  }
  0x15   : > { %990 = vmatpush1.bf16.msra.mxu0 %v2042_v15  ;;  %1103 = vmatpush1.bf16.msra.mxu1 %v2043_v16  ;;  %s2347_s7 = sshll.u32 %s2673_s25, 3  ;;  %v2084_v43 = vld [vmem:[%s2661_s0 + $0x140] ss:$16 sps:$4 sm:$0xff]   ;;  %v2085_v44 = vld [vmem:[%s2661_s0 + $0x148] ss:$16 sps:$4 sm:$0xff]  }
  0x16   : > { %991 = vmatprep.subr.bf16.mxu0 %v2044_v17  ;;  %1104 = vmatprep.subr.bf16.mxu1 %v2046_v18  ;;  %v2086_v45 = vld [vmem:[%s2661_s0 + $0x164] ss:$16 sps:$4 sm:$0xff]   ;;  %s2362_s25 = scalar_lea.vmem %s2662_s1, %s2347_s7  ;;  %v2088_v46 = vld [vmem:[%s2661_s0 + $0x16c] ss:$16 sps:$4 sm:$0xff]   ;;  %v2090_v47 = vld [vmem:[%s2661_s0 + $0x160] ss:$16 sps:$4 sm:$0xff]   ;;  %s2396_s18 = scalar_lea.vmem %s2664_s3, %s2347_s7 }
  0x17   : > { %v2091_v48 = vld [vmem:[%s2661_s0 + $0x168] ss:$16 sps:$4 sm:$0xff]   ;;  %v2118_v49 = vld [vmem:[%s2362_s25 + $0x4] ss:$8 sps:$4 sm:$0xff]   ;;  %v2096_v52 = vld [vmem:[%s2661_s0 + $0x180] ss:$16 sps:$4 sm:$0xff]   ;;  %s2477_s29 = scalar_lea.vmem %s2665_s4, %s2347_s7  ;;  %s2528_s10 = scalar_lea.vmem %s2667_s6, %s2347_s7 }
  0x18   : > { %v2092_v50 = vld [vmem:[%s2661_s0 + $0x184] ss:$16 sps:$4 sm:$0xff]   ;;  %v2094_v51 = vld [vmem:[%s2661_s0 + $0x18c] ss:$16 sps:$4 sm:$0xff]   ;;  %1015 = vmatprep.mubr.bf16.mxu0 %v2118_v49  ;;  %1128 = vmatprep.mubr.bf16.mxu1 %v2118_v49  ;;  %v2097_v53 = vld [vmem:[%s2661_s0 + $0x188] ss:$16 sps:$4 sm:$0xff]  }
  0x19   : > { %992 = vmatpush1.bf16.msra.mxu0 %v2048_v19  ;;  %1105 = vmatpush1.bf16.msra.mxu1 %v2049_v20  ;;  %v2098_v54 = vld [vmem:[%s2661_s0 + $0x1a4] ss:$16 sps:$4 sm:$0xff]   ;;  %v2100_v55 = vld [vmem:[%s2661_s0 + $0x1ac] ss:$16 sps:$4 sm:$0xff]   ;;  %v2102_v56 = vld [vmem:[%s2661_s0 + $0x1a0] ss:$16 sps:$4 sm:$0xff]  }
  0x1a   : > { %993 = vmatprep.subr.bf16.mxu0 %v2050_v21  ;;  %1106 = vmatprep.subr.bf16.mxu1 %v2052_v22  ;;  %v2103_v57 = vld [vmem:[%s2661_s0 + $0x1a8] ss:$16 sps:$4 sm:$0xff]   ;;  %v2104_v58 = vld [vmem:[%s2661_s0 + $0x1c4] ss:$16 sps:$4 sm:$0xff]   ;;  %v2106_v59 = vld [vmem:[%s2661_s0 + $0x1cc] ss:$16 sps:$4 sm:$0xff]  }
  0x1b   : > { %v1602_v60 = vld [vmem:[%s2396_s18] sm:$0xff]  ;;  %v1604_v61 = vld [vmem:[%s2396_s18 + $0x10] sm:$0xff]  ;;  %v1603_v62 = vld [vmem:[%s2396_s18 + $0x8] sm:$0xff] }
  0x1c   : > { %1620 = vperm.xlu0 %2018, %v1602_v60   ;;  %1630 = vperm.xlu1 %2019, %v1604_v61   ;;  %v1605_v63 = vld [vmem:[%s2396_s18 + $0x18] sm:$0xff]  ;;  %v2108_v0 = vld [vmem:[%s2661_s0 + $0x1c0] ss:$16 sps:$4 sm:$0xff]   ;;  %v2110_v2 = vld [vmem:[%s2661_s0 + $0x1e4] ss:$16 sps:$4 sm:$0xff]  }
  0x1d   : > { %994 = vmatpush1.bf16.msra.mxu0 %v2054_v23  ;;  %1107 = vmatpush1.bf16.msra.mxu1 %v2055_v24  ;;  %v2109_v1 = vld [vmem:[%s2661_s0 + $0x1c8] ss:$16 sps:$4 sm:$0xff]   ;;  %v2112_v3 = vld [vmem:[%s2661_s0 + $0x1ec] ss:$16 sps:$4 sm:$0xff]   ;;  %v1606_v5 = vld [vmem:[%s2396_s18 + $0x20] sm:$0xff] }
  0x1e   : > { %995 = vmatprep.subr.bf16.mxu0 %v2056_v25  ;;  %1108 = vmatprep.subr.bf16.mxu1 %v2058_v26  ;;  %v1607_v4 = vld [vmem:[%s2396_s18 + $0x28] sm:$0xff]  ;;  %v2114_v6 = vld [vmem:[%s2661_s0 + $0x1e0] ss:$16 sps:$4 sm:$0xff]   ;;  %v1609_v9 = vld [vmem:[%s2396_s18 + $0x38] sm:$0xff] }
  0x1f   : > { %v2115_v7 = vld [vmem:[%s2661_s0 + $0x1e8] ss:$16 sps:$4 sm:$0xff]   ;;  %v1608_v10 = vld [vmem:[%s2396_s18 + $0x30] sm:$0xff]  ;;  %v1610_v13 = vld [vmem:[%s2396_s18 + $0x40] sm:$0xff] }
  0x20   : > { %1625 = vperm.xlu0 %2018, %v1603_v62   ;;  %1635 = vperm.xlu1 %2019, %v1605_v63   ;;  %v2116_v8 = vld [vmem:[%s2362_s25] ss:$8 sps:$4 sm:$0xff]   ;;  %v2119_v11 = vld [vmem:[%s2362_s25 + $0x14] ss:$8 sps:$4 sm:$0xff]   ;;  %v2121_v14 = vld [vmem:[%s2362_s25 + $0x10] ss:$8 sps:$4 sm:$0xff]  }
  0x21   : > { %996 = vmatpush1.bf16.msra.mxu0 %v2060_v27  ;;  %1109 = vmatpush1.bf16.msra.mxu1 %v2061_v28  ;;  %v1611_v12 = vld [vmem:[%s2396_s18 + $0x48] sm:$0xff]  ;;  %v1613_v15 = vld [vmem:[%s2396_s18 + $0x58] sm:$0xff]  ;;  %v1612_v16 = vld [vmem:[%s2396_s18 + $0x50] sm:$0xff] }
  0x22   : > { %997 = vmatprep.subr.bf16.mxu0 %v2062_v29  ;;  %1110 = vmatprep.subr.bf16.mxu1 %v2064_v30  ;;  %v2122_v17 = vld [vmem:[%s2362_s25 + $0x24] ss:$8 sps:$4 sm:$0xff]   ;;  %v2124_v20 = vld [vmem:[%s2362_s25 + $0x20] ss:$8 sps:$4 sm:$0xff]   ;;  %v1617_v21 = vld [vmem:[%s2396_s18 + $0x78] sm:$0xff] }
  0x23   : > { %v1615_v18 = vld [vmem:[%s2396_s18 + $0x68] sm:$0xff]  ;;  %v1614_v19 = vld [vmem:[%s2396_s18 + $0x60] sm:$0xff]  ;;  %v1616_v22 = vld [vmem:[%s2396_s18 + $0x70] sm:$0xff]  ;;  %s1905_s18 = sshll.u32 %s2154_s21, 3 }
  0x24   : > { %1645 = vperm.xlu1 %2019, %v1607_v4   ;;  %1640 = vperm.xlu0 %2018, %v1606_v5   ;;  %v2125_v23 = vld [vmem:[%s2362_s25 + $0x34] ss:$8 sps:$4 sm:$0xff]   ;;  %v2127_v24 = vld [vmem:[%s2362_s25 + $0x30] ss:$8 sps:$4 sm:$0xff]   ;;  %v2128_v25 = vld [vmem:[%s2362_s25 + $0x44] ss:$8 sps:$4 sm:$0xff]  }
  0x25   : > { %998 = vmatpush1.bf16.msra.mxu0 %v2066_v31  ;;  %1111 = vmatpush1.bf16.msra.mxu1 %v2067_v32  ;;  %v2130_v26 = vld [vmem:[%s2362_s25 + $0x40] ss:$8 sps:$4 sm:$0xff]   ;;  %v2131_v27 = vld [vmem:[%s2362_s25 + $0x54] ss:$8 sps:$4 sm:$0xff]   ;;  %v2133_v28 = vld [vmem:[%s2362_s25 + $0x50] ss:$8 sps:$4 sm:$0xff]  }
  0x26   : > { %999 = vmatprep.subr.bf16.mxu0 %v2068_v33  ;;  %1112 = vmatprep.subr.bf16.mxu1 %v2070_v34  ;;  %v2134_v29 = vld [vmem:[%s2362_s25 + $0x64] ss:$8 sps:$4 sm:$0xff]   ;;  %v2136_v30 = vld [vmem:[%s2362_s25 + $0x60] ss:$8 sps:$4 sm:$0xff]   ;;  %v2137_v31 = vld [vmem:[%s2362_s25 + $0x74] ss:$8 sps:$4 sm:$0xff]   ;;  %v1406_v33 = vlaneseq }
  0x27   : > { %v2139_v32 = vld [vmem:[%s2362_s25 + $0x70] ss:$8 sps:$4 sm:$0xff]   ;;  %p359_p5 = scmp.lt.s32.totalorder %s1905_s18, 15  ;;  %v1587_v61 = vld [vmem:[%s2477_s29 + $0x8] sm:$0xff]  ;;  %v2505_v4 = vld [vmem:[%s2477_s29 + $0x40] sm:$0xff] }
  0x28   : > { %1655 = vperm.xlu1 %2019, %v1609_v9   ;;  %1650 = vperm.xlu0 %2018, %v1608_v10   ;;  %v1407_v34 = vshrl.u32 %v1406_v33, 7  ;;  %v1588_v62 = vld [vmem:[%s2477_s29 + $0x10] sm:$0xff]  ;;  %v2490_v63 = vld [vmem:[%s2477_s29 + $0x18] sm:$0xff]  ;;  %v2508_v5 = vld [vmem:[%s2477_s29 + $0x48] sm:$0xff] }
  0x29   : > { %1000 = vmatpush1.bf16.msra.mxu0 %v2072_v35  ;;  %1113 = vmatpush1.bf16.msra.mxu1 %v2073_v36  ;;  %s2675_s18 = smov (!%p359_p5, %s1905_s18), 15  ;;  %v2516_v10 = vld [vmem:[%s2477_s29 + $0x58] sm:$0xff] }
  0x2a   : > { %1001 = vmatprep.subr.bf16.mxu0 %v2074_v37  ;;  %1114 = vmatprep.subr.bf16.mxu1 %v2076_v38  ;;  %v1408_v35 = vsub.s32 0, %v1407_v34  ;;  %v1416_v36 = vsub.s32 2, %v1407_v34  ;;  %v1404_v38 = vld [vmem:[%s2663_s2] sm:$0xf]  ;;  %s1992_s30 = smul.u32 24, %s2675_s18 }
  0x2c   : > { %1665 = vperm.xlu1 %2019, %v1611_v12   ;;  %1660 = vperm.xlu0 %2018, %v1610_v13   ;;  %v2522_v12 = vld [vmem:[%s2477_s29 + $0x68] sm:$0xff]  ;;  %s2541_s13 = scalar_lea.vmem %s2666_s5, %s1992_s30 }
  0x2d   : > { %1002 = vmatpush1.bf16.msra.mxu0 %v2078_v39  ;;  %1115 = vmatpush1.bf16.msra.mxu1 %v2079_v40  ;;  %v1412_v39 = vsub.s32 1, %v1407_v34  ;;  %v1420_v40 = vsub.s32 3, %v1407_v34 }
  0x2e   : > { %1003 = vmatprep.subr.bf16.mxu0 %v2080_v41  ;;  %1116 = vmatprep.subr.bf16.mxu1 %v2082_v42  ;;  %v2463_v41 = vrot.slane %v1404_v38, %v1408_v35  ;;  %v2465_v42 = vrot.slane %v1404_v38, %v1416_v36 }
  0x30   : > { %1675 = vperm.xlu1 %2019, %v1613_v15   ;;  %1670 = vperm.xlu0 %2018, %v1612_v16  }
  0x31   : > { %1004 = vmatpush1.bf16.msra.mxu0 %v2084_v43  ;;  %1117 = vmatpush1.bf16.msra.mxu1 %v2085_v44  ;;  %v2467_v43 = vrot.slane %v1404_v38, %v1412_v39  ;;  %v2469_v44 = vrot.slane %v1404_v38, %v1420_v40 }
  0x32   : > { %1005 = vmatprep.subr.bf16.mxu0 %v2086_v45  ;;  %1118 = vmatprep.subr.bf16.mxu1 %v2088_v46 }
  0x34   : > { %1685 = vperm.xlu1 %2019, %v1615_v18   ;;  %1680 = vperm.xlu0 %2018, %v1614_v19   ;;  %v2534_v18 = vld [vmem:[%s2477_s29 + $0x78] sm:$0xff] }
  0x35   : > { %1006 = vmatpush1.bf16.msra.mxu0 %v2090_v47  ;;  %1119 = vmatpush1.bf16.msra.mxu1 %v2091_v48 }
  0x36   : > { %1007 = vmatprep.subr.bf16.mxu0 %v2092_v50  ;;  %1120 = vmatprep.subr.bf16.mxu1 %v2094_v51 }
  0x38   : > { %1695 = vperm.xlu1 %2019, %v1617_v21   ;;  %1690 = vperm.xlu0 %2018, %v1616_v22  }
  0x39   : > { %1008 = vmatpush1.bf16.msra.mxu0 %v2096_v52  ;;  %1121 = vmatpush1.bf16.msra.mxu1 %v2097_v53 }
  0x3a   : > { %1009 = vmatprep.subr.bf16.mxu0 %v2098_v54  ;;  %1122 = vmatprep.subr.bf16.mxu1 %v2100_v55  ;;  %v1586_v54 = vld [vmem:[%s2477_s29] sm:$0xff] }
  0x3d   : > { %1010 = vmatpush1.bf16.msra.mxu0 %v2102_v56  ;;  %1123 = vmatpush1.bf16.msra.mxu1 %v2103_v57 }
  0x3e   : > { %1011 = vmatprep.subr.bf16.mxu0 %v2104_v58  ;;  %1124 = vmatprep.subr.bf16.mxu1 %v2106_v59 }
  0x41   : > { %1012 = vmatpush1.bf16.msra.mxu0 %v2108_v0  ;;  %1125 = vmatpush1.bf16.msra.mxu1 %v2109_v1  ;;  %v2493_v0 = vld [vmem:[%s2477_s29 + $0x20] sm:$0xff]  ;;  %v2496_v1 = vld [vmem:[%s2477_s29 + $0x28] sm:$0xff] }
  0x42   : > { %1013 = vmatprep.subr.bf16.mxu0 %v2110_v2  ;;  %1126 = vmatprep.subr.bf16.mxu1 %v2112_v3  ;;  %v2499_v2 = vld [vmem:[%s2477_s29 + $0x30] sm:$0xff]  ;;  %v2502_v3 = vld [vmem:[%s2477_s29 + $0x38] sm:$0xff] }
  0x45   : > { %1014 = vmatpush1.bf16.msra.mxu0 %v2114_v6  ;;  %1127 = vmatpush1.bf16.msra.mxu1 %v2115_v7  ;;  %v2511_v6 = vld [vmem:[%s2477_s29 + $0x50] sm:$0xff] }
  0x48   : > { %1016 = vmatmul.mubr.bf16.vlgmr.msra.gmra.mrb[0].mxu0 %v2116_v8  ;;  %1129 = vmatmul.mubr.bf16.vlgmr.msra.gmra.mrb[0].mxu1 %v2116_v8 }
  0x49   : > { %1025 = vmatprep.mubr.bf16.mxu0 %v2119_v11  ;;  %1138 = vmatprep.mubr.bf16.mxu1 %v2119_v11  ;;  %v2519_v11 = vld [vmem:[%s2477_s29 + $0x60] sm:$0xff] }
  0x50   : > { %1026 = vmatmul.mubr.bf16.gmra.mrb[4].mxu0 %v2121_v14  ;;  %1139 = vmatmul.mubr.bf16.gmra.mrb[4].mxu1 %v2121_v14 }
  0x51   : > { %1035 = vmatprep.mubr.bf16.mxu0 %v2122_v17  ;;  %1148 = vmatprep.mubr.bf16.mxu1 %v2122_v17  ;;  %v2531_v17 = vld [vmem:[%s2477_s29 + $0x70] sm:$0xff] }
  0x58   : > { %1036 = vmatmul.mubr.bf16.gmra.mrb[8].mxu0 %v2124_v20  ;;  %1149 = vmatmul.mubr.bf16.gmra.mrb[8].mxu1 %v2124_v20 }
  0x59   : > { %1045 = vmatprep.mubr.bf16.mxu0 %v2125_v23  ;;  %1158 = vmatprep.mubr.bf16.mxu1 %v2125_v23 }
  0x60   : > { %1046 = vmatmul.mubr.bf16.gmra.mrb[12].mxu0 %v2127_v24  ;;  %1159 = vmatmul.mubr.bf16.gmra.mrb[12].mxu1 %v2127_v24 }
  0x61   : > { %1055 = vmatprep.mubr.bf16.mxu0 %v2128_v25  ;;  %1168 = vmatprep.mubr.bf16.mxu1 %v2128_v25 }
  0x68   : > { %1056 = vmatmul.mubr.bf16.gmra.mrb[16].mxu0 %v2130_v26  ;;  %1169 = vmatmul.mubr.bf16.gmra.mrb[16].mxu1 %v2130_v26 }
  0x69   : > { %1065 = vmatprep.mubr.bf16.mxu0 %v2131_v27  ;;  %1178 = vmatprep.mubr.bf16.mxu1 %v2131_v27 }
  0x70   : > { %1066 = vmatmul.mubr.bf16.gmra.mrb[20].mxu0 %v2133_v28  ;;  %1179 = vmatmul.mubr.bf16.gmra.mrb[20].mxu1 %v2133_v28 }
  0x71   : > { %1075 = vmatprep.mubr.bf16.mxu0 %v2134_v29  ;;  %1188 = vmatprep.mubr.bf16.mxu1 %v2134_v29 }
  0x78   : > { %1076 = vmatmul.mubr.bf16.gmra.mrb[24].mxu0 %v2136_v30  ;;  %1189 = vmatmul.mubr.bf16.gmra.mrb[24].mxu1 %v2136_v30 }
  0x79   : > { %1085 = vmatprep.mubr.bf16.mxu0 %v2137_v31  ;;  %1198 = vmatprep.mubr.bf16.mxu1 %v2137_v31 }
  0x80   : > { %1086 = vmatmul.mubr.bf16.gmra.mrb[28].mxu0 %v2139_v32  ;;  %1199 = vmatmul.mubr.bf16.gmra.mrb[28].mxu1 %v2139_v32 }
  0x9b   : > { %v1621_v37 = vpop.permute.xlu0 %1620  ;;  %v1631_v25 = vpop.permute.xlu1 %1630 }
  0x9f   : > { %v1626_v45 = vpop.permute.xlu0 %1625 }
 0x11b   : > { %v1017_v46 = vpop.f32.mrb[0].mxu0  ;;  %v1130_v47 = vpop.f32.mrb[0].mxu1 }
 0x11c   : > { %v1426_v48 = vadd.f32 %v2463_v41, %v1017_v46  ;;  %v1428_v49 = vadd.f32 %v2465_v42, %v1130_v47  ;;  %v1019_v50 = vpop.f32.mrb[1].mxu0  ;;  %v1132_v51 = vpop.f32.mrb[1].mxu1 }
 0x11d   : > { %v1427_v52 = vadd.f32 %v2467_v43, %v1019_v50  ;;  %v1429_v53 = vadd.f32 %v2469_v44, %v1132_v51  ;;  %v1021_v55 = vpop.f32.mrb[2].mxu0  ;;  %v1134_v56 = vpop.f32.mrb[2].mxu1 }
 0x11e   : > { %v1430_v57 = vadd.f32 %v2463_v41, %v1021_v55  ;;  %v1432_v58 = vadd.f32 %v2465_v42, %v1134_v56  ;;  %v1023_v59 = vpop.f32.mrb[3].mxu0  ;;  %v1136_v60 = vpop.f32.mrb[3].mxu1  ;;  %v1490_v13 = vmax.f32 %v1426_v48, 0.0  ;;  %v1492_v14 = vmax.f32 %v1428_v49, 0.0 }
 0x11f   : > { %v1698_v7 = vmul.f32 %v1621_v37, %v1429_v53  ;;  %v1431_v8 = vadd.f32 %v2467_v43, %v1023_v59  ;;  %v1433_v9 = vadd.f32 %v2469_v44, %v1136_v60  ;;  %v1491_v19 = vmax.f32 %v1427_v52, 0.0  ;;  %v1636_v51 = vpop.permute.xlu1 %1635  ;;  %v1641_v60 = vpop.permute.xlu0 %1640 }
 0x120   : > { %v1493_v15 = vmax.f32 %v1430_v57, 0.0  ;;  %v1495_v16 = vmax.f32 %v1432_v58, 0.0 }
 0x121   : > { %v1714_v20 = vadd.f32 %v1698_v7, %v1586_v54  ;;  %v1494_v21 = vmax.f32 %v1431_v8, 0.0  ;;  %v1699_v22 = vmul.f32 %v1626_v45, %v1433_v9 }
 0x122   : > { %v1538_v23 = vpack.c.bf16 %v1493_v15, %v1490_v13  ;;  %v1540_v24 = vpack.c.bf16 %v1495_v16, %v1492_v14 }
 0x123   : > { %v1539_v26 = vpack.c.bf16 %v1494_v21, %v1491_v19  ;;  %v1715_v27 = vadd.f32 %v1699_v22, %v1587_v61  ;;  %v1027_v28 = vpop.f32.mrb[4].mxu0  ;;  %v1140_v29 = vpop.f32.mrb[4].mxu1  ;;  %1730 = vst [vmem:[%s2528_s10] sm:$0xff] %v1714_v20 }
 0x124   : > { %1562 = vst [vmem:[%s2541_s13] sm:$0xff] %v1538_v23  ;;  %1564 = vst [vmem:[%s2541_s13 + $0x10] sm:$0xff] %v1540_v24  ;;  %v1434_v30 = vadd.f32 %v2463_v41, %v1027_v28  ;;  %v1436_v31 = vadd.f32 %v2465_v42, %v1140_v29  ;;  %v1029_v32 = vpop.f32.mrb[5].mxu0  ;;  %v1142_v33 = vpop.f32.mrb[5].mxu1 }
 0x125   : > { %1563 = vst [vmem:[%s2541_s13 + $0x8] sm:$0xff] %v1539_v26  ;;  %v1435_v34 = vadd.f32 %v2467_v43, %v1029_v32  ;;  %v1437_v35 = vadd.f32 %v2469_v44, %v1142_v33  ;;  %v1031_v36 = vpop.f32.mrb[6].mxu0  ;;  %v1144_v37 = vpop.f32.mrb[6].mxu1  ;;  %1731 = vst [vmem:[%s2528_s10 + $0x8] sm:$0xff] %v1715_v27 }
 0x126   : > { %v1438_v38 = vadd.f32 %v2463_v41, %v1031_v36  ;;  %v1440_v39 = vadd.f32 %v2465_v42, %v1144_v37  ;;  %v1033_v40 = vpop.f32.mrb[7].mxu0  ;;  %v1146_v45 = vpop.f32.mrb[7].mxu1  ;;  %v1496_v49 = vmax.f32 %v1434_v30, 0.0  ;;  %v1498_v50 = vmax.f32 %v1436_v31, 0.0 }
 0x127   : > { %v1700_v46 = vmul.f32 %v1631_v25, %v1437_v35  ;;  %v1439_v47 = vadd.f32 %v2467_v43, %v1033_v40  ;;  %v1441_v48 = vadd.f32 %v2469_v44, %v1146_v45  ;;  %v1497_v54 = vmax.f32 %v1435_v34, 0.0  ;;  %v1646_v28 = vpop.permute.xlu1 %1645  ;;  %v1651_v37 = vpop.permute.xlu0 %1650 }
 0x128   : > { %v1499_v52 = vmax.f32 %v1438_v38, 0.0  ;;  %v1501_v53 = vmax.f32 %v1440_v39, 0.0 }
 0x129   : > { %v1716_v55 = vadd.f32 %v1700_v46, %v1588_v62  ;;  %v1500_v56 = vmax.f32 %v1439_v47, 0.0  ;;  %v1701_v57 = vmul.f32 %v1636_v51, %v1441_v48 }
 0x12a   : > { %v1541_v58 = vpack.c.bf16 %v1499_v52, %v1496_v49  ;;  %v1543_v59 = vpack.c.bf16 %v1501_v53, %v1498_v50 }
 0x12b   : > { %v1542_v61 = vpack.c.bf16 %v1500_v56, %v1497_v54  ;;  %v1717_v7 = vadd.f32 %v1701_v57, %v2490_v63  ;;  %v1037_v8 = vpop.f32.mrb[8].mxu0  ;;  %v1150_v9 = vpop.f32.mrb[8].mxu1  ;;  %1732 = vst [vmem:[%s2528_s10 + $0x10] sm:$0xff] %v1716_v55 }
 0x12c   : > { %1565 = vst [vmem:[%s2541_s13 + $0x18] sm:$0xff] %v1541_v58  ;;  %1567 = vst [vmem:[%s2541_s13 + $0x28] sm:$0xff] %v1543_v59  ;;  %v1442_v13 = vadd.f32 %v2463_v41, %v1037_v8  ;;  %v1444_v14 = vadd.f32 %v2465_v42, %v1150_v9  ;;  %v1039_v62 = vpop.f32.mrb[9].mxu0  ;;  %v1152_v15 = vpop.f32.mrb[9].mxu1 }
 0x12d   : > { %1566 = vst [vmem:[%s2541_s13 + $0x20] sm:$0xff] %v1542_v61  ;;  %v1443_v16 = vadd.f32 %v2467_v43, %v1039_v62  ;;  %v1445_v19 = vadd.f32 %v2469_v44, %v1152_v15  ;;  %v1041_v20 = vpop.f32.mrb[10].mxu0  ;;  %v1154_v21 = vpop.f32.mrb[10].mxu1  ;;  %1733 = vst [vmem:[%s2528_s10 + $0x18] sm:$0xff] %v1717_v7 }
 0x12e   : > { %v1446_v63 = vadd.f32 %v2463_v41, %v1041_v20  ;;  %v1448_v22 = vadd.f32 %v2465_v42, %v1154_v21  ;;  %v1043_v23 = vpop.f32.mrb[11].mxu0  ;;  %v1156_v24 = vpop.f32.mrb[11].mxu1  ;;  %v1502_v29 = vmax.f32 %v1442_v13, 0.0  ;;  %v1504_v30 = vmax.f32 %v1444_v14, 0.0 }
 0x12f   : > { %v1702_v25 = vmul.f32 %v1641_v60, %v1445_v19  ;;  %v1447_v26 = vadd.f32 %v2467_v43, %v1043_v23  ;;  %v1449_v27 = vadd.f32 %v2469_v44, %v1156_v24  ;;  %v1503_v33 = vmax.f32 %v1443_v16, 0.0  ;;  %v1656_v61 = vpop.permute.xlu1 %1655  ;;  %v1661_v19 = vpop.permute.xlu0 %1660 }
 0x130   : > { %v1505_v31 = vmax.f32 %v1446_v63, 0.0  ;;  %v1507_v32 = vmax.f32 %v1448_v22, 0.0 }
 0x131   : > { %v1718_v34 = vadd.f32 %v1702_v25, %v2493_v0  ;;  %v1506_v35 = vmax.f32 %v1447_v26, 0.0  ;;  %v1703_v36 = vmul.f32 %v1646_v28, %v1449_v27 }
 0x132   : > { %v1544_v38 = vpack.c.bf16 %v1505_v31, %v1502_v29  ;;  %v1546_v39 = vpack.c.bf16 %v1507_v32, %v1504_v30 }
 0x133   : > { %v1545_v40 = vpack.c.bf16 %v1506_v35, %v1503_v33  ;;  %v1719_v45 = vadd.f32 %v1703_v36, %v2496_v1  ;;  %v1047_v46 = vpop.f32.mrb[12].mxu0  ;;  %v1160_v47 = vpop.f32.mrb[12].mxu1  ;;  %1734 = vst [vmem:[%s2528_s10 + $0x20] sm:$0xff] %v1718_v34 }
 0x134   : > { %1568 = vst [vmem:[%s2541_s13 + $0x30] sm:$0xff] %v1544_v38  ;;  %1570 = vst [vmem:[%s2541_s13 + $0x40] sm:$0xff] %v1546_v39  ;;  %v1450_v48 = vadd.f32 %v2463_v41, %v1047_v46  ;;  %v1452_v49 = vadd.f32 %v2465_v42, %v1160_v47  ;;  %v1049_v0 = vpop.f32.mrb[13].mxu0  ;;  %v1162_v50 = vpop.f32.mrb[13].mxu1 }
 0x135   : > { %1569 = vst [vmem:[%s2541_s13 + $0x38] sm:$0xff] %v1545_v40  ;;  %v1451_v51 = vadd.f32 %v2467_v43, %v1049_v0  ;;  %v1453_v52 = vadd.f32 %v2469_v44, %v1162_v50  ;;  %v1051_v53 = vpop.f32.mrb[14].mxu0  ;;  %v1164_v54 = vpop.f32.mrb[14].mxu1  ;;  %1735 = vst [vmem:[%s2528_s10 + $0x28] sm:$0xff] %v1719_v45 }
 0x136   : > { %v1454_v1 = vadd.f32 %v2463_v41, %v1051_v53  ;;  %v1456_v55 = vadd.f32 %v2465_v42, %v1164_v54  ;;  %v1053_v56 = vpop.f32.mrb[15].mxu0  ;;  %v1166_v57 = vpop.f32.mrb[15].mxu1  ;;  %v1508_v7 = vmax.f32 %v1450_v48, 0.0  ;;  %v1510_v8 = vmax.f32 %v1452_v49, 0.0 }
 0x137   : > { %v1704_v58 = vmul.f32 %v1651_v37, %v1453_v52  ;;  %v1455_v59 = vadd.f32 %v2467_v43, %v1053_v56  ;;  %v1457_v60 = vadd.f32 %v2469_v44, %v1166_v57  ;;  %v1509_v14 = vmax.f32 %v1451_v51, 0.0  ;;  %v1666_v38 = vpop.permute.xlu1 %1665  ;;  %v1671_v50 = vpop.permute.xlu0 %1670 }
 0x138   : > { %v1511_v9 = vmax.f32 %v1454_v1, 0.0  ;;  %v1513_v13 = vmax.f32 %v1456_v55, 0.0 }
 0x139   : > { %v1720_v62 = vadd.f32 %v1704_v58, %v2499_v2  ;;  %v1512_v15 = vmax.f32 %v1455_v59, 0.0  ;;  %v1705_v16 = vmul.f32 %v1656_v61, %v1457_v60 }
 0x13a   : > { %v1547_v20 = vpack.c.bf16 %v1511_v9, %v1508_v7  ;;  %v1549_v21 = vpack.c.bf16 %v1513_v13, %v1510_v8 }
 0x13b   : > { %v1548_v63 = vpack.c.bf16 %v1512_v15, %v1509_v14  ;;  %v1721_v22 = vadd.f32 %v1705_v16, %v2502_v3  ;;  %v1057_v23 = vpop.f32.mrb[16].mxu0  ;;  %v1170_v24 = vpop.f32.mrb[16].mxu1  ;;  %1736 = vst [vmem:[%s2528_s10 + $0x30] sm:$0xff] %v1720_v62 }
 0x13c   : > { %1571 = vst [vmem:[%s2541_s13 + $0x48] sm:$0xff] %v1547_v20  ;;  %1573 = vst [vmem:[%s2541_s13 + $0x58] sm:$0xff] %v1549_v21  ;;  %v1458_v25 = vadd.f32 %v2463_v41, %v1057_v23  ;;  %v1460_v26 = vadd.f32 %v2465_v42, %v1170_v24  ;;  %v1059_v2 = vpop.f32.mrb[17].mxu0  ;;  %v1172_v27 = vpop.f32.mrb[17].mxu1 }
 0x13d   : > { %1572 = vst [vmem:[%s2541_s13 + $0x50] sm:$0xff] %v1548_v63  ;;  %v1459_v28 = vadd.f32 %v2467_v43, %v1059_v2  ;;  %v1461_v29 = vadd.f32 %v2469_v44, %v1172_v27  ;;  %v1061_v30 = vpop.f32.mrb[18].mxu0  ;;  %v1174_v31 = vpop.f32.mrb[18].mxu1  ;;  %1737 = vst [vmem:[%s2528_s10 + $0x38] sm:$0xff] %v1721_v22 }
 0x13e   : > { %v1462_v3 = vadd.f32 %v2463_v41, %v1061_v30  ;;  %v1464_v32 = vadd.f32 %v2465_v42, %v1174_v31  ;;  %v1063_v33 = vpop.f32.mrb[19].mxu0  ;;  %v1176_v34 = vpop.f32.mrb[19].mxu1  ;;  %v1514_v39 = vmax.f32 %v1458_v25, 0.0  ;;  %v1516_v40 = vmax.f32 %v1460_v26, 0.0 }
 0x13f   : > { %v1706_v35 = vmul.f32 %v1661_v19, %v1461_v29  ;;  %v1463_v36 = vadd.f32 %v2467_v43, %v1063_v33  ;;  %v1465_v37 = vadd.f32 %v2469_v44, %v1176_v34  ;;  %v1515_v47 = vmax.f32 %v1459_v28, 0.0  ;;  %v1676_v16 = vpop.permute.xlu1 %1675  ;;  %v1681_v26 = vpop.permute.xlu0 %1680 }
 0x140   : > { %v1517_v45 = vmax.f32 %v1462_v3, 0.0  ;;  %v1519_v46 = vmax.f32 %v1464_v32, 0.0 }
 0x141   : > { %v1722_v48 = vadd.f32 %v1706_v35, %v2505_v4  ;;  %v1518_v49 = vmax.f32 %v1463_v36, 0.0  ;;  %v1707_v0 = vmul.f32 %v1666_v38, %v1465_v37 }
 0x142   : > { %v1550_v51 = vpack.c.bf16 %v1517_v45, %v1514_v39  ;;  %v1552_v52 = vpack.c.bf16 %v1519_v46, %v1516_v40 }
 0x143   : > { %v1551_v53 = vpack.c.bf16 %v1518_v49, %v1515_v47  ;;  %v1723_v54 = vadd.f32 %v1707_v0, %v2508_v5  ;;  %v1067_v1 = vpop.f32.mrb[20].mxu0  ;;  %v1180_v55 = vpop.f32.mrb[20].mxu1  ;;  %1738 = vst [vmem:[%s2528_s10 + $0x40] sm:$0xff] %v1722_v48 }
 0x144   : > { %1574 = vst [vmem:[%s2541_s13 + $0x60] sm:$0xff] %v1550_v51  ;;  %1576 = vst [vmem:[%s2541_s13 + $0x70] sm:$0xff] %v1552_v52  ;;  %v1466_v56 = vadd.f32 %v2463_v41, %v1067_v1  ;;  %v1468_v57 = vadd.f32 %v2465_v42, %v1180_v55  ;;  %v1069_v4 = vpop.f32.mrb[21].mxu0  ;;  %v1182_v58 = vpop.f32.mrb[21].mxu1 }
 0x145   : > { %1575 = vst [vmem:[%s2541_s13 + $0x68] sm:$0xff] %v1551_v53  ;;  %v1467_v59 = vadd.f32 %v2467_v43, %v1069_v4  ;;  %v1469_v60 = vadd.f32 %v2469_v44, %v1182_v58  ;;  %v1071_v61 = vpop.f32.mrb[22].mxu0  ;;  %v1184_v7 = vpop.f32.mrb[22].mxu1  ;;  %1739 = vst [vmem:[%s2528_s10 + $0x48] sm:$0xff] %v1723_v54 }
 0x146   : > { %v1470_v5 = vadd.f32 %v2463_v41, %v1071_v61  ;;  %v1472_v8 = vadd.f32 %v2465_v42, %v1184_v7  ;;  %v1073_v9 = vpop.f32.mrb[23].mxu0  ;;  %v1186_v13 = vpop.f32.mrb[23].mxu1  ;;  %v1520_v19 = vmax.f32 %v1466_v56, 0.0  ;;  %v1522_v20 = vmax.f32 %v1468_v57, 0.0 }
 0x147   : > { %v1708_v14 = vmul.f32 %v1671_v50, %v1469_v60  ;;  %v1471_v62 = vadd.f32 %v2467_v43, %v1073_v9  ;;  %v1473_v15 = vadd.f32 %v2469_v44, %v1186_v13  ;;  %v1521_v22 = vmax.f32 %v1467_v59, 0.0  ;;  %v1686_v48 = vpop.permute.xlu1 %1685  ;;  %v1691_v55 = vpop.permute.xlu0 %1690 }
 0x148   : > { %v1523_v21 = vmax.f32 %v1470_v5, 0.0  ;;  %v1525_v63 = vmax.f32 %v1472_v8, 0.0 }
 0x149   : > { %v1724_v23 = vadd.f32 %v1708_v14, %v2511_v6  ;;  %v1524_v24 = vmax.f32 %v1471_v62, 0.0  ;;  %v1709_v25 = vmul.f32 %v1676_v16, %v1473_v15 }
 0x14a   : > { %v1553_v2 = vpack.c.bf16 %v1523_v21, %v1520_v19  ;;  %v1555_v27 = vpack.c.bf16 %v1525_v63, %v1522_v20 }
 0x14b   : > { %v1554_v28 = vpack.c.bf16 %v1524_v24, %v1521_v22  ;;  %v1725_v29 = vadd.f32 %v1709_v25, %v2516_v10  ;;  %v1077_v30 = vpop.f32.mrb[24].mxu0  ;;  %v1190_v31 = vpop.f32.mrb[24].mxu1  ;;  %1740 = vst [vmem:[%s2528_s10 + $0x50] sm:$0xff] %v1724_v23 }
 0x14c   : > { %1577 = vst [vmem:[%s2541_s13 + $0x78] sm:$0xff] %v1553_v2  ;;  %1579 = vst [vmem:[%s2541_s13 + $0x88] sm:$0xff] %v1555_v27  ;;  %v1474_v3 = vadd.f32 %v2463_v41, %v1077_v30  ;;  %v1476_v32 = vadd.f32 %v2465_v42, %v1190_v31  ;;  %v1079_v6 = vpop.f32.mrb[25].mxu0  ;;  %v1192_v33 = vpop.f32.mrb[25].mxu1 }
 0x14d   : > { %1578 = vst [vmem:[%s2541_s13 + $0x80] sm:$0xff] %v1554_v28  ;;  %v1475_v34 = vadd.f32 %v2467_v43, %v1079_v6  ;;  %v1477_v35 = vadd.f32 %v2469_v44, %v1192_v33  ;;  %v1081_v36 = vpop.f32.mrb[26].mxu0  ;;  %v1194_v37 = vpop.f32.mrb[26].mxu1  ;;  %1741 = vst [vmem:[%s2528_s10 + $0x58] sm:$0xff] %v1725_v29 }
 0x14e   : > { %v1478_v10 = vadd.f32 %v2463_v41, %v1081_v36  ;;  %v1480_v38 = vadd.f32 %v2465_v42, %v1194_v37  ;;  %v1083_v39 = vpop.f32.mrb[27].mxu0  ;;  %v1196_v40 = vpop.f32.mrb[27].mxu1  ;;  %v1526_v49 = vmax.f32 %v1474_v3, 0.0  ;;  %v1528_v0 = vmax.f32 %v1476_v32, 0.0 }
 0x14f   : > { %v1710_v45 = vmul.f32 %v1681_v26, %v1477_v35  ;;  %v1479_v46 = vadd.f32 %v2467_v43, %v1083_v39  ;;  %v1481_v47 = vadd.f32 %v2469_v44, %v1196_v40  ;;  %v1527_v52 = vmax.f32 %v1475_v34, 0.0  ;;  %v1696_v63 = vpop.permute.xlu1 %1695 }
 0x150   : > { %v1529_v50 = vmax.f32 %v1478_v10, 0.0  ;;  %v1531_v51 = vmax.f32 %v1480_v38, 0.0 }
 0x151   : > { %v1726_v53 = vadd.f32 %v1710_v45, %v2519_v11  ;;  %v1530_v54 = vmax.f32 %v1479_v46, 0.0  ;;  %v1711_v1 = vmul.f32 %v1686_v48, %v1481_v47 }
 0x152   : > { %v1556_v56 = vpack.c.bf16 %v1529_v50, %v1526_v49  ;;  %v1558_v57 = vpack.c.bf16 %v1531_v51, %v1528_v0 }
 0x153   : > { %v1557_v4 = vpack.c.bf16 %v1530_v54, %v1527_v52  ;;  %v1727_v58 = vadd.f32 %v1711_v1, %v2522_v12  ;;  %v1087_v59 = vpop.f32.mrb[28].mxu0  ;;  %v1200_v60 = vpop.f32.mrb[28].mxu1  ;;  %1742 = vst [vmem:[%s2528_s10 + $0x60] sm:$0xff] %v1726_v53 }
 0x154   : > { %1580 = vst [vmem:[%s2541_s13 + $0x90] sm:$0xff] %v1556_v56  ;;  %1582 = vst [vmem:[%s2541_s13 + $0xa0] sm:$0xff] %v1558_v57  ;;  %v1482_v61 = vadd.f32 %v2463_v41, %v1087_v59  ;;  %v1484_v7 = vadd.f32 %v2465_v42, %v1200_v60  ;;  %v1089_v11 = vpop.f32.mrb[29].mxu0  ;;  %v1202_v5 = vpop.f32.mrb[29].mxu1 }
 0x155   : > { %1581 = vst [vmem:[%s2541_s13 + $0x98] sm:$0xff] %v1557_v4  ;;  %v1483_v8 = vadd.f32 %v2467_v43, %v1089_v11  ;;  %v1485_v9 = vadd.f32 %v2469_v44, %v1202_v5  ;;  %v1091_v13 = vpop.f32.mrb[30].mxu0  ;;  %v1204_v14 = vpop.f32.mrb[30].mxu1  ;;  %1743 = vst [vmem:[%s2528_s10 + $0x68] sm:$0xff] %v1727_v58 }
 0x156   : > { %v1486_v12 = vadd.f32 %v2463_v41, %v1091_v13  ;;  %v1488_v62 = vadd.f32 %v2465_v42, %v1204_v14  ;;  %v1093_v15 = vpop.f32.mrb[31].mxu0  ;;  %v1206_v16 = vpop.f32.mrb[31].mxu1  ;;  %v1532_v22 = vmax.f32 %v1482_v61, 0.0  ;;  %v1534_v23 = vmax.f32 %v1484_v7, 0.0 }
 0x157   : > { %v1712_v19 = vmul.f32 %v1691_v55, %v1485_v9  ;;  %v1487_v20 = vadd.f32 %v2467_v43, %v1093_v15  ;;  %v1489_v21 = vadd.f32 %v2469_v44, %v1206_v16  ;;  %v1533_v41 = vmax.f32 %v1483_v8, 0.0 }
 0x158   : > { %v1535_v24 = vmax.f32 %v1486_v12, 0.0  ;;  %v1537_v25 = vmax.f32 %v1488_v62, 0.0 }
 0x159   : > { %v1728_v42 = vadd.f32 %v1712_v19, %v2531_v17  ;;  %v1536_v26 = vmax.f32 %v1487_v20, 0.0  ;;  %v1713_v2 = vmul.f32 %v1696_v63, %v1489_v21 }
 0x15a   : > { %v1559_v27 = vpack.c.bf16 %v1535_v24, %v1532_v22  ;;  %v1561_v28 = vpack.c.bf16 %v1537_v25, %v1534_v23 }
 0x15b   : > { %v1560_v29 = vpack.c.bf16 %v1536_v26, %v1533_v41  ;;  %v1729_v43 = vadd.f32 %v1713_v2, %v2534_v18  ;;  %1744 = vst [vmem:[%s2528_s10 + $0x70] sm:$0xff] %v1728_v42 }
 0x15c   : > { %1583 = vst [vmem:[%s2541_s13 + $0xa8] sm:$0xff] %v1559_v27  ;;  %1585 = vst [vmem:[%s2541_s13 + $0xb8] sm:$0xff] %v1561_v28 }
 0x15d   : > { %1584 = vst [vmem:[%s2541_s13 + $0xb0] sm:$0xff] %v1560_v29  ;;  %1745 = vst [vmem:[%s2528_s10 + $0x78] sm:$0xff] %v1729_v43 }
 0x15e PF: > { %s17_s23 = sadd.s32 1, %s2162_s23   ;;  %s2668_s21 = smov %s2158_s22 }
 0x15f   : > { %p14_p6 = scmp.ge.s32.totalorder %s17_s23, 4   ;;  %s2669_s22 = smov %s2671_s24 }
 0x161   :  { %16 = sbr.rel (!%p14_p6) target bundleno = 2 (0x2), region = 99 }

// kernel: moe_ogb_forward.6
= control target key start
LH: loop header
LB: loop body
LE: loop exit
PB: predicated region body
PF: predicated region fallthrough
CT: control target
= control target key end

     0   :  { %s1576_s21 = smov 0   ;;  %s1578_s22 = smov 0   ;;  %s1898_s0 = inlined_call_operand.vmem [shape: bf16[256,256], index: 0, kind: input, shape index: {}]   ;;  %s1899_s1 = inlined_call_operand.vmem [shape: bf16[256,256], index: 1, kind: input, shape index: {}]   ;;  %s1900_s2 = inlined_call_operand.vmem [shape: f32[1,256], index: 2, kind: input, shape index: {}]   ;;  %s1901_s3 = inlined_call_operand.vmem [shape: f32[256,1], index: 3, kind: input, shape index: {}]   ;;  %s1902_s4 = inlined_call_operand.vmem [shape: f32[256,128], index: 4, kind: input, shape index: {}, may-alias: {4,6}]   ;;  %s1903_s5 = inlined_call_operand.vmem [shape: bf16[256,128], index: 5, kind: output, shape index: {0}]   ;;  %s1904_s6 = inlined_call_operand.vmem [shape: f32[256,128], index: 6, kind: output, shape index: {1}, may-alias: {4,6}]  }
   0x1   :  { %s1580_s23 = smov 0  }
   0x2 LB: > { %s29_s24 = sadd.s32 1, %s1534_s22  ;;  %p1322_p0 = scmp.ge.s32.totalorder %s1538_s23, 1  ;;  %s1538_s23 = sphi %s1580_s23, %s17_s23   ;;  %s1534_s22 = sphi %s1578_s22, %s1906_s22   ;;  %s1530_s21 = sphi %s1576_s21, %s1905_s21  }
   0x3   : > { %p31_p1 = scmp.ge.s32.totalorder %s29_s24, 2  ;;  %p270_p2 = scmp.lt.s32.totalorder %s1538_s23, 3 }
   0x5   : > { %s1908_s24 = smov (%p31_p1, %s29_s24), 0  ;;  %p271_p3 = pnand %p1322_p0, %p270_p2 }
   0x6   : > { %v1444_v0 = vld [vmem:[%s1898_s0 + $0x4] ss:$8 sps:$4 sm:$0xff] (!%p271_p3)   ;;  %v1446_v1 = vld [vmem:[%s1898_s0] ss:$8 sps:$4 sm:$0xff] (!%p271_p3)   ;;  %v1540_v2 = vmov (!%p271_p3), 0   ;;  %s1323_s11 = sshll.u32 (!%p271_p3), %s1530_s21, 4 }
   0x7   : > { %274 = sbr.rel (%p271_p3) target bundleno = 318 (0x13e), region = 40  ;;  %1443 = vset.pattern.permute.xlu1 (!%p271_p3), %v1540_v2  ;;  %1442 = vset.pattern.permute.xlu0 (!%p271_p3), %v1540_v2  ;;  %v1447_v3 = vld [vmem:[%s1898_s0 + $0x14] ss:$8 sps:$4 sm:$0xff] (!%p271_p3)   ;;  %v1449_v4 = vld [vmem:[%s1898_s0 + $0x10] ss:$8 sps:$4 sm:$0xff] (!%p271_p3)   ;;  %p335_p4 = scmp.lt.s32.totalorder (!%p271_p3), %s1323_s11, 31 }
   0x8   : > { %725 = vmatprep.subr.bf16.mxu0 (!%p271_p3), %v1444_v0  ;;  %1385 = vmatprep.subr.bf16.mxu1 (!%p271_p3), %v1444_v0  ;;  %v1450_v5 = vld [vmem:[%s1898_s0 + $0x24] ss:$8 sps:$4 sm:$0xff] (!%p271_p3)   ;;  %v1452_v6 = vld [vmem:[%s1898_s0 + $0x20] ss:$8 sps:$4 sm:$0xff] (!%p271_p3)   ;;  %v1453_v7 = vld [vmem:[%s1898_s0 + $0x34] ss:$8 sps:$4 sm:$0xff] (!%p271_p3)  }
   0x9   : > { %726 = vmatpush1.bf16.msra.mxu0 (!%p271_p3), %v1446_v1  ;;  %1401 = vmatpush1.bf16.msra.mxu1 (!%p271_p3), %v1446_v1  ;;  %v1455_v8 = vld [vmem:[%s1898_s0 + $0x30] ss:$8 sps:$4 sm:$0xff] (!%p271_p3)   ;;  %v1456_v9 = vld [vmem:[%s1898_s0 + $0x44] ss:$8 sps:$4 sm:$0xff] (!%p271_p3)   ;;  %v1458_v10 = vld [vmem:[%s1898_s0 + $0x40] ss:$8 sps:$4 sm:$0xff] (!%p271_p3)  }
   0xa   : > { %727 = vmatprep.subr.bf16.mxu0 (!%p271_p3), %v1447_v3  ;;  %1386 = vmatprep.subr.bf16.mxu1 (!%p271_p3), %v1447_v3  ;;  %v1459_v11 = vld [vmem:[%s1898_s0 + $0x54] ss:$8 sps:$4 sm:$0xff] (!%p271_p3)   ;;  %v1461_v12 = vld [vmem:[%s1898_s0 + $0x50] ss:$8 sps:$4 sm:$0xff] (!%p271_p3)   ;;  %v1462_v13 = vld [vmem:[%s1898_s0 + $0x64] ss:$8 sps:$4 sm:$0xff] (!%p271_p3)  }
   0xb   : > { %v1464_v15 = vld [vmem:[%s1898_s0 + $0x60] ss:$8 sps:$4 sm:$0xff] (!%p271_p3)   ;;  %v1465_v17 = vld [vmem:[%s1898_s0 + $0x74] ss:$8 sps:$4 sm:$0xff] (!%p271_p3)   ;;  %v1467_v18 = vld [vmem:[%s1898_s0 + $0x70] ss:$8 sps:$4 sm:$0xff] (!%p271_p3)  }
   0xc   : > { %v1468_v19 = vld [vmem:[%s1898_s0 + $0x84] ss:$8 sps:$4 sm:$0xff] (!%p271_p3)   ;;  %v1470_v20 = vld [vmem:[%s1898_s0 + $0x80] ss:$8 sps:$4 sm:$0xff] (!%p271_p3)   ;;  %v1471_v21 = vld [vmem:[%s1898_s0 + $0x94] ss:$8 sps:$4 sm:$0xff] (!%p271_p3)  }
   0xd   : > { %728 = vmatpush1.bf16.msra.mxu0 (!%p271_p3), %v1449_v4  ;;  %1402 = vmatpush1.bf16.msra.mxu1 (!%p271_p3), %v1449_v4  ;;  %v1473_v26 = vld [vmem:[%s1898_s0 + $0x90] ss:$8 sps:$4 sm:$0xff] (!%p271_p3)   ;;  %v1474_v27 = vld [vmem:[%s1898_s0 + $0xa4] ss:$8 sps:$4 sm:$0xff] (!%p271_p3)   ;;  %v1476_v30 = vld [vmem:[%s1898_s0 + $0xa0] ss:$8 sps:$4 sm:$0xff] (!%p271_p3)   ;;  %v939_v4 = vlaneseq (!%p271_p3) }
   0xe   : > { %729 = vmatprep.subr.bf16.mxu0 %v1450_v5  ;;  %1387 = vmatprep.subr.bf16.mxu1 %v1450_v5  ;;  %s1910_s11 = smov (!%p335_p4, %s1323_s11), 31  ;;  %v1477_v31 = vld [vmem:[%s1898_s0 + $0xb4] ss:$8 sps:$4 sm:$0xff]   ;;  %v1479_v34 = vld [vmem:[%s1898_s0 + $0xb0] ss:$8 sps:$4 sm:$0xff]  }
   0xf   : > { %s1630_s28 = sshll.u32 %s1910_s11, 3  ;;  %v1480_v35 = vld [vmem:[%s1898_s0 + $0xc4] ss:$8 sps:$4 sm:$0xff]   ;;  %v1482_v38 = vld [vmem:[%s1898_s0 + $0xc0] ss:$8 sps:$4 sm:$0xff]  }
  0x10   : > { %s1639_s9 = scalar_lea.vmem %s1899_s1, %s1630_s28  ;;  %s1662_s26 = scalar_lea.vmem %s1901_s3, %s1630_s28  ;;  %v1483_v39 = vld [vmem:[%s1898_s0 + $0xd4] ss:$8 sps:$4 sm:$0xff]   ;;  %v1485_v42 = vld [vmem:[%s1898_s0 + $0xd0] ss:$8 sps:$4 sm:$0xff]   ;;  %v1486_v43 = vld [vmem:[%s1898_s0 + $0xe4] ss:$8 sps:$4 sm:$0xff]  }
  0x11   : > { %730 = vmatpush1.bf16.msra.mxu0 %v1452_v6  ;;  %1403 = vmatpush1.bf16.msra.mxu1 %v1452_v6  ;;  %v1494_v14 = vld [vmem:[%s1639_s9 + $0x4] ss:$8 sps:$4 sm:$0xff]   ;;  %v1031_v22 = vld [vmem:[%s1662_s26 + $0x10] sm:$0xff]  ;;  %v1032_v24 = vld [vmem:[%s1662_s26 + $0x18] sm:$0xff]  ;;  %s1759_s25 = scalar_lea.vmem %s1902_s4, %s1630_s28  ;;  %s1810_s30 = scalar_lea.vmem %s1904_s6, %s1630_s28 }
  0x12   : > { %731 = vmatprep.subr.bf16.mxu0 %v1453_v7  ;;  %1388 = vmatprep.subr.bf16.mxu1 %v1453_v7  ;;  %v1497_v16 = vld [vmem:[%s1639_s9 + $0x44] ss:$8 sps:$4 sm:$0xff]   ;;  %v1036_v32 = vld [vmem:[%s1662_s26 + $0x38] sm:$0xff]  ;;  %v1035_v33 = vld [vmem:[%s1662_s26 + $0x30] sm:$0xff]  ;;  %v940_v7 = vshrl.u32 %v939_v4, 7 }
  0x13   : > { %757 = vmatprep.mubr.bf16.mxu0 %v1494_v14  ;;  %797 = vmatprep.mubr.bf16.mxu1 %v1497_v16  ;;  %v1029_v23 = vld [vmem:[%s1662_s26] sm:$0xff]  ;;  %v1030_v25 = vld [vmem:[%s1662_s26 + $0x8] sm:$0xff]  ;;  %v1040_v40 = vld [vmem:[%s1662_s26 + $0x58] sm:$0xff] }
  0x14   : > { %1057 = vperm.xlu1 %1443, %v1031_v22   ;;  %1047 = vperm.xlu0 %1442, %v1029_v23   ;;  %v1034_v28 = vld [vmem:[%s1662_s26 + $0x28] sm:$0xff]  ;;  %v1033_v29 = vld [vmem:[%s1662_s26 + $0x20] sm:$0xff]  ;;  %v1039_v41 = vld [vmem:[%s1662_s26 + $0x50] sm:$0xff] }
  0x15   : > { %732 = vmatpush1.bf16.msra.mxu0 %v1455_v8  ;;  %1404 = vmatpush1.bf16.msra.mxu1 %v1455_v8  ;;  %v1038_v36 = vld [vmem:[%s1662_s26 + $0x48] sm:$0xff]  ;;  %v1037_v37 = vld [vmem:[%s1662_s26 + $0x40] sm:$0xff]  ;;  %v1489_v47 = vld [vmem:[%s1898_s0 + $0xf4] ss:$8 sps:$4 sm:$0xff]  }
  0x16   : > { %733 = vmatprep.subr.bf16.mxu0 %v1456_v9  ;;  %1389 = vmatprep.subr.bf16.mxu1 %v1456_v9  ;;  %v1042_v44 = vld [vmem:[%s1662_s26 + $0x68] sm:$0xff]  ;;  %v1041_v45 = vld [vmem:[%s1662_s26 + $0x60] sm:$0xff]  ;;  %v1044_v48 = vld [vmem:[%s1662_s26 + $0x78] sm:$0xff] }
  0x17   : > { %v1488_v46 = vld [vmem:[%s1898_s0 + $0xe0] ss:$8 sps:$4 sm:$0xff]   ;;  %v1043_v49 = vld [vmem:[%s1662_s26 + $0x70] sm:$0xff]  ;;  %v1504_v57 = vld [vmem:[%s1639_s9 + $0x24] ss:$8 sps:$4 sm:$0xff]   ;;  %s1330_s26 = sshll.u32 %s1530_s21, 3 }
  0x18   : > { %1062 = vperm.xlu1 %1443, %v1032_v24   ;;  %1052 = vperm.xlu0 %1442, %v1030_v25   ;;  %v1491_v50 = vld [vmem:[%s1898_s0 + $0xf0] ss:$8 sps:$4 sm:$0xff]   ;;  %v1492_v51 = vld [vmem:[%s1639_s9] ss:$8 sps:$4 sm:$0xff]   ;;  %v1498_v53 = vld [vmem:[%s1639_s9 + $0x14] ss:$8 sps:$4 sm:$0xff]  }
  0x19   : > { %734 = vmatpush1.bf16.msra.mxu0 %v1458_v10  ;;  %1405 = vmatpush1.bf16.msra.mxu1 %v1458_v10  ;;  %v1495_v52 = vld [vmem:[%s1639_s9 + $0x40] ss:$8 sps:$4 sm:$0xff]   ;;  %v1500_v54 = vld [vmem:[%s1639_s9 + $0x54] ss:$8 sps:$4 sm:$0xff]   ;;  %v1502_v55 = vld [vmem:[%s1639_s9 + $0x10] ss:$8 sps:$4 sm:$0xff]  }
  0x1a   : > { %735 = vmatprep.subr.bf16.mxu0 %v1459_v11  ;;  %1390 = vmatprep.subr.bf16.mxu1 %v1459_v11  ;;  %v1503_v56 = vld [vmem:[%s1639_s9 + $0x50] ss:$8 sps:$4 sm:$0xff]   ;;  %v1506_v58 = vld [vmem:[%s1639_s9 + $0x64] ss:$8 sps:$4 sm:$0xff]   ;;  %v1508_v59 = vld [vmem:[%s1639_s9 + $0x20] ss:$8 sps:$4 sm:$0xff]  }
  0x1b   : > { %v1509_v60 = vld [vmem:[%s1639_s9 + $0x60] ss:$8 sps:$4 sm:$0xff]   ;;  %v1510_v61 = vld [vmem:[%s1639_s9 + $0x34] ss:$8 sps:$4 sm:$0xff]   ;;  %v1514_v63 = vld [vmem:[%s1639_s9 + $0x30] ss:$8 sps:$4 sm:$0xff]  }
  0x1c   : > { %1072 = vperm.xlu1 %1443, %v1034_v28   ;;  %1067 = vperm.xlu0 %1442, %v1033_v29   ;;  %v1512_v62 = vld [vmem:[%s1639_s9 + $0x74] ss:$8 sps:$4 sm:$0xff]   ;;  %v1515_v0 = vld [vmem:[%s1639_s9 + $0x70] ss:$8 sps:$4 sm:$0xff]   ;;  %v941_v10 = vsub.s32 0, %v940_v7  ;;  %p358_p5 = scmp.lt.s32.totalorder %s1330_s26, 15 }
  0x1d   : > { %736 = vmatpush1.bf16.msra.mxu0 %v1461_v12  ;;  %1406 = vmatpush1.bf16.msra.mxu1 %v1461_v12  ;;  %v937_v11 = vld [vmem:[%s1900_s2] sm:$0x3]  ;;  %v945_v12 = vsub.s32 1, %v940_v7 }
  0x1e   : > { %737 = vmatprep.subr.bf16.mxu0 %v1462_v13  ;;  %1391 = vmatprep.subr.bf16.mxu1 %v1462_v13  ;;  %v1753_v13 = vrot.slane %v937_v11, %v941_v10  ;;  %s1912_s26 = smov (!%p358_p5, %s1330_s26), 15  ;;  %v1013_v24 = vld [vmem:[%s1759_s25] sm:$0xff] }
  0x1f   : > { %v1761_v14 = vrot.slane %v937_v11, %v945_v12  ;;  %s1331_s21 = sshll.u32 %s1912_s26, 3 }
  0x20   : > { %1082 = vperm.xlu1 %1443, %v1036_v32   ;;  %1077 = vperm.xlu0 %1442, %v1035_v33   ;;  %v1014_v32 = vld [vmem:[%s1759_s25 + $0x8] sm:$0xff]  ;;  %s1823_s10 = scalar_lea.vmem %s1903_s5, %s1331_s21 }
  0x21   : > { %738 = vmatpush1.bf16.msra.mxu0 %v1464_v15  ;;  %1407 = vmatpush1.bf16.msra.mxu1 %v1464_v15 }
  0x22   : > { %739 = vmatprep.subr.bf16.mxu0 %v1465_v17  ;;  %1392 = vmatprep.subr.bf16.mxu1 %v1465_v17 }
  0x24   : > { %1092 = vperm.xlu1 %1443, %v1038_v36   ;;  %1087 = vperm.xlu0 %1442, %v1037_v37   ;;  %v1023_v36 = vld [vmem:[%s1759_s25 + $0x50] sm:$0xff]  ;;  %v1781_v37 = vld [vmem:[%s1759_s25 + $0x18] sm:$0xff] }
  0x25   : > { %740 = vmatpush1.bf16.msra.mxu0 %v1467_v18  ;;  %1408 = vmatpush1.bf16.msra.mxu1 %v1467_v18 }
  0x26   : > { %741 = vmatprep.subr.bf16.mxu0 %v1468_v19  ;;  %1393 = vmatprep.subr.bf16.mxu1 %v1468_v19 }
  0x28   : > { %1102 = vperm.xlu1 %1443, %v1040_v40   ;;  %1097 = vperm.xlu0 %1442, %v1039_v41   ;;  %v1790_v40 = vld [vmem:[%s1759_s25 + $0x60] sm:$0xff]  ;;  %v1793_v41 = vld [vmem:[%s1759_s25 + $0x28] sm:$0xff] }
  0x29   : > { %742 = vmatpush1.bf16.msra.mxu0 %v1470_v20  ;;  %1409 = vmatpush1.bf16.msra.mxu1 %v1470_v20 }
  0x2a   : > { %743 = vmatprep.subr.bf16.mxu0 %v1471_v21  ;;  %1394 = vmatprep.subr.bf16.mxu1 %v1471_v21 }
  0x2c   : > { %1112 = vperm.xlu1 %1443, %v1042_v44   ;;  %1107 = vperm.xlu0 %1442, %v1041_v45  }
  0x2d   : > { %744 = vmatpush1.bf16.msra.mxu0 %v1473_v26  ;;  %1410 = vmatpush1.bf16.msra.mxu1 %v1473_v26  ;;  %v1021_v26 = vld [vmem:[%s1759_s25 + $0x40] sm:$0xff] }
  0x2e   : > { %745 = vmatprep.subr.bf16.mxu0 %v1474_v27  ;;  %1395 = vmatprep.subr.bf16.mxu1 %v1474_v27 }
  0x30   : > { %1122 = vperm.xlu1 %1443, %v1044_v48   ;;  %1117 = vperm.xlu0 %1442, %v1043_v49   ;;  %v1804_v48 = vld [vmem:[%s1759_s25 + $0x70] sm:$0xff] }
  0x31   : > { %746 = vmatpush1.bf16.msra.mxu0 %v1476_v30  ;;  %1411 = vmatpush1.bf16.msra.mxu1 %v1476_v30 }
  0x32   : > { %747 = vmatprep.subr.bf16.mxu0 %v1477_v31  ;;  %1396 = vmatprep.subr.bf16.mxu1 %v1477_v31 }
  0x35   : > { %748 = vmatpush1.bf16.msra.mxu0 %v1479_v34  ;;  %1412 = vmatpush1.bf16.msra.mxu1 %v1479_v34  ;;  %v1022_v34 = vld [vmem:[%s1759_s25 + $0x48] sm:$0xff] }
  0x36   : > { %749 = vmatprep.subr.bf16.mxu0 %v1480_v35  ;;  %1397 = vmatprep.subr.bf16.mxu1 %v1480_v35  ;;  %v1015_v35 = vld [vmem:[%s1759_s25 + $0x10] sm:$0xff] }
  0x39   : > { %750 = vmatpush1.bf16.msra.mxu0 %v1482_v38  ;;  %1413 = vmatpush1.bf16.msra.mxu1 %v1482_v38  ;;  %v1784_v38 = vld [vmem:[%s1759_s25 + $0x58] sm:$0xff] }
  0x3a   : > { %751 = vmatprep.subr.bf16.mxu0 %v1483_v39  ;;  %1398 = vmatprep.subr.bf16.mxu1 %v1483_v39  ;;  %v1787_v39 = vld [vmem:[%s1759_s25 + $0x20] sm:$0xff] }
  0x3d   : > { %752 = vmatpush1.bf16.msra.mxu0 %v1485_v42  ;;  %1414 = vmatpush1.bf16.msra.mxu1 %v1485_v42 }
  0x3e   : > { %753 = vmatprep.subr.bf16.mxu0 %v1486_v43  ;;  %1399 = vmatprep.subr.bf16.mxu1 %v1486_v43 }
  0x41   : > { %754 = vmatpush1.bf16.msra.mxu0 %v1488_v46  ;;  %1415 = vmatpush1.bf16.msra.mxu1 %v1488_v46  ;;  %v1798_v46 = vld [vmem:[%s1759_s25 + $0x68] sm:$0xff] }
  0x42   : > { %755 = vmatprep.subr.bf16.mxu0 %v1489_v47  ;;  %1400 = vmatprep.subr.bf16.mxu1 %v1489_v47  ;;  %v1801_v47 = vld [vmem:[%s1759_s25 + $0x30] sm:$0xff] }
  0x45   : > { %756 = vmatpush1.bf16.msra.mxu0 %v1491_v50  ;;  %1416 = vmatpush1.bf16.msra.mxu1 %v1491_v50 }
  0x48   : > { %758 = vmatmul.mubr.bf16.vlgmr.msra.gmra.mrb[0].mxu0 %v1492_v51  ;;  %798 = vmatmul.mubr.bf16.vlgmr.msra.gmra.mrb[0].mxu1 %v1495_v52 }
  0x49   : > { %767 = vmatprep.mubr.bf16.mxu0 %v1498_v53  ;;  %807 = vmatprep.mubr.bf16.mxu1 %v1500_v54  ;;  %v1813_v54 = vld [vmem:[%s1759_s25 + $0x38] sm:$0xff] }
  0x50   : > { %768 = vmatmul.mubr.bf16.gmra.mrb[4].mxu0 %v1502_v55  ;;  %808 = vmatmul.mubr.bf16.gmra.mrb[4].mxu1 %v1503_v56  ;;  %v1816_v55 = vld [vmem:[%s1759_s25 + $0x78] sm:$0xff] }
  0x51   : > { %777 = vmatprep.mubr.bf16.mxu0 %v1504_v57  ;;  %817 = vmatprep.mubr.bf16.mxu1 %v1506_v58 }
  0x58   : > { %778 = vmatmul.mubr.bf16.gmra.mrb[8].mxu0 %v1508_v59  ;;  %818 = vmatmul.mubr.bf16.gmra.mrb[8].mxu1 %v1509_v60 }
  0x59   : > { %787 = vmatprep.mubr.bf16.mxu0 %v1510_v61  ;;  %827 = vmatprep.mubr.bf16.mxu1 %v1512_v62 }
  0x60   : > { %788 = vmatmul.mubr.bf16.gmra.mrb[12].mxu0 %v1514_v63  ;;  %828 = vmatmul.mubr.bf16.gmra.mrb[12].mxu1 %v1515_v0 }
  0x93   : > { %v1048_v1 = vpop.permute.xlu0 %1047  ;;  %v1739_v2 = vpop.permute.xlu1 %1057 }
  0x97   : > { %v1053_v3 = vpop.permute.xlu0 %1052  ;;  %v1741_v5 = vpop.permute.xlu1 %1062 }
  0x9b   : > { %v1743_v6 = vpop.permute.xlu0 %1067  ;;  %v1746_v8 = vpop.permute.xlu1 %1072 }
  0x9f   : > { %v1748_v9 = vpop.permute.xlu0 %1077  ;;  %v1763_v15 = vpop.permute.xlu1 %1082 }
  0xa3   : > { %v1088_v16 = vpop.permute.xlu0 %1087  ;;  %v1093_v49 = vpop.permute.xlu1 %1092 }
  0xa7   : > { %v1098_v60 = vpop.permute.xlu0 %1097 }
 0x11b   : > { %v759_v17 = vpop.f32.mrb[0].mxu0  ;;  %v799_v18 = vpop.f32.mrb[0].mxu1 }
 0x11c   : > { %v949_v19 = vadd.f32 %v1753_v13, %v759_v17  ;;  %v965_v20 = vadd.f32 %v1753_v13, %v799_v18  ;;  %v761_v21 = vpop.f32.mrb[1].mxu0  ;;  %v801_v22 = vpop.f32.mrb[1].mxu1 }
 0x11d   : > { %v950_v23 = vadd.f32 %v1761_v14, %v761_v21  ;;  %v966_v25 = vadd.f32 %v1761_v14, %v801_v22  ;;  %v763_v27 = vpop.f32.mrb[2].mxu0  ;;  %v803_v28 = vpop.f32.mrb[2].mxu1 }
 0x11e   : > { %v951_v29 = vadd.f32 %v1753_v13, %v763_v27  ;;  %v967_v30 = vadd.f32 %v1753_v13, %v803_v28  ;;  %v765_v31 = vpop.f32.mrb[3].mxu0  ;;  %v805_v33 = vpop.f32.mrb[3].mxu1  ;;  %v981_v50 = vmax.f32 %v949_v19, 0.0  ;;  %v989_v51 = vmax.f32 %v965_v20, 0.0 }
 0x11f   : > { %v1125_v42 = vmul.f32 %v1048_v1, %v950_v23  ;;  %v1133_v43 = vmul.f32 %v1088_v16, %v966_v25  ;;  %v952_v44 = vadd.f32 %v1761_v14, %v765_v31  ;;  %v968_v45 = vadd.f32 %v1761_v14, %v805_v33  ;;  %v1103_v27 = vpop.permute.xlu1 %1102 }
 0x120   : > { %v982_v52 = vmax.f32 %v951_v29, 0.0  ;;  %v990_v53 = vmax.f32 %v967_v30, 0.0 }
 0x121   : > { %v1141_v56 = vadd.f32 %v1125_v42, %v1013_v24  ;;  %v1149_v57 = vadd.f32 %v1133_v43, %v1021_v26  ;;  %v1126_v58 = vmul.f32 %v1053_v3, %v952_v44  ;;  %v1134_v59 = vmul.f32 %v1093_v49, %v968_v45 }
 0x122   : > { %v997_v61 = vpack.c.bf16 %v982_v52, %v981_v50  ;;  %v1001_v62 = vpack.c.bf16 %v990_v53, %v989_v51 }
 0x123   : > { %v1142_v63 = vadd.f32 %v1126_v58, %v1014_v32  ;;  %v1150_v0 = vadd.f32 %v1134_v59, %v1022_v34  ;;  %v769_v1 = vpop.f32.mrb[4].mxu0  ;;  %v809_v4 = vpop.f32.mrb[4].mxu1  ;;  %1157 = vst [vmem:[%s1810_s30] sm:$0xff] %v1141_v56  ;;  %1165 = vst [vmem:[%s1810_s30 + $0x40] sm:$0xff] %v1149_v57 }
 0x124   : > { %1005 = vst [vmem:[%s1823_s10] sm:$0xff] %v997_v61  ;;  %1009 = vst [vmem:[%s1823_s10 + $0x20] sm:$0xff] %v1001_v62  ;;  %v953_v7 = vadd.f32 %v1753_v13, %v769_v1  ;;  %v969_v10 = vadd.f32 %v1753_v13, %v809_v4  ;;  %v771_v11 = vpop.f32.mrb[5].mxu0  ;;  %v811_v3 = vpop.f32.mrb[5].mxu1 }
 0x125   : > { %v954_v12 = vadd.f32 %v1761_v14, %v771_v11  ;;  %v970_v16 = vadd.f32 %v1761_v14, %v811_v3  ;;  %v773_v17 = vpop.f32.mrb[6].mxu0  ;;  %v813_v18 = vpop.f32.mrb[6].mxu1  ;;  %1158 = vst [vmem:[%s1810_s30 + $0x8] sm:$0xff] %v1142_v63  ;;  %1166 = vst [vmem:[%s1810_s30 + $0x48] sm:$0xff] %v1150_v0 }
 0x126   : > { %v955_v19 = vadd.f32 %v1753_v13, %v773_v17  ;;  %v971_v20 = vadd.f32 %v1753_v13, %v813_v18  ;;  %v775_v21 = vpop.f32.mrb[7].mxu0  ;;  %v815_v22 = vpop.f32.mrb[7].mxu1  ;;  %v983_v28 = vmax.f32 %v953_v7, 0.0  ;;  %v991_v29 = vmax.f32 %v969_v10, 0.0 }
 0x127   : > { %v1127_v23 = vmul.f32 %v1739_v2, %v954_v12  ;;  %v1135_v24 = vmul.f32 %v1098_v60, %v970_v16  ;;  %v956_v25 = vadd.f32 %v1761_v14, %v775_v21  ;;  %v972_v26 = vadd.f32 %v1761_v14, %v815_v22  ;;  %v1108_v2 = vpop.permute.xlu0 %1107  ;;  %v1113_v1 = vpop.permute.xlu1 %1112 }
 0x128   : > { %v984_v30 = vmax.f32 %v955_v19, 0.0  ;;  %v992_v31 = vmax.f32 %v971_v20, 0.0 }
 0x129   : > { %v1143_v32 = vadd.f32 %v1127_v23, %v1015_v35  ;;  %v1151_v33 = vadd.f32 %v1135_v24, %v1023_v36  ;;  %v1128_v34 = vmul.f32 %v1741_v5, %v956_v25  ;;  %v1136_v42 = vmul.f32 %v1103_v27, %v972_v26 }
 0x12a   : > { %v998_v43 = vpack.c.bf16 %v984_v30, %v983_v28  ;;  %v1002_v44 = vpack.c.bf16 %v992_v31, %v991_v29 }
 0x12b   : > { %v1144_v45 = vadd.f32 %v1128_v34, %v1781_v37  ;;  %v1152_v49 = vadd.f32 %v1136_v42, %v1784_v38  ;;  %v779_v50 = vpop.f32.mrb[8].mxu0  ;;  %v819_v51 = vpop.f32.mrb[8].mxu1  ;;  %1159 = vst [vmem:[%s1810_s30 + $0x10] sm:$0xff] %v1143_v32  ;;  %1167 = vst [vmem:[%s1810_s30 + $0x50] sm:$0xff] %v1151_v33 }
 0x12c   : > { %1006 = vst [vmem:[%s1823_s10 + $0x8] sm:$0xff] %v998_v43  ;;  %1010 = vst [vmem:[%s1823_s10 + $0x28] sm:$0xff] %v1002_v44  ;;  %v957_v35 = vadd.f32 %v1753_v13, %v779_v50  ;;  %v973_v5 = vadd.f32 %v1753_v13, %v819_v51  ;;  %v781_v36 = vpop.f32.mrb[9].mxu0  ;;  %v821_v52 = vpop.f32.mrb[9].mxu1 }
 0x12d   : > { %v958_v53 = vadd.f32 %v1761_v14, %v781_v36  ;;  %v974_v37 = vadd.f32 %v1761_v14, %v821_v52  ;;  %v783_v56 = vpop.f32.mrb[10].mxu0  ;;  %v823_v57 = vpop.f32.mrb[10].mxu1  ;;  %1160 = vst [vmem:[%s1810_s30 + $0x18] sm:$0xff] %v1144_v45  ;;  %1168 = vst [vmem:[%s1810_s30 + $0x58] sm:$0xff] %v1152_v49 }
 0x12e   : > { %v959_v38 = vadd.f32 %v1753_v13, %v783_v56  ;;  %v975_v58 = vadd.f32 %v1753_v13, %v823_v57  ;;  %v785_v59 = vpop.f32.mrb[11].mxu0  ;;  %v825_v60 = vpop.f32.mrb[11].mxu1  ;;  %v985_v4 = vmax.f32 %v957_v35, 0.0  ;;  %v993_v7 = vmax.f32 %v973_v5, 0.0 }
 0x12f   : > { %v1129_v61 = vmul.f32 %v1743_v6, %v958_v53  ;;  %v1137_v62 = vmul.f32 %v1108_v2, %v974_v37  ;;  %v960_v63 = vadd.f32 %v1761_v14, %v785_v59  ;;  %v976_v0 = vadd.f32 %v1761_v14, %v825_v60  ;;  %v1118_v17 = vpop.permute.xlu0 %1117  ;;  %v1123_v42 = vpop.permute.xlu1 %1122 }
 0x130   : > { %v986_v10 = vmax.f32 %v959_v38, 0.0  ;;  %v994_v11 = vmax.f32 %v975_v58, 0.0 }
 0x131   : > { %v1145_v3 = vadd.f32 %v1129_v61, %v1787_v39  ;;  %v1153_v12 = vadd.f32 %v1137_v62, %v1790_v40  ;;  %v1130_v6 = vmul.f32 %v1746_v8, %v960_v63  ;;  %v1138_v16 = vmul.f32 %v1113_v1, %v976_v0 }
 0x132   : > { %v999_v18 = vpack.c.bf16 %v986_v10, %v985_v4  ;;  %v1003_v19 = vpack.c.bf16 %v994_v11, %v993_v7 }
 0x133   : > { %v1146_v20 = vadd.f32 %v1130_v6, %v1793_v41  ;;  %v1154_v21 = vadd.f32 %v1138_v16, %v1798_v46  ;;  %v789_v22 = vpop.f32.mrb[12].mxu0  ;;  %v829_v23 = vpop.f32.mrb[12].mxu1  ;;  %1161 = vst [vmem:[%s1810_s30 + $0x20] sm:$0xff] %v1145_v3  ;;  %1169 = vst [vmem:[%s1810_s30 + $0x60] sm:$0xff] %v1153_v12 }
 0x134   : > { %1007 = vst [vmem:[%s1823_s10 + $0x10] sm:$0xff] %v999_v18  ;;  %1011 = vst [vmem:[%s1823_s10 + $0x30] sm:$0xff] %v1003_v19  ;;  %v961_v39 = vadd.f32 %v1753_v13, %v789_v22  ;;  %v977_v8 = vadd.f32 %v1753_v13, %v829_v23  ;;  %v791_v40 = vpop.f32.mrb[13].mxu0  ;;  %v831_v24 = vpop.f32.mrb[13].mxu1 }
 0x135   : > { %v962_v25 = vadd.f32 %v1761_v14, %v791_v40  ;;  %v978_v41 = vadd.f32 %v1761_v14, %v831_v24  ;;  %v793_v26 = vpop.f32.mrb[14].mxu0  ;;  %v833_v27 = vpop.f32.mrb[14].mxu1  ;;  %1162 = vst [vmem:[%s1810_s30 + $0x28] sm:$0xff] %v1146_v20  ;;  %1170 = vst [vmem:[%s1810_s30 + $0x68] sm:$0xff] %v1154_v21 }
 0x136   : > { %v963_v46 = vadd.f32 %v1753_v13, %v793_v26  ;;  %v979_v28 = vadd.f32 %v1753_v13, %v833_v27  ;;  %v795_v29 = vpop.f32.mrb[15].mxu0  ;;  %v835_v30 = vpop.f32.mrb[15].mxu1  ;;  %v987_v2 = vmax.f32 %v961_v39, 0.0  ;;  %v995_v43 = vmax.f32 %v977_v8, 0.0 }
 0x137   : > { %v1131_v31 = vmul.f32 %v1748_v9, %v962_v25  ;;  %v1139_v32 = vmul.f32 %v1118_v17, %v978_v41  ;;  %v964_v33 = vadd.f32 %v1761_v14, %v795_v29  ;;  %v980_v34 = vadd.f32 %v1761_v14, %v835_v30 }
 0x138   : > { %v988_v44 = vmax.f32 %v963_v46, 0.0  ;;  %v996_v13 = vmax.f32 %v979_v28, 0.0 }
 0x139   : > { %v1147_v45 = vadd.f32 %v1131_v31, %v1801_v47  ;;  %v1155_v9 = vadd.f32 %v1139_v32, %v1804_v48  ;;  %v1132_v49 = vmul.f32 %v1763_v15, %v964_v33  ;;  %v1140_v50 = vmul.f32 %v1123_v42, %v980_v34 }
 0x13a   : > { %v1000_v51 = vpack.c.bf16 %v988_v44, %v987_v2  ;;  %v1004_v35 = vpack.c.bf16 %v996_v13, %v995_v43 }
 0x13b   : > { %v1148_v14 = vadd.f32 %v1132_v49, %v1813_v54  ;;  %v1156_v5 = vadd.f32 %v1140_v50, %v1816_v55  ;;  %1163 = vst [vmem:[%s1810_s30 + $0x30] sm:$0xff] %v1147_v45  ;;  %1171 = vst [vmem:[%s1810_s30 + $0x70] sm:$0xff] %v1155_v9 }
 0x13c   : > { %1008 = vst [vmem:[%s1823_s10 + $0x18] sm:$0xff] %v1000_v51  ;;  %1012 = vst [vmem:[%s1823_s10 + $0x38] sm:$0xff] %v1004_v35 }
 0x13d   : > { %1164 = vst [vmem:[%s1810_s30 + $0x38] sm:$0xff] %v1148_v14  ;;  %1172 = vst [vmem:[%s1810_s30 + $0x78] sm:$0xff] %v1156_v5 }
 0x13e PF: > { %s17_s23 = sadd.s32 1, %s1538_s23   ;;  %s1905_s21 = smov %s1534_s22 }
 0x13f   : > { %p14_p6 = scmp.ge.s32.totalorder %s17_s23, 4   ;;  %s1906_s22 = smov %s1908_s24 }
 0x141   :  { %16 = sbr.rel (!%p14_p6) target bundleno = 2 (0x2), region = 99 }

</bundles_post_ra>
